<compile_context>
chip_gen: v5e
topology: v5e:2x2
jax: 0.10.0
libtpu: 0.0.40
codegen_flags: <defaults>
</compile_context>

<pallas_src>
import functools

import jax
import jax.numpy as jnp
from jax.experimental import pallas as pl
from jax.experimental.pallas import tpu as pltpu


# ----------------------------------------------------------------------------
# Pallas kernels
# ----------------------------------------------------------------------------
def _conv_block_onedot_kernel(p_ref, w_ref, b_ref, o_ref):
    """Fused conv (single matmul) + max over pool taps + bias + ReLU.

    p_ref: (K, G*M) bf16 im2col patches, pool taps concatenated along lanes.
    w_ref: (Cout, K) bf16 reshaped conv weight.
    b_ref: (Cout, 1) f32 bias.
    o_ref: (Cout, M)  bf16 output (M = N*H'*W', lane-dense).
    """
    m = o_ref.shape[1]
    groups = p_ref.shape[1] // m
    acc = jnp.dot(w_ref[...], p_ref[...], preferred_element_type=jnp.float32)
    out = acc[:, :m]
    for g in range(1, groups):                      # static, lane-aligned slices
        out = jnp.maximum(out, acc[:, g * m:(g + 1) * m])
    o_ref[...] = jnp.maximum(out + b_ref[...], 0.0).astype(o_ref.dtype)


def _conv_block_multidot_kernel(p_ref, w_ref, b_ref, o_ref):
    """Same fusion with a per-tap dot loop (per-tap M not lane-aligned: conv5).

    p_ref: (G, K, M) bf16; w_ref: (Cout, K) bf16; b_ref: (Cout, 1) f32;
    o_ref: (Cout, M) bf16.
    """
    w = w_ref[...]
    out = jnp.dot(w, p_ref[0], preferred_element_type=jnp.float32)
    for g in range(1, p_ref.shape[0]):
        out = jnp.maximum(
            out, jnp.dot(w, p_ref[g], preferred_element_type=jnp.float32))
    o_ref[...] = jnp.maximum(out + b_ref[...], 0.0).astype(o_ref.dtype)


def _linear_kernel(x_ref, w_ref, b_ref, o_ref):
    # x: (N, F) bf16, w: (O, F) bf16 (PyTorch layout, NOT pre-transposed),
    # b: (1, O) f32  ->  o: (N, O) f32.   Contract F with F (x @ w^T).
    acc = jax.lax.dot_general(
        x_ref[...], w_ref[...],
        dimension_numbers=(((1,), (1,)), ((), ())),
        preferred_element_type=jnp.float32)
    o_ref[...] = (acc + b_ref[...]).astype(o_ref.dtype)


# ----------------------------------------------------------------------------
# pallas_call wrappers (grid-less: everything fits VMEM at this problem size)
# ----------------------------------------------------------------------------
def _vmem_specs(n):
    return [pl.BlockSpec(memory_space=pltpu.MemorySpace.VMEM)] * n


def _conv_call(kernel, patches, w2, b2, out_m, *, flops):
    Cout = w2.shape[0]
    cost = pl.CostEstimate(
        flops=int(flops),
        transcendentals=0,
        bytes_accessed=int(2 * (patches.size + w2.size + Cout * out_m) + 4 * Cout),
    )
    return pl.pallas_call(
        kernel,
        out_shape=jax.ShapeDtypeStruct((Cout, out_m), jnp.bfloat16),
        in_specs=_vmem_specs(3),
        out_specs=pl.BlockSpec(memory_space=pltpu.MemorySpace.VMEM),
        compiler_params=pltpu.CompilerParams(
            allow_input_fusion=[True, False, False]),
        cost_estimate=cost,
    )(patches, w2, b2)


def _im2col(a, k, pad):
    """a: (C, N, H, W) channel-major, stride-1 conv.

    Returns (C*k*k, N, OH, OW) with K ordered (c, kh, kw) — matching
    w.reshape(Cout, C*k*k) — plus OH, OW.
    """
    C, N, H, W = a.shape
    ap = jnp.pad(a, ((0, 0), (0, 0), (pad, pad), (pad, pad)))
    OH = H + 2 * pad - k + 1
    OW = W + 2 * pad - k + 1
    cols = [ap[:, :, i:i + OH, j:j + OW] for i in range(k) for j in range(k)]
    p = jnp.stack(cols, axis=1)                       # (C, k*k, N, OH, OW)
    return p.reshape(C * k * k, N, OH, OW), OH, OW


def conv_block(a, w, b, *, pool):
    """Fused Conv2d(k=3, s=1, p=1) + ReLU (+ MaxPool2d(2,2) if pool).

    a: (Cin, N, H, W) channel-major; w: (Cout, Cin, 3, 3); b: (Cout,).
    Returns (Cout, N, H', W') channel-major bf16.
    """
    Cout, Cin, KH, KW = w.shape
    C, N, H, W = a.shape
    assert C == Cin
    K = Cin * KH * KW
    a = a.astype(jnp.bfloat16)                        # bf16 activations / patches
    w2 = w.reshape(Cout, K).astype(jnp.bfloat16)
    b2 = b.reshape(Cout, 1).astype(jnp.float32)
    p4, OH, OW = _im2col(a, KH, 1)                    # (K, N, OH, OW)
    if pool:
        PH, PW = OH // 2, OW // 2
        M = N * PH * PW
        taps = [p4[:, :, i::2, j::2].reshape(K, M)
                for i in range(2) for j in range(2)]
        if M % 128 == 0:
            # Pool taps concatenated along lanes -> one MXU matmul in-kernel.
            patches = jnp.concatenate(taps, axis=1)   # (K, 4*M)
            out = _conv_call(_conv_block_onedot_kernel, patches, w2, b2, M,
                             flops=2 * Cout * K * 4 * M)
        else:
            # Per-tap M too small to lane-align; keep a per-tap dot loop.
            patches = jnp.stack(taps, axis=0)         # (4, K, M)
            out = _conv_call(_conv_block_multidot_kernel, patches, w2, b2, M,
                             flops=2 * Cout * K * 4 * M)
        out_h, out_w = PH, PW
    else:
        M = N * OH * OW
        patches = p4.reshape(K, M)                    # (K, M), single "tap"
        out = _conv_call(_conv_block_onedot_kernel, patches, w2, b2, M,
                         flops=2 * Cout * K * M)
        out_h, out_w = OH, OW
    return out.reshape(Cout, N, out_h, out_w)


def linear(x, w, b):
    """x: (N, F), w: (O, F) PyTorch layout (kept as-is), b: (O,). -> (N, O) f32."""
    N, F = x.shape
    O = w.shape[0]
    cost = pl.CostEstimate(
        flops=2 * N * F * O,
        transcendentals=0,
        bytes_accessed=2 * (N * F + O * F) + 4 * (O + N * O),
    )
    return pl.pallas_call(
        _linear_kernel,
        out_shape=jax.ShapeDtypeStruct((N, O), jnp.float32),
        in_specs=_vmem_specs(3),
        out_specs=pl.BlockSpec(memory_space=pltpu.MemorySpace.VMEM),
        cost_estimate=cost,
    )(x.astype(jnp.bfloat16), w.astype(jnp.bfloat16),
      b.reshape(1, O).astype(jnp.float32))


# ----------------------------------------------------------------------------
# Model config: AlexNet-like "wide" stack at small synthetic sizes
# conv1->relu->mp1 -> conv2->relu->mp2 -> conv3->relu -> conv4->relu
#   -> conv5->relu->mp5 -> last (Flatten + Linear)
# NOTE: mp4 exists in __init__ of the PyTorch module but is NOT used in
# forward — mirrored here (its config is defined but never applied).
# ----------------------------------------------------------------------------
_CFG = dict(
    conv1=dict(cin=3, cout=16, k=3, stride=1, pad=1),
    conv2=dict(cin=16, cout=32, k=3, stride=1, pad=1),
    conv3=dict(cin=32, cout=48, k=3, stride=1, pad=1),
    conv4=dict(cin=48, cout=48, k=3, stride=1, pad=1),
    conv5=dict(cin=48, cout=32, k=3, stride=1, pad=1),
    mp1=dict(kernel_size=2, stride=2),
    mp2=dict(kernel_size=2, stride=2),
    mp4=dict(kernel_size=2, stride=2),   # defined, unused (matches reference)
    mp5=dict(kernel_size=2, stride=2),
    last=dict(in_features=32 * 4 * 4, out_features=10),
)


def _init_conv(key, cout, cin, k):
    kw, kb = jax.random.split(key)
    fan_in = cin * k * k
    bound = 1.0 / jnp.sqrt(fan_in)
    w = jax.random.uniform(kw, (cout, cin, k, k), jnp.float32, -bound, bound)
    b = jax.random.uniform(kb, (cout,), jnp.float32, -bound, bound)
    return w, b


def _init_linear(key, out_f, in_f):
    kw, kb = jax.random.split(key)
    bound = 1.0 / jnp.sqrt(in_f)
    w = jax.random.uniform(kw, (out_f, in_f), jnp.float32, -bound, bound)
    b = jax.random.uniform(kb, (out_f,), jnp.float32, -bound, bound)
    return w, b


def init_params(key):
    keys = jax.random.split(key, 6)
    params = {}
    for i, name in enumerate(["conv1", "conv2", "conv3", "conv4", "conv5"]):
        c = _CFG[name]
        params[name] = _init_conv(keys[i], c["cout"], c["cin"], c["k"])
    c = _CFG["last"]
    params["last"] = _init_linear(keys[5], c["out_features"], c["in_features"])
    return params


def forward(params, x, print_shape=False):
    # x: (N, C, H, W) NCHW -> channel-major (C, N, H, W) for lane-dense kernels.
    a = jnp.transpose(x, (1, 0, 2, 3))
    a = conv_block(a, *params["conv1"], pool=True)    # conv1 + relu1 + mp1
    if print_shape:
        print("mp1", a.shape)
    a = conv_block(a, *params["conv2"], pool=True)    # conv2 + relu2 + mp2
    if print_shape:
        print("mp2", a.shape)
    a = conv_block(a, *params["conv3"], pool=False)   # conv3 + relu3
    if print_shape:
        print("conv3", a.shape)
    a = conv_block(a, *params["conv4"], pool=False)   # conv4 + relu4 (mp4 unused)
    if print_shape:
        print("conv4", a.shape)
    a = conv_block(a, *params["conv5"], pool=True)    # conv5 + relu5 + mp5
    if print_shape:
        print("mp5", a.shape)
    # `last`: Flatten (PyTorch (c, h, w) order per sample) + Linear readout.
    C, N, H, W = a.shape
    feats = jnp.transpose(a, (1, 0, 2, 3)).reshape(N, C * H * W)
    w, b = params["last"]
    out = linear(feats, w, b)
    if print_shape:
        print("output", out.shape)
    return out


if __name__ == "__main__":
    key = jax.random.PRNGKey(0)
    k_param, k_x = jax.random.split(key)
    params = init_params(k_param)
    x = jax.random.normal(k_x, (2, 3, 32, 32), jnp.float32)   # NCHW input

    fwd = jax.jit(functools.partial(forward, print_shape=False))
    out = fwd(params, x)
    jax.block_until_ready(out)
    assert out.shape == (2, 10)
    print("KERNEL_OK")
</pallas_src>

<mosaic_0001>
module attributes {stable_mosaic.version = 11 : i64} {
  func.func @_conv_block_onedot_kernel(%arg0: memref<27x2048xbf16, #tpu.memory_space<vmem>>, %arg1: memref<16x27xbf16, #tpu.memory_space<vmem>>, %arg2: memref<16x1xf32, #tpu.memory_space<vmem>>, %arg3: memref<16x512xbf16, #tpu.memory_space<vmem>>) attributes {dimension_semantics = [], scalar_prefetch = 0 : i64, scratch_operands = 0 : i64, tpu.core_type = #tpu.core_type<tc>} {
    %c0 = arith.constant 0 : index
    %c0_0 = arith.constant 0 : index
    %0 = vector.load %arg1[%c0, %c0_0] : memref<16x27xbf16, #tpu.memory_space<vmem>>, vector<16x27xbf16>
    %c0_1 = arith.constant 0 : index
    %c0_2 = arith.constant 0 : index
    %1 = vector.load %arg0[%c0_1, %c0_2] : memref<27x2048xbf16, #tpu.memory_space<vmem>>, vector<27x2048xbf16>
    %cst = arith.constant dense<0.000000e+00> : vector<16x2048xf32>
    %2 = tpu.matmul %0, %1, %cst {dimension_numbers = #tpu.dot_dimension_numbers<[1], [0], [0], [1], [0, 0, 1, 1], [], []>} : vector<16x27xbf16>, vector<27x2048xbf16>, vector<16x2048xf32> -> vector<16x2048xf32>
    %3 = vector.extract_strided_slice %2 {offsets = [0, 0], sizes = [16, 512], strides = [1, 1]} : vector<16x2048xf32> to vector<16x512xf32>
    %4 = vector.extract_strided_slice %2 {offsets = [0, 512], sizes = [16, 512], strides = [1, 1]} : vector<16x2048xf32> to vector<16x512xf32>
    %5 = arith.maximumf %3, %4 : vector<16x512xf32>
    %6 = vector.extract_strided_slice %2 {offsets = [0, 1024], sizes = [16, 512], strides = [1, 1]} : vector<16x2048xf32> to vector<16x512xf32>
    %7 = arith.maximumf %5, %6 : vector<16x512xf32>
    %8 = vector.extract_strided_slice %2 {offsets = [0, 1536], sizes = [16, 512], strides = [1, 1]} : vector<16x2048xf32> to vector<16x512xf32>
    %9 = arith.maximumf %7, %8 : vector<16x512xf32>
    %c0_3 = arith.constant 0 : index
    %c0_4 = arith.constant 0 : index
    %10 = vector.load %arg2[%c0_3, %c0_4] : memref<16x1xf32, #tpu.memory_space<vmem>>, vector<16x1xf32>
    %11 = vector.broadcast %10 : vector<16x1xf32> to vector<16x512xf32>
    %12 = arith.addf %9, %11 : vector<16x512xf32>
    %cst_5 = arith.constant 0.000000e+00 : f32
    %13 = vector.broadcast %cst_5 : f32 to vector<16x512xf32>
    %14 = arith.maximumf %12, %13 : vector<16x512xf32>
    %15 = arith.truncf %14 : vector<16x512xf32> to vector<16x512xbf16>
    %c0_6 = arith.constant 0 : index
    %c0_7 = arith.constant 0 : index
    %16 = vector.load %arg3[%c0_6, %c0_7] : memref<16x512xbf16, #tpu.memory_space<vmem>>, vector<16x512xbf16>
    tpu.vector_store %arg3[%c0_6, %c0_7], %15 {strides = array<i32>} : memref<16x512xbf16, #tpu.memory_space<vmem>>, vector<16x512xbf16>,
    return
  }
}

module attributes {stable_mosaic.version = 11 : i64} {
  func.func @_conv_block_onedot_kernel(%arg0: memref<144x512xbf16, #tpu.memory_space<vmem>>, %arg1: memref<32x144xbf16, #tpu.memory_space<vmem>>, %arg2: memref<32x1xf32, #tpu.memory_space<vmem>>, %arg3: memref<32x128xbf16, #tpu.memory_space<vmem>>) attributes {dimension_semantics = [], scalar_prefetch = 0 : i64, scratch_operands = 0 : i64, tpu.core_type = #tpu.core_type<tc>} {
    %c0 = arith.constant 0 : index
    %c0_0 = arith.constant 0 : index
    %0 = vector.load %arg1[%c0, %c0_0] : memref<32x144xbf16, #tpu.memory_space<vmem>>, vector<32x144xbf16>
    %c0_1 = arith.constant 0 : index
    %c0_2 = arith.constant 0 : index
    %1 = vector.load %arg0[%c0_1, %c0_2] : memref<144x512xbf16, #tpu.memory_space<vmem>>, vector<144x512xbf16>
    %cst = arith.constant dense<0.000000e+00> : vector<32x512xf32>
    %2 = tpu.matmul %0, %1, %cst {dimension_numbers = #tpu.dot_dimension_numbers<[1], [0], [0], [1], [0, 0, 1, 1], [], []>} : vector<32x144xbf16>, vector<144x512xbf16>, vector<32x512xf32> -> vector<32x512xf32>
    %3 = vector.extract_strided_slice %2 {offsets = [0, 0], sizes = [32, 128], strides = [1, 1]} : vector<32x512xf32> to vector<32x128xf32>
    %4 = vector.extract_strided_slice %2 {offsets = [0, 128], sizes = [32, 128], strides = [1, 1]} : vector<32x512xf32> to vector<32x128xf32>
    %5 = arith.maximumf %3, %4 : vector<32x128xf32>
    %6 = vector.extract_strided_slice %2 {offsets = [0, 256], sizes = [32, 128], strides = [1, 1]} : vector<32x512xf32> to vector<32x128xf32>
    %7 = arith.maximumf %5, %6 : vector<32x128xf32>
    %8 = vector.extract_strided_slice %2 {offsets = [0, 384], sizes = [32, 128], strides = [1, 1]} : vector<32x512xf32> to vector<32x128xf32>
    %9 = arith.maximumf %7, %8 : vector<32x128xf32>
    %c0_3 = arith.constant 0 : index
    %c0_4 = arith.constant 0 : index
    %10 = vector.load %arg2[%c0_3, %c0_4] : memref<32x1xf32, #tpu.memory_space<vmem>>, vector<32x1xf32>
    %11 = vector.broadcast %10 : vector<32x1xf32> to vector<32x128xf32>
    %12 = arith.addf %9, %11 : vector<32x128xf32>
    %cst_5 = arith.constant 0.000000e+00 : f32
    %13 = vector.broadcast %cst_5 : f32 to vector<32x128xf32>
    %14 = arith.maximumf %12, %13 : vector<32x128xf32>
    %15 = arith.truncf %14 : vector<32x128xf32> to vector<32x128xbf16>
    %c0_6 = arith.constant 0 : index
    %c0_7 = arith.constant 0 : index
    %16 = vector.load %arg3[%c0_6, %c0_7] : memref<32x128xbf16, #tpu.memory_space<vmem>>, vector<32x128xbf16>
    tpu.vector_store %arg3[%c0_6, %c0_7], %15 {strides = array<i32>} : memref<32x128xbf16, #tpu.memory_space<vmem>>, vector<32x128xbf16>,
    return
  }
}

module attributes {stable_mosaic.version = 11 : i64} {
  func.func @_conv_block_onedot_kernel(%arg0: memref<288x128xbf16, #tpu.memory_space<vmem>>, %arg1: memref<48x288xbf16, #tpu.memory_space<vmem>>, %arg2: memref<48x1xf32, #tpu.memory_space<vmem>>, %arg3: memref<48x128xbf16, #tpu.memory_space<vmem>>) attributes {dimension_semantics = [], scalar_prefetch = 0 : i64, scratch_operands = 0 : i64, tpu.core_type = #tpu.core_type<tc>} {
    %c0 = arith.constant 0 : index
    %c0_0 = arith.constant 0 : index
    %0 = vector.load %arg1[%c0, %c0_0] : memref<48x288xbf16, #tpu.memory_space<vmem>>, vector<48x288xbf16>
    %c0_1 = arith.constant 0 : index
    %c0_2 = arith.constant 0 : index
    %1 = vector.load %arg0[%c0_1, %c0_2] : memref<288x128xbf16, #tpu.memory_space<vmem>>, vector<288x128xbf16>
    %cst = arith.constant dense<0.000000e+00> : vector<48x128xf32>
    %2 = tpu.matmul %0, %1, %cst {dimension_numbers = #tpu.dot_dimension_numbers<[1], [0], [0], [1], [0, 0, 1, 1], [], []>} : vector<48x288xbf16>, vector<288x128xbf16>, vector<48x128xf32> -> vector<48x128xf32>
    %c0_3 = arith.constant 0 : index
    %c0_4 = arith.constant 0 : index
    %3 = vector.load %arg2[%c0_3, %c0_4] : memref<48x1xf32, #tpu.memory_space<vmem>>, vector<48x1xf32>
    %4 = vector.broadcast %3 : vector<48x1xf32> to vector<48x128xf32>
    %5 = arith.addf %2, %4 : vector<48x128xf32>
    %cst_5 = arith.constant 0.000000e+00 : f32
    %6 = vector.broadcast %cst_5 : f32 to vector<48x128xf32>
    %7 = arith.maximumf %5, %6 : vector<48x128xf32>
    %8 = arith.truncf %7 : vector<48x128xf32> to vector<48x128xbf16>
    %c0_6 = arith.constant 0 : index
    %c0_7 = arith.constant 0 : index
    %9 = vector.load %arg3[%c0_6, %c0_7] : memref<48x128xbf16, #tpu.memory_space<vmem>>, vector<48x128xbf16>
    tpu.vector_store %arg3[%c0_6, %c0_7], %8 {strides = array<i32>} : memref<48x128xbf16, #tpu.memory_space<vmem>>, vector<48x128xbf16>,
    return
  }
}

module attributes {stable_mosaic.version = 11 : i64} {
  func.func @_conv_block_onedot_kernel(%arg0: memref<432x128xbf16, #tpu.memory_space<vmem>>, %arg1: memref<48x432xbf16, #tpu.memory_space<vmem>>, %arg2: memref<48x1xf32, #tpu.memory_space<vmem>>, %arg3: memref<48x128xbf16, #tpu.memory_space<vmem>>) attributes {dimension_semantics = [], scalar_prefetch = 0 : i64, scratch_operands = 0 : i64, tpu.core_type = #tpu.core_type<tc>} {
    %c0 = arith.constant 0 : index
    %c0_0 = arith.constant 0 : index
    %0 = vector.load %arg1[%c0, %c0_0] : memref<48x432xbf16, #tpu.memory_space<vmem>>, vector<48x432xbf16>
    %c0_1 = arith.constant 0 : index
    %c0_2 = arith.constant 0 : index
    %1 = vector.load %arg0[%c0_1, %c0_2] : memref<432x128xbf16, #tpu.memory_space<vmem>>, vector<432x128xbf16>
    %cst = arith.constant dense<0.000000e+00> : vector<48x128xf32>
    %2 = tpu.matmul %0, %1, %cst {dimension_numbers = #tpu.dot_dimension_numbers<[1], [0], [0], [1], [0, 0, 1, 1], [], []>} : vector<48x432xbf16>, vector<432x128xbf16>, vector<48x128xf32> -> vector<48x128xf32>
    %c0_3 = arith.constant 0 : index
    %c0_4 = arith.constant 0 : index
    %3 = vector.load %arg2[%c0_3, %c0_4] : memref<48x1xf32, #tpu.memory_space<vmem>>, vector<48x1xf32>
    %4 = vector.broadcast %3 : vector<48x1xf32> to vector<48x128xf32>
    %5 = arith.addf %2, %4 : vector<48x128xf32>
    %cst_5 = arith.constant 0.000000e+00 : f32
    %6 = vector.broadcast %cst_5 : f32 to vector<48x128xf32>
    %7 = arith.maximumf %5, %6 : vector<48x128xf32>
    %8 = arith.truncf %7 : vector<48x128xf32> to vector<48x128xbf16>
    %c0_6 = arith.constant 0 : index
    %c0_7 = arith.constant 0 : index
    %9 = vector.load %arg3[%c0_6, %c0_7] : memref<48x128xbf16, #tpu.memory_space<vmem>>, vector<48x128xbf16>
    tpu.vector_store %arg3[%c0_6, %c0_7], %8 {strides = array<i32>} : memref<48x128xbf16, #tpu.memory_space<vmem>>, vector<48x128xbf16>,
    return
  }
}

module attributes {stable_mosaic.version = 11 : i64} {
  func.func @_conv_block_multidot_kernel(%arg0: memref<4x432x32xbf16, #tpu.memory_space<vmem>>, %arg1: memref<32x432xbf16, #tpu.memory_space<vmem>>, %arg2: memref<32x1xf32, #tpu.memory_space<vmem>>, %arg3: memref<32x32xbf16, #tpu.memory_space<vmem>>) attributes {dimension_semantics = [], scalar_prefetch = 0 : i64, scratch_operands = 0 : i64, tpu.core_type = #tpu.core_type<tc>} {
    %c0 = arith.constant 0 : index
    %c0_0 = arith.constant 0 : index
    %0 = vector.load %arg1[%c0, %c0_0] : memref<32x432xbf16, #tpu.memory_space<vmem>>, vector<32x432xbf16>
    %c0_1 = arith.constant 0 : index
    %c0_2 = arith.constant 0 : index
    %c0_3 = arith.constant 0 : index
    %1 = vector.load %arg0[%c0_1, %c0_2, %c0_3] : memref<4x432x32xbf16, #tpu.memory_space<vmem>>, vector<1x432x32xbf16>
    %2 = vector.shape_cast %1 : vector<1x432x32xbf16> to vector<432x32xbf16>
    %cst = arith.constant dense<0.000000e+00> : vector<32x32xf32>
    %3 = tpu.matmul %0, %2, %cst {dimension_numbers = #tpu.dot_dimension_numbers<[1], [0], [0], [1], [0, 0, 1, 1], [], []>} : vector<32x432xbf16>, vector<432x32xbf16>, vector<32x32xf32> -> vector<32x32xf32>
    %c1 = arith.constant 1 : index
    %c0_4 = arith.constant 0 : index
    %c0_5 = arith.constant 0 : index
    %4 = vector.load %arg0[%c1, %c0_4, %c0_5] : memref<4x432x32xbf16, #tpu.memory_space<vmem>>, vector<1x432x32xbf16>
    %5 = vector.shape_cast %4 : vector<1x432x32xbf16> to vector<432x32xbf16>
    %cst_6 = arith.constant dense<0.000000e+00> : vector<32x32xf32>
    %6 = tpu.matmul %0, %5, %cst_6 {dimension_numbers = #tpu.dot_dimension_numbers<[1], [0], [0], [1], [0, 0, 1, 1], [], []>} : vector<32x432xbf16>, vector<432x32xbf16>, vector<32x32xf32> -> vector<32x32xf32>
    %7 = arith.maximumf %3, %6 : vector<32x32xf32>
    %c2 = arith.constant 2 : index
    %c0_7 = arith.constant 0 : index
    %c0_8 = arith.constant 0 : index
    %8 = vector.load %arg0[%c2, %c0_7, %c0_8] : memref<4x432x32xbf16, #tpu.memory_space<vmem>>, vector<1x432x32xbf16>
    %9 = vector.shape_cast %8 : vector<1x432x32xbf16> to vector<432x32xbf16>
    %cst_9 = arith.constant dense<0.000000e+00> : vector<32x32xf32>
    %10 = tpu.matmul %0, %9, %cst_9 {dimension_numbers = #tpu.dot_dimension_numbers<[1], [0], [0], [1], [0, 0, 1, 1], [], []>} : vector<32x432xbf16>, vector<432x32xbf16>, vector<32x32xf32> -> vector<32x32xf32>
    %11 = arith.maximumf %7, %10 : vector<32x32xf32>
    %c3 = arith.constant 3 : index
    %c0_10 = arith.constant 0 : index
    %c0_11 = arith.constant 0 : index
    %12 = vector.load %arg0[%c3, %c0_10, %c0_11] : memref<4x432x32xbf16, #tpu.memory_space<vmem>>, vector<1x432x32xbf16>
    %13 = vector.shape_cast %12 : vector<1x432x32xbf16> to vector<432x32xbf16>
    %cst_12 = arith.constant dense<0.000000e+00> : vector<32x32xf32>
    %14 = tpu.matmul %0, %13, %cst_12 {dimension_numbers = #tpu.dot_dimension_numbers<[1], [0], [0], [1], [0, 0, 1, 1], [], []>} : vector<32x432xbf16>, vector<432x32xbf16>, vector<32x32xf32> -> vector<32x32xf32>
    %15 = arith.maximumf %11, %14 : vector<32x32xf32>
    %c0_13 = arith.constant 0 : index
    %c0_14 = arith.constant 0 : index
    %16 = vector.load %arg2[%c0_13, %c0_14] : memref<32x1xf32, #tpu.memory_space<vmem>>, vector<32x1xf32>
    %17 = vector.broadcast %16 : vector<32x1xf32> to vector<32x32xf32>
    %18 = arith.addf %15, %17 : vector<32x32xf32>
    %cst_15 = arith.constant 0.000000e+00 : f32
    %19 = vector.broadcast %cst_15 : f32 to vector<32x32xf32>
    %20 = arith.maximumf %18, %19 : vector<32x32xf32>
    %21 = arith.truncf %20 : vector<32x32xf32> to vector<32x32xbf16>
    %c0_16 = arith.constant 0 : index
    %c0_17 = arith.constant 0 : index
    %22 = vector.load %arg3[%c0_16, %c0_17] : memref<32x32xbf16, #tpu.memory_space<vmem>>, vector<32x32xbf16>
    tpu.vector_store %arg3[%c0_16, %c0_17], %21 {strides = array<i32>} : memref<32x32xbf16, #tpu.memory_space<vmem>>, vector<32x32xbf16>,
    return
  }
}

module attributes {stable_mosaic.version = 11 : i64} {
  func.func @_linear_kernel(%arg0: memref<2x512xbf16, #tpu.memory_space<vmem>>, %arg1: memref<10x512xbf16, #tpu.memory_space<vmem>>, %arg2: memref<1x10xf32, #tpu.memory_space<vmem>>, %arg3: memref<2x10xf32, #tpu.memory_space<vmem>>) attributes {dimension_semantics = [], scalar_prefetch = 0 : i64, scratch_operands = 0 : i64, tpu.core_type = #tpu.core_type<tc>} {
    %c0 = arith.constant 0 : index
    %c0_0 = arith.constant 0 : index
    %0 = vector.load %arg0[%c0, %c0_0] : memref<2x512xbf16, #tpu.memory_space<vmem>>, vector<2x512xbf16>
    %c0_1 = arith.constant 0 : index
    %c0_2 = arith.constant 0 : index
    %1 = vector.load %arg1[%c0_1, %c0_2] : memref<10x512xbf16, #tpu.memory_space<vmem>>, vector<10x512xbf16>
    %cst = arith.constant dense<0.000000e+00> : vector<2x10xf32>
    %2 = tpu.matmul %0, %1, %cst {dimension_numbers = #tpu.dot_dimension_numbers<[1], [1], [0], [0], [0, 0, 1, 0], [], []>} : vector<2x512xbf16>, vector<10x512xbf16>, vector<2x10xf32> -> vector<2x10xf32>
    %c0_3 = arith.constant 0 : index
    %c0_4 = arith.constant 0 : index
    %3 = vector.load %arg2[%c0_3, %c0_4] : memref<1x10xf32, #tpu.memory_space<vmem>>, vector<1x10xf32>
    %4 = vector.broadcast %3 : vector<1x10xf32> to vector<2x10xf32>
    %5 = arith.addf %2, %4 : vector<2x10xf32>
    %c0_5 = arith.constant 0 : index
    %c0_6 = arith.constant 0 : index
    %6 = vector.load %arg3[%c0_5, %c0_6] : memref<2x10xf32, #tpu.memory_space<vmem>>, vector<2x10xf32>
    tpu.vector_store %arg3[%c0_5, %c0_6], %5 {strides = array<i32>} : memref<2x10xf32, #tpu.memory_space<vmem>>, vector<2x10xf32>,
    return
  }
}

</mosaic_0001>

<bundles_post_ra>
// kernel: forward.13
= control target key start
LH: loop header
LB: loop body
LE: loop exit
PB: predicated region body
PF: predicated region fallthrough
CT: control target
= control target key end

     0   :  { %s4657_s0 = inlined_call_operand.vmem [shape: bf16[16,27], index: 0, kind: input, shape index: {}]   ;;  %s4658_s1 = inlined_call_operand.vmem [shape: f32[16,1], index: 1, kind: input, shape index: {}]   ;;  %s4659_s2 = inlined_call_operand.vmem [shape: bf16[27,512], index: 2, kind: input, shape index: {}]   ;;  %s4660_s3 = inlined_call_operand.<no memory space> [shape: bf16[], index: 3, kind: input, shape index: {}]   ;;  %s4661_s4 = inlined_call_operand.vmem [shape: bf16[27,512], index: 4, kind: input, shape index: {}]   ;;  %s4662_s5 = inlined_call_operand.vmem [shape: bf16[27,512], index: 5, kind: input, shape index: {}]   ;;  %s4663_s6 = inlined_call_operand.vmem [shape: bf16[27,512], index: 6, kind: input, shape index: {}]   ;;  %s4664_s7 = inlined_call_operand.vmem [shape: bf16[16,512], index: 7, kind: output, shape index: {}]  }
   0x1   :  { %v12_v0 = vstv %s4660_s3 }
   0x2   :  { %v4251_v1 = vunpack.i.l.bf16 %v12_v0 }
   0x3   :  { %v3990_v2 = vld [vmem:[%s4663_s6 + $0x20] sm:$0xff]   ;;  %v4006_v3 = vld [vmem:[%s4663_s6 + $0x30] sm:$0xff]   ;;  %v2533_v4 = vlaneseq  ;;  %vm3484_vm0 = vcmask 1044480   ;;  %v3992_v5 = vld [vmem:[%s4663_s6 + $0x28] sm:$0xff]   ;;  %v4206_v12 = vmov 65535   ;;  %vm3485_vm2 = vcmask 1045504  }
   0x4   :  { %v1719_v6 = vunpack.c.l.bf16 %v3990_v2  ;;  %v2531_v7 = vunpack.c.l.bf16 %v4006_v3  ;;  %v1790_v8 = vunpack.c.h.bf16 %v3990_v2  ;;  %v4008_v9 = vld [vmem:[%s4663_s6 + $0x38] sm:$0xff]   ;;  %v95_v10 = vld [vmem:[%s4663_s6] sm:$0xff]   ;;  %v4268_v13 = vsel %vm3484_vm0, 4294967295, %v4206_v12  ;;  %v4273_v16 = vld [vmem:[%s4663_s6 + $0x10] sm:$0xff]  }
   0x5   :  { %v2534_v11 = vshrl.u32 %v2533_v4, 7  ;;  %v2602_v14 = vunpack.c.h.bf16 %v4006_v3  ;;  %v1861_v15 = vunpack.c.l.bf16 %v3992_v5  ;;  %v2673_v19 = vunpack.c.l.bf16 %v4008_v9  ;;  %v3957_v60 = vld [vmem:[%s4663_s6 + $0x8] sm:$0xff]   ;;  %v3976_v61 = vld [vmem:[%s4663_s6 + $0x18] sm:$0xff]  }
   0x6   :  { %v1728_v17 = vmax.f32 %v1719_v6, %v4251_v1  ;;  %v1799_v18 = vmax.f32 %v1790_v8, %v4251_v1  ;;  %v1932_v20 = vunpack.c.h.bf16 %v3992_v5  ;;  %v2744_v23 = vunpack.c.h.bf16 %v4008_v9 }
   0x7   :  { %v4277_v21 = vadd.s32 24, %v2534_v11  ;;  %v1870_v22 = vmax.f32 %v1861_v15, %v4251_v1  ;;  %v96_v24 = vunpack.c.l.bf16 %v95_v10  ;;  %v907_v28 = vunpack.c.l.bf16 %v4273_v16 }
   0x8   :  { %v1732_v25 = vmax.f32 %v1728_v17, %v4251_v1  ;;  %v1803_v26 = vmax.f32 %v1799_v18, %v4251_v1  ;;  %v1941_v27 = vmax.f32 %v1932_v20, %v4251_v1  ;;  %v166_v31 = vunpack.c.h.bf16 %v95_v10  ;;  %v3996_v17 = vld [vmem:[%s4662_s5 + $0x28] sm:$0xff]  }
   0x9   :  { %vm2536_vm1 = vcmp.lt.s32.totalorder %v4277_v21, 27  ;;  %v1874_v29 = vmax.f32 %v1870_v22, %v4251_v1  ;;  %v105_v30 = vmax.f32 %v96_v24, %v4251_v1  ;;  %v916_v54 = vmax.f32 %v907_v28, %v4251_v1  ;;  %v3986_v21 = vld [vmem:[%s4659_s2 + $0x10] sm:$0xff]  }
   0xa   :  { %v1736_v32 = vmax.f32 %v1732_v25, %v4251_v1  ;;  %v2537_v33 = vsel %vm2536_vm1, %v2531_v7, %v4251_v1  ;;  %v1807_v34 = vmax.f32 %v1803_v26, %v4251_v1  ;;  %v2608_v35 = vsel %vm2536_vm1, %v2602_v14, %v4251_v1 }
   0xb   :  { %v2540_v36 = vmax.f32 %v2537_v33, %v4251_v1  ;;  %v2611_v37 = vmax.f32 %v2608_v35, %v4251_v1  ;;  %v1878_v38 = vmax.f32 %v1874_v29, %v4251_v1  ;;  %v2679_v39 = vsel %vm2536_vm1, %v2673_v19, %v4251_v1 }
   0xc   :  { %v1739_v40 = vpack.c.bf16 0.0, %v1736_v32  ;;  %v1810_v41 = vpack.c.bf16 0.0, %v1807_v34  ;;  %v2682_v42 = vmax.f32 %v2679_v39, %v4251_v1  ;;  %v1945_v43 = vmax.f32 %v1941_v27, %v4251_v1 }
   0xd   :  { %v2544_v44 = vmax.f32 %v2540_v36, %v4251_v1  ;;  %v2615_v45 = vmax.f32 %v2611_v37, %v4251_v1  ;;  %v1881_v46 = vpack.c.bf16 0.0, %v1878_v38  ;;  %v2750_v47 = vsel %vm2536_vm1, %v2744_v23, %v4251_v1 }
   0xe   :  { %1742 = vst [vmem:[#allocation22 + $0x80] sm:$0xf] %v1739_v40  ;;  %v2686_v48 = vmax.f32 %v2682_v42, %v4251_v1  ;;  %v1949_v49 = vmax.f32 %v1945_v43, %v4251_v1  ;;  %v2753_v50 = vmax.f32 %v2750_v47, %v4251_v1  ;;  %v109_v51 = vmax.f32 %v105_v30, %v4251_v1 }
   0xf   :  { %v2548_v52 = vmax.f32 %v2544_v44, %v4251_v1  ;;  %1813 = vst [vmem:[#allocation22 + $0x84] sm:$0xf] %v1810_v41  ;;  %v2619_v53 = vmax.f32 %v2615_v45, %v4251_v1  ;;  %v175_v55 = vmax.f32 %v166_v31, %v4251_v1  ;;  %v920_v0 = vmax.f32 %v916_v54, %v4251_v1 }
  0x10   :  { %1884 = vst [vmem:[#allocation22 + $0x88] sm:$0xf] %v1881_v46  ;;  %v2690_v56 = vmax.f32 %v2686_v48, %v4251_v1  ;;  %v1952_v57 = vpack.c.bf16 0.0, %v1949_v49  ;;  %v2757_v58 = vmax.f32 %v2753_v50, %v4251_v1  ;;  %v113_v59 = vmax.f32 %v109_v51, %v4251_v1  ;;  %v4367_v46 = vld [vmem:[%s4662_s5 + $0x20] sm:$0xff]  }
  0x11   :  { %v2551_v62 = vpack.c.bf16 0.0, %v2548_v52  ;;  %v2622_v63 = vpack.c.bf16 0.0, %v2619_v53  ;;  %v179_v2 = vmax.f32 %v175_v55, %v4251_v1  ;;  %v978_v6 = vunpack.c.h.bf16 %v4273_v16  ;;  %v4338_v16 = vld [vmem:[%s4662_s5 + $0x38] sm:$0xff]  }
  0x12   :  { %v2693_v3 = vpack.c.bf16 0.0, %v2690_v56  ;;  %1955 = vst [vmem:[#allocation22 + $0x8c] sm:$0xf] %v1952_v57  ;;  %v2761_v4 = vmax.f32 %v2757_v58, %v4251_v1  ;;  %v115_v5 = vpack.c.bf16 0.0, %v113_v59  ;;  %v924_v7 = vmax.f32 %v920_v0, %v4251_v1 }
  0x13   :  { %2554 = vst [vmem:[#allocation22 + $0xc0] sm:$0xf] %v2551_v62  ;;  %v183_v8 = vmax.f32 %v179_v2, %v4251_v1  ;;  %v237_v9 = vunpack.c.l.bf16 %v3957_v60  ;;  %v1049_v10 = vunpack.c.l.bf16 %v3976_v61  ;;  %v987_v12 = vmax.f32 %v978_v6, %v4251_v1  ;;  %v4383_v6 = vld [vmem:[%s4662_s5 + $0x8] sm:$0xff]  }
  0x14   :  { %2625 = vst [vmem:[#allocation22 + $0xc4] sm:$0xf] %v2622_v63  ;;  %v2764_v11 = vpack.c.bf16 0.0, %v2761_v4  ;;  %v308_v14 = vunpack.c.h.bf16 %v3957_v60  ;;  %v1120_v15 = vunpack.c.h.bf16 %v3976_v61  ;;  %v927_v18 = vpack.c.bf16 0.0, %v924_v7 }
  0x15   :  { %2696 = vst [vmem:[#allocation22 + $0xc8] sm:$0xf] %v2693_v3  ;;  %v186_v19 = vpack.c.bf16 0.0, %v183_v8  ;;  %v246_v20 = vmax.f32 %v237_v9, %v4251_v1  ;;  %v1058_v22 = vmax.f32 %v1049_v10, %v4251_v1  ;;  %v4344_v23 = vsel %vm3485_vm2, %v4268_v13, 0  ;;  %v4092_v31 = vld [vmem:[#allocation22 + $0x80] sm:$0xf] }
  0x16   :  { %2767 = vst [vmem:[#allocation22 + $0xcc] sm:$0xf] %v2764_v11  ;;  %v991_v24 = vmax.f32 %v987_v12, %v4251_v1  ;;  %v317_v25 = vmax.f32 %v308_v14, %v4251_v1  ;;  %v1129_v26 = vmax.f32 %v1120_v15, %v4251_v1  ;;  %v2109_v29 = vunpack.c.l.bf16 %v3996_v17  ;;  %v4187_v35 = vld [vmem:[#allocation22 + $0x84] sm:$0xf]  ;;  %v4391_v12 = vld [vmem:[%s4662_s5 + $0x18] sm:$0xff]  }
  0x17   :  { %118 = vst [vmem:[#allocation22] sm:$0xf] %v115_v5  ;;  %v250_v27 = vmax.f32 %v246_v20, %v4251_v1  ;;  %v1062_v28 = vmax.f32 %v1058_v22, %v4251_v1  ;;  %v2921_v30 = vunpack.c.l.bf16 %v4338_v16  ;;  %v2168_v34 = vunpack.c.h.bf16 %v3996_v17  ;;  %v4100_v41 = vld [vmem:[#allocation22 + $0x88] sm:$0xf]  ;;  %v4010_v5 = vld [vmem:[%s4662_s5 + $0x30] sm:$0xff]  }
  0x18   :  { %930 = vst [vmem:[#allocation22 + $0x40] sm:$0xf] %v927_v18  ;;  %v995_v13 = vmax.f32 %v991_v24, %v4251_v1  ;;  %v321_v32 = vmax.f32 %v317_v25, %v4251_v1  ;;  %v1133_v33 = vmax.f32 %v1129_v26, %v4251_v1  ;;  %v2118_v38 = vmax.f32 %v4251_v1, %v2109_v29  ;;  %v4403_v25 = vld [vmem:[%s4657_s0] sm:$0xff] }
  0x19   :  { %189 = vst [vmem:[#allocation22 + $0x4] sm:$0xf] %v186_v19  ;;  %v254_v36 = vmax.f32 %v250_v27, %v4251_v1  ;;  %v1066_v37 = vmax.f32 %v1062_v28, %v4251_v1  ;;  %v2927_v39 = vsel %vm2536_vm1, %v2921_v30, %v4251_v1  ;;  %v4188_v49 = vld [vmem:[#allocation22 + $0x8c] sm:$0xf]  ;;  %vm3480_vm3 = vcmask 220160  }
  0x1a   :  { %v4195_v40 = vld [vmem:[#allocation22 + $0xbc] sm:$0x30]  ;;  %v998_v42 = vpack.c.bf16 0.0, %v995_v13  ;;  %v325_v43 = vmax.f32 %v321_v32, %v4251_v1  ;;  %v1137_v44 = vmax.f32 %v1133_v33, %v4251_v1  ;;  %v2930_v45 = vmax.f32 %v4251_v1, %v2927_v39 }
  0x1b   :  { %v4093_v47 = vor.u32 %v4195_v40, %v4092_v31  ;;  %v4094_v48 = vld [vmem:[#allocation22 + $0xc0] sm:$0x30]  ;;  %v257_v50 = vpack.c.bf16 0.0, %v254_v36  ;;  %v1069_v51 = vpack.c.bf16 0.0, %v1066_v37  ;;  %v2122_v52 = vmax.f32 %v2118_v38, %v4251_v1 }
  0x1c   :  { %v4097_v53 = vor.u32 %v4187_v35, %v4094_v48  ;;  %v4196_v54 = vld [vmem:[#allocation22 + $0xc4] sm:$0x30]  ;;  %1001 = vst [vmem:[#allocation22 + $0x44] sm:$0xf] %v998_v42  ;;  %v328_v55 = vpack.c.bf16 0.0, %v325_v43  ;;  %v1140_v56 = vpack.c.bf16 0.0, %v1137_v44  ;;  %v2934_v57 = vmax.f32 %v2930_v45, %v4251_v1 }
  0x1d   :  { %v3489_v58 = vand.u32 %v4093_v47, %v4344_v23  ;;  %v4101_v59 = vor.u32 %v4196_v54, %v4100_v41  ;;  %v4102_v60 = vld [vmem:[#allocation22 + $0xc8] sm:$0x30]  ;;  %260 = vst [vmem:[#allocation22 + $0x8] sm:$0xf] %v257_v50  ;;  %v2126_v61 = vmax.f32 %v2122_v52, %v4251_v1  ;;  %v2177_v62 = vmax.f32 %v4251_v1, %v2168_v34 }
  0x1e   :  { %v3492_v63 = vand.u32 %v4097_v53, %v4344_v23  ;;  %v4105_v0 = vor.u32 %v4188_v49, %v4102_v60  ;;  %v4028_v2 = vld [vmem:[#allocation22] sm:$0xf]  ;;  %1072 = vst [vmem:[#allocation22 + $0x48] sm:$0xf] %v1069_v51  ;;  %v2938_v3 = vmax.f32 %v2934_v57, %v4251_v1  ;;  %v2980_v4 = vunpack.c.h.bf16 %v4338_v16 }
  0x1f   :  { %3542 = vmatpush.bf16.msra.mxu0 %v3489_v58  ;;  %v3495_v7 = vand.u32 %v4101_v59, %v4344_v23  ;;  %v4179_v8 = vld [vmem:[#allocation22 + $0x3c] sm:$0xf0]  ;;  %331 = vst [vmem:[#allocation22 + $0xc] sm:$0xf] %v328_v55  ;;  %v2129_v9 = vpack.c.bf16 0.0, %v2126_v61  ;;  %v2181_v10 = vmax.f32 %v2177_v62, %v4251_v1  ;;  %v1991_v11 = vunpack.c.l.bf16 %v4367_v46 }
  0x20   :  { %3556 = vmatpush.bf16.msra.mxu1 %v3492_v63  ;;  %v3498_v14 = vand.u32 %v4105_v0, %v4344_v23  ;;  %v4029_v15 = vor.u32 %v4179_v8, %v4028_v2  ;;  %1143 = vst [vmem:[#allocation22 + $0x4c] sm:$0xf] %v1140_v56  ;;  %v2941_v17 = vpack.c.bf16 0.0, %v2938_v3  ;;  %v2986_v16 = vsel %vm2536_vm1, %v2980_v4, %v4251_v1  ;;  %v4171_v18 = vld [vmem:[#allocation22 + $0x4] sm:$0xf]  ;;  %v3978_v2 = vld [vmem:[%s4662_s5 + $0x10] sm:$0xff]  }
  0x21   :  { %3570 = vmatpush.bf16.msra.mxu2 %v3495_v7  ;;  %2132 = vst [vmem:[#allocation22 + $0x98] sm:$0xf] %v2129_v9  ;;  %v2185_v19 = vmax.f32 %v2181_v10, %v4251_v1  ;;  %v2989_v20 = vmax.f32 %v4251_v1, %v2986_v16  ;;  %v2000_v22 = vmax.f32 %v4251_v1, %v1991_v11  ;;  %v2803_v24 = vunpack.c.l.bf16 %v4010_v5  ;;  %v3960_v0 = vld [vmem:[%s4662_s5] sm:$0xff]   ;;  %v4452_v11 = vld [vmem:[%s4661_s4 + $0x28] sm:$0xff]  }
  0x22   :  { %3584 = vmatpush.bf16.msra.mxu3 %v3498_v14  ;;  %2944 = vst [vmem:[#allocation22 + $0xd8] sm:$0xf] %v2941_v17  ;;  %v2050_v26 = vunpack.c.h.bf16 %v4367_v46  ;;  %v2862_v27 = vunpack.c.h.bf16 %v4010_v5  ;;  %v485_v28 = vunpack.c.l.bf16 %v4383_v6  ;;  %v1297_v29 = vunpack.c.l.bf16 %v4391_v12 }
  0x23   :  { %3543 = vmatpush.bf16.msra.mxu0 %v4029_v15  ;;  %v4030_v30 = vld [vmem:[#allocation22 + $0x40] sm:$0xf0]  ;;  %v2188_v31 = vpack.c.bf16 0.0, %v2185_v19  ;;  %v2993_v13 = vmax.f32 %v2989_v20, %v4251_v1  ;;  %v2004_v32 = vmax.f32 %v2000_v22, %v4251_v1  ;;  %v2809_v33 = vsel %vm2536_vm1, %v2803_v24, %v4251_v1  ;;  %v4463_v22 = vld [vmem:[%s4661_s4 + $0x38] sm:$0xff]  }
  0x24   :  { %v4033_v34 = vor.u32 %v4171_v18, %v4030_v30  ;;  %v4036_v35 = vld [vmem:[#allocation22 + $0x8] sm:$0xf]  ;;  %v2812_v36 = vmax.f32 %v4251_v1, %v2809_v33  ;;  %v2059_v37 = vmax.f32 %v4251_v1, %v2050_v26  ;;  %v2868_v38 = vsel %vm2536_vm1, %v2862_v27, %v4251_v1 }
  0x25   :  { %v4180_v39 = vld [vmem:[#allocation22 + $0x44] sm:$0xf0]  ;;  %2191 = vst [vmem:[#allocation22 + $0x9c] sm:$0xf] %v2188_v31  ;;  %v2997_v40 = vmax.f32 %v2993_v13, %v4251_v1  ;;  %v2008_v41 = vmax.f32 %v2004_v32, %v4251_v1  ;;  %v2871_v42 = vmax.f32 %v4251_v1, %v2868_v38  ;;  %v494_v43 = vmax.f32 %v4251_v1, %v485_v28 }
  0x26   :  { %3557 = vmatpush.bf16.msra.mxu1 %v4033_v34  ;;  %v4037_v44 = vor.u32 %v4180_v39, %v4036_v35  ;;  %v4172_v45 = vld [vmem:[#allocation22 + $0xc] sm:$0xf]  ;;  %4154 = vmatmul.msk.bf16.vlgmr.msra.gmra.mxu0 %vm3480_vm3, %v4403_v25  ;;  %v2816_v46 = vmax.f32 %v2812_v36, %v4251_v1  ;;  %v2063_v47 = vmax.f32 %v2059_v37, %v4251_v1  ;;  %v544_v48 = vunpack.c.h.bf16 %v4383_v6 }
  0x27   :  { %v4038_v49 = vld [vmem:[#allocation22 + $0x48] sm:$0xf0]  ;;  %v3000_v50 = vpack.c.bf16 0.0, %v2997_v40  ;;  %v2011_v51 = vpack.c.bf16 0.0, %v2008_v41  ;;  %v2875_v52 = vmax.f32 %v2871_v42, %v4251_v1  ;;  %v498_v53 = vmax.f32 %v494_v43, %v4251_v1 }
  0x28   :  { %3571 = vmatpush.bf16.msra.mxu2 %v4037_v44  ;;  %v4041_v54 = vor.u32 %v4172_v45, %v4038_v49  ;;  %v4116_v55 = vld [vmem:[#allocation22 + $0x98] sm:$0xf]  ;;  %v2820_v56 = vmax.f32 %v2816_v46, %v4251_v1  ;;  %v2067_v57 = vmax.f32 %v2063_v47, %v4251_v1  ;;  %v1306_v58 = vmax.f32 %v4251_v1, %v1297_v29 }
  0x29   :  { %4155 = vmatmul.msk.bf16.vlgmr.msra.gmra.mxu1 %vm3480_vm3, %v4403_v25  ;;  %v4198_v59 = vld [vmem:[#allocation22 + $0xd4] sm:$0x30]  ;;  %3003 = vst [vmem:[#allocation22 + $0xdc] sm:$0xf] %v3000_v50  ;;  %v2879_v60 = vmax.f32 %v2875_v52, %v4251_v1  ;;  %v502_v61 = vmax.f32 %v498_v53, %v4251_v1  ;;  %v553_v62 = vmax.f32 %v4251_v1, %v544_v48  ;;  %v1356_v63 = vunpack.c.h.bf16 %v4391_v12  ;;  %v3998_v52 = vld [vmem:[%s4661_s4 + $0x20] sm:$0xff]  }
  0x2a   :  { %3585 = vmatpush.bf16.msra.mxu3 %v4041_v54  ;;  %v4117_v3 = vor.u32 %v4198_v59, %v4116_v55  ;;  %2014 = vst [vmem:[#allocation22 + $0x90] sm:$0xf] %v2011_v51  ;;  %v2823_v4 = vpack.c.bf16 0.0, %v2820_v56  ;;  %v2070_v5 = vpack.c.bf16 0.0, %v2067_v57  ;;  %v1310_v6 = vmax.f32 %v1306_v58, %v4251_v1  ;;  %v4014_v58 = vld [vmem:[%s4661_s4 + $0x30] sm:$0xff]  }
  0x2b   :  { %4156 = vmatmul.msk.bf16.vlgmr.msra.gmra.mxu2 %vm3480_vm3, %v4403_v25  ;;  %v2882_v7 = vpack.c.bf16 0.0, %v2879_v60  ;;  %v505_v8 = vpack.c.bf16 0.0, %v502_v61  ;;  %v557_v9 = vmax.f32 %v553_v62, %v4251_v1  ;;  %v1365_v10 = vmax.f32 %v4251_v1, %v1356_v63 }
  0x2c   :  { %v3507_v12 = vand.u32 %v4117_v3, %v4344_v23  ;;  %2826 = vst [vmem:[#allocation22 + $0xd0] sm:$0xf] %v2823_v4  ;;  %v1314_v14 = vmax.f32 %v1310_v6, %v4251_v1  ;;  %v367_v15 = vunpack.c.l.bf16 %v3960_v0  ;;  %v1179_v17 = vunpack.c.l.bf16 %v3978_v2  ;;  %v4190_v24 = vld [vmem:[#allocation22 + $0x9c] sm:$0xf] }
  0x2d   :  { %4157 = vmatmul.msk.bf16.vlgmr.msra.gmra.mxu3 %vm3480_vm3, %v4403_v25  ;;  %2073 = vst [vmem:[#allocation22 + $0x94] sm:$0xf] %v2070_v5  ;;  %v561_v16 = vmax.f32 %v557_v9, %v4251_v1  ;;  %v1369_v18 = vmax.f32 %v1365_v10, %v4251_v1  ;;  %v426_v19 = vunpack.c.h.bf16 %v3960_v0  ;;  %v1238_v20 = vunpack.c.h.bf16 %v3978_v2 }
  0x2e   :  { %3626 = vmatpush.bf16.msrb.mxu2 %v3507_v12  ;;  %2885 = vst [vmem:[#allocation22 + $0xd4] sm:$0xf] %v2882_v7  ;;  %v1317_v26 = vpack.c.bf16 0.0, %v1314_v14  ;;  %v376_v27 = vmax.f32 %v4251_v1, %v367_v15  ;;  %v1188_v28 = vmax.f32 %v4251_v1, %v1179_v17  ;;  %v2309_v29 = vunpack.c.l.bf16 %v4452_v11 }
  0x2f   :  { %508 = vst [vmem:[#allocation22 + $0x18] sm:$0xf] %v505_v8  ;;  %v564_v30 = vpack.c.bf16 0.0, %v561_v16  ;;  %v1373_v31 = vmax.f32 %v1369_v18, %v4251_v1  ;;  %v435_v13 = vmax.f32 %v4251_v1, %v426_v19  ;;  %v1247_v32 = vmax.f32 %v4251_v1, %v1238_v20 }
  0x30   :  { %v4118_v33 = vld [vmem:[#allocation22 + $0xd8] sm:$0x30]  ;;  %1320 = vst [vmem:[#allocation22 + $0x58] sm:$0xf] %v1317_v26  ;;  %v380_v34 = vmax.f32 %v376_v27, %v4251_v1  ;;  %v1192_v35 = vmax.f32 %v1188_v28, %v4251_v1  ;;  %v2322_v36 = vmax.f32 %v4251_v1, %v2309_v29  ;;  %v3121_v37 = vunpack.c.l.bf16 %v4463_v22 }
  0x31   :  { %v4121_v38 = vor.u32 %v4190_v24, %v4118_v33  ;;  %v4108_v39 = vld [vmem:[#allocation22 + $0x90] sm:$0xf]  ;;  %567 = vst [vmem:[#allocation22 + $0x1c] sm:$0xf] %v564_v30  ;;  %v1376_v40 = vpack.c.bf16 0.0, %v1373_v31  ;;  %v439_v41 = vmax.f32 %v435_v13, %v4251_v1  ;;  %v1251_v42 = vmax.f32 %v1247_v32, %v4251_v1  ;;  %v3984_v29 = vld [vmem:[%s4661_s4 + $0x18] sm:$0xff]  }
  0x32   :  { %v384_v43 = vmax.f32 %v380_v34, %v4251_v1  ;;  %v1196_v44 = vmax.f32 %v1192_v35, %v4251_v1  ;;  %v2326_v45 = vmax.f32 %v2322_v36, %v4251_v1  ;;  %v3127_v46 = vsel %vm2536_vm1, %v3121_v37, %v4251_v1  ;;  %v3965_v37 = vld [vmem:[%s4661_s4] sm:$0xff]  }
  0x33   :  { %v3510_v47 = vand.u32 %v4121_v38, %v4344_v23  ;;  %v4197_v48 = vld [vmem:[#allocation22 + $0xcc] sm:$0x30]  ;;  %1379 = vst [vmem:[#allocation22 + $0x5c] sm:$0xf] %v1376_v40  ;;  %v443_v49 = vmax.f32 %v439_v41, %v4251_v1  ;;  %v1255_v50 = vmax.f32 %v1251_v42, %v4251_v1  ;;  %v3134_v51 = vmax.f32 %v4251_v1, %v3127_v46 }
  0x34   :  { %v4109_v53 = vor.u32 %v4197_v48, %v4108_v39  ;;  %v4189_v54 = vld [vmem:[#allocation22 + $0x94] sm:$0xf]  ;;  %v387_v55 = vpack.c.bf16 0.0, %v384_v43  ;;  %v1199_v56 = vpack.c.bf16 0.0, %v1196_v44  ;;  %v2329_v57 = vpack.c.bf16 0.0, %v2326_v45 }
  0x35   :  { %3640 = vmatpush.bf16.msrb.mxu3 %v3510_v47  ;;  %v4110_v59 = vld [vmem:[#allocation22 + $0xd0] sm:$0x30]  ;;  %v446_v60 = vpack.c.bf16 0.0, %v443_v49  ;;  %v1258_v61 = vpack.c.bf16 0.0, %v1255_v50  ;;  %v3138_v62 = vmax.f32 %v3134_v51, %v4251_v1  ;;  %v2356_v63 = vunpack.c.h.bf16 %v4452_v11 }
  0x36   :  { %v3501_v0 = vand.u32 %v4109_v53, %v4344_v23  ;;  %v4113_v2 = vor.u32 %v4189_v54, %v4110_v59  ;;  %v4052_v3 = vld [vmem:[#allocation22 + $0x18] sm:$0xf]  ;;  %390 = vst [vmem:[#allocation22 + $0x10] sm:$0xf] %v387_v55  ;;  %v3168_v4 = vunpack.c.h.bf16 %v4463_v22  ;;  %v2215_v5 = vunpack.c.l.bf16 %v3998_v52  ;;  %v3967_v22 = vld [vmem:[%s4661_s4 + $0x8] sm:$0xff]   ;;  %v4530_v38 = vld [vmem:[%s4661_s4 + $0x10] sm:$0xff]  }
  0x37   :  { %v4182_v6 = vld [vmem:[#allocation22 + $0x54] sm:$0xf0]  ;;  %1202 = vst [vmem:[#allocation22 + $0x50] sm:$0xf] %v1199_v56  ;;  %v3141_v7 = vpack.c.bf16 0.0, %v3138_v62  ;;  %v2369_v8 = vmax.f32 %v4251_v1, %v2356_v63  ;;  %v3027_v9 = vunpack.c.l.bf16 %v4014_v58  ;;  %v2262_v10 = vunpack.c.h.bf16 %v3998_v52 }
  0x38   :  { %3598 = vmatpush.bf16.msrb.mxu0 %v3501_v0  ;;  %v3504_v12 = vand.u32 %v4113_v2, %v4344_v23  ;;  %v4053_v14 = vor.u32 %v4182_v6, %v4052_v3  ;;  %v4174_v11 = vld [vmem:[#allocation22 + $0x1c] sm:$0xf]  ;;  %449 = vst [vmem:[#allocation22 + $0x14] sm:$0xf] %v446_v60  ;;  %v3174_v15 = vsel %vm2536_vm1, %v3168_v4, %v4251_v1  ;;  %v3074_v17 = vunpack.c.h.bf16 %v4014_v58 }
  0x39   :  { %1261 = vst [vmem:[#allocation22 + $0x54] sm:$0xf] %v1258_v61  ;;  %v2373_v16 = vmax.f32 %v2369_v8, %v4251_v1  ;;  %v3181_v18 = vmax.f32 %v4251_v1, %v3174_v15  ;;  %v2228_v19 = vmax.f32 %v4251_v1, %v2215_v5  ;;  %v3033_v20 = vsel %vm2536_vm1, %v3027_v9, %v4251_v1  ;;  %v4020_v0 = vld [vmem:[%s4659_s2 + $0x38] sm:$0xff]  }
  0x3a   :  { %3612 = vmatpush.bf16.msrb.mxu1 %v3504_v12  ;;  %3627 = vmatpush.bf16.msrb.mxu2 %v4053_v14  ;;  %v4054_v24 = vld [vmem:[#allocation22 + $0x58] sm:$0xf0]  ;;  %2332 = vst [vmem:[#allocation22 + $0xa8] sm:$0xf] %v2329_v57  ;;  %v3040_v26 = vmax.f32 %v4251_v1, %v3033_v20  ;;  %v2275_v27 = vmax.f32 %v4251_v1, %v2262_v10  ;;  %v685_v36 = vunpack.c.l.bf16 %v3967_v22  ;;  %v1497_v42 = vunpack.c.l.bf16 %v3984_v29 }
  0x3b   :  { %v3080_v28 = vsel %vm2536_vm1, %v3074_v17, %v4251_v1  ;;  %v4057_v30 = vor.u32 %v4174_v11, %v4054_v24  ;;  %3144 = vst [vmem:[#allocation22 + $0xe8] sm:$0xf] %v3141_v7  ;;  %v2376_v31 = vpack.c.bf16 0.0, %v2373_v16  ;;  %v3185_v13 = vmax.f32 %v3181_v18, %v4251_v1  ;;  %v4004_v7 = vld [vmem:[%s4659_s2 + $0x28] sm:$0xff]  }
  0x3c   :  { %v2232_v32 = vmax.f32 %v2228_v19, %v4251_v1  ;;  %v3044_v33 = vmax.f32 %v3040_v26, %v4251_v1  ;;  %v2279_v34 = vmax.f32 %v2275_v27, %v4251_v1  ;;  %v3087_v35 = vmax.f32 %v4251_v1, %v3080_v28 }
  0x3d   :  { %3641 = vmatpush.bf16.msrb.mxu3 %v4057_v30  ;;  %v4044_v39 = vld [vmem:[#allocation22 + $0x10] sm:$0xf]  ;;  %4160 = vmatmul.msk.bf16.vlgmr.msrb.gmra.mxu2 %vm3480_vm3, %v4403_v25  ;;  %2379 = vst [vmem:[#allocation22 + $0xac] sm:$0xf] %v2376_v31  ;;  %v3188_v40 = vpack.c.bf16 0.0, %v3185_v13  ;;  %v732_v43 = vunpack.c.h.bf16 %v3967_v22  ;;  %v698_v48 = vmax.f32 %v4251_v1, %v685_v36  ;;  %v1510_v51 = vmax.f32 %v4251_v1, %v1497_v42 }
  0x3e   :  { %v2235_v41 = vpack.c.bf16 0.0, %v2232_v32  ;;  %v4181_v44 = vld [vmem:[#allocation22 + $0x4c] sm:$0xf0]  ;;  %v3047_v45 = vpack.c.bf16 0.0, %v3044_v33  ;;  %v2282_v46 = vpack.c.bf16 0.0, %v2279_v34  ;;  %v3091_v47 = vmax.f32 %v3087_v35, %v4251_v1  ;;  %v4002_v34 = vld [vmem:[%s4659_s2 + $0x20] sm:$0xff]  }
  0x3f   :  { %v4045_v49 = vor.u32 %v4181_v44, %v4044_v39  ;;  %v4173_v50 = vld [vmem:[#allocation22 + $0x14] sm:$0xf]  ;;  %3191 = vst [vmem:[#allocation22 + $0xec] sm:$0xf] %v3188_v40  ;;  %v745_v52 = vmax.f32 %v4251_v1, %v732_v43  ;;  %v1544_v53 = vunpack.c.h.bf16 %v3984_v29  ;;  %v702_v56 = vmax.f32 %v698_v48, %v4251_v1 }
  0x40   :  { %v4046_v54 = vld [vmem:[#allocation22 + $0x50] sm:$0xf0]  ;;  %4161 = vmatmul.msk.bf16.vlgmr.msrb.gmra.mxu3 %vm3480_vm3, %v4403_v25  ;;  %2238 = vst [vmem:[#allocation22 + $0xa0] sm:$0xf] %v2235_v41  ;;  %v3094_v55 = vpack.c.bf16 0.0, %v3091_v47  ;;  %v591_v57 = vunpack.c.l.bf16 %v3965_v37  ;;  %v1403_v58 = vunpack.c.l.bf16 %v4530_v38  ;;  %v1514_v61 = vmax.f32 %v1510_v51, %v4251_v1 }
  0x41   :  { %3599 = vmatpush.bf16.msrb.mxu0 %v4045_v49  ;;  %v4049_v59 = vor.u32 %v4173_v50, %v4046_v54  ;;  %v4132_v60 = vld [vmem:[#allocation22 + $0xa8] sm:$0xf]  ;;  %3050 = vst [vmem:[#allocation22 + $0xe0] sm:$0xf] %v3047_v45  ;;  %v749_v62 = vmax.f32 %v745_v52, %v4251_v1  ;;  %v638_v63 = vunpack.c.h.bf16 %v3965_v37  ;;  %v705_v3 = vpack.c.bf16 0.0, %v702_v56  ;;  %v4018_v40 = vld [vmem:[%s4659_s2 + $0x30] sm:$0xff]  }
  0x42   :  { %v4200_v2 = vld [vmem:[#allocation22 + $0xe4] sm:$0x30]  ;;  %2285 = vst [vmem:[#allocation22 + $0xa4] sm:$0xf] %v2282_v46  ;;  %v1557_v4 = vmax.f32 %v4251_v1, %v1544_v53  ;;  %v604_v5 = vmax.f32 %v4251_v1, %v591_v57  ;;  %v1416_v6 = vmax.f32 %v4251_v1, %v1403_v58  ;;  %v1517_v9 = vpack.c.bf16 0.0, %v1514_v61 }
  0x43   :  { %3613 = vmatpush.bf16.msrb.mxu1 %v4049_v59  ;;  %v4133_v8 = vor.u32 %v4200_v2, %v4132_v60  ;;  %3097 = vst [vmem:[#allocation22 + $0xe4] sm:$0xf] %v3094_v55  ;;  %v752_v10 = vpack.c.bf16 0.0, %v749_v62  ;;  %v651_v12 = vmax.f32 %v4251_v1, %v638_v63  ;;  %v1450_v16 = vunpack.c.h.bf16 %v4530_v38  ;;  %v4582_v46 = vld [vmem:[%s4659_s2 + $0x8] sm:$0xff]  }
  0x44   :  { %4158 = vmatmul.msk.bf16.vlgmr.msrb.gmra.mxu0 %vm3480_vm3, %v4403_v25  ;;  %v4192_v14 = vld [vmem:[#allocation22 + $0xac] sm:$0xf]  ;;  %708 = vst [vmem:[#allocation22 + $0x28] sm:$0xf] %v705_v3  ;;  %v1561_v11 = vmax.f32 %v1557_v4, %v4251_v1  ;;  %v608_v15 = vmax.f32 %v604_v5, %v4251_v1  ;;  %v1420_v17 = vmax.f32 %v1416_v6, %v4251_v1  ;;  %v2434_v20 = vunpack.c.l.bf16 %v4004_v7  ;;  %v3988_v4 = vld [vmem:[%s4659_s2 + $0x18] sm:$0xff]  }
  0x45   :  { %v3519_v18 = vand.u32 %v4133_v8, %v4344_v23  ;;  %1520 = vst [vmem:[#allocation22 + $0x68] sm:$0xf] %v1517_v9  ;;  %v655_v19 = vmax.f32 %v651_v12, %v4251_v1  ;;  %v3246_v22 = vunpack.c.l.bf16 %v4020_v0  ;;  %v1463_v28 = vmax.f32 %v4251_v1, %v1450_v16  ;;  %v3970_v9 = vld [vmem:[%s4659_s2] sm:$0xff]  }
  0x46   :  { %4159 = vmatmul.msk.bf16.vlgmr.msrb.gmra.mxu1 %vm3480_vm3, %v4403_v25  ;;  %v4134_v24 = vld [vmem:[#allocation22 + $0xe8] sm:$0x30]  ;;  %755 = vst [vmem:[#allocation22 + $0x2c] sm:$0xf] %v752_v10  ;;  %v1564_v26 = vpack.c.bf16 0.0, %v1561_v11  ;;  %v611_v27 = vpack.c.bf16 0.0, %v608_v15  ;;  %v2460_v29 = vunpack.c.h.bf16 %v4004_v7  ;;  %v2451_v33 = vmax.f32 %v4251_v1, %v2434_v20 }
  0x47   :  { %3682 = vmatpush.bf16.msra.mxu2 %v3519_v18  ;;  %v4137_v30 = vor.u32 %v4192_v14, %v4134_v24  ;;  %v4124_v31 = vld [vmem:[#allocation22 + $0xa0] sm:$0xf]  ;;  %v1423_v13 = vpack.c.bf16 0.0, %v1420_v17  ;;  %v658_v32 = vpack.c.bf16 0.0, %v655_v19  ;;  %v1467_v36 = vmax.f32 %v1463_v28, %v4251_v1 }
  0x48   :  { %v4199_v35 = vld [vmem:[#allocation22 + $0xdc] sm:$0x30]  ;;  %1567 = vst [vmem:[#allocation22 + $0x6c] sm:$0xf] %v1564_v26  ;;  %v3252_v37 = vsel %vm2536_vm1, %v3246_v22, %v4251_v1  ;;  %v2477_v38 = vmax.f32 %v4251_v1, %v2460_v29  ;;  %v3272_v39 = vunpack.c.h.bf16 %v4020_v0  ;;  %v2454_v44 = vpack.c.bf16 0.0, %v2451_v33 }
  0x49   :  { %v3522_v41 = vand.u32 %v4137_v30, %v4344_v23  ;;  %v4125_v42 = vor.u32 %v4199_v35, %v4124_v31  ;;  %v4191_v43 = vld [vmem:[#allocation22 + $0xa4] sm:$0xf]  ;;  %614 = vst [vmem:[#allocation22 + $0x20] sm:$0xf] %v611_v27  ;;  %v3263_v45 = vmax.f32 %v4251_v1, %v3252_v37  ;;  %v1470_v48 = vpack.c.bf16 0.0, %v1467_v36 }
  0x4a   :  { %v4126_v47 = vld [vmem:[#allocation22 + $0xe0] sm:$0x30]  ;;  %1426 = vst [vmem:[#allocation22 + $0x60] sm:$0xf] %v1423_v13  ;;  %v2480_v49 = vpack.c.bf16 0.0, %v2477_v38  ;;  %v3278_v50 = vsel %vm2536_vm1, %v3272_v39, %v4251_v1  ;;  %v2382_v51 = vunpack.c.l.bf16 %v4002_v34  ;;  %v3194_v59 = vunpack.c.l.bf16 %v4018_v40 }
  0x4b   :  { %3696 = vmatpush.bf16.msra.mxu3 %v3522_v41  ;;  %v3513_v52 = vand.u32 %v4125_v42, %v4344_v23  ;;  %v4129_v53 = vor.u32 %v4191_v43, %v4126_v47  ;;  %v4068_v54 = vld [vmem:[#allocation22 + $0x28] sm:$0xf]  ;;  %661 = vst [vmem:[#allocation22 + $0x24] sm:$0xf] %v658_v32  ;;  %v3266_v55 = vpack.c.bf16 0.0, %v3263_v45  ;;  %v3289_v56 = vmax.f32 %v4251_v1, %v3278_v50  ;;  %v3784_v10 = vld [vmem:[%s4658_s1] sm:$0xff] }
  0x4c   :  { %v4184_v57 = vld [vmem:[#allocation22 + $0x64] sm:$0xf0]  ;;  %1473 = vst [vmem:[#allocation22 + $0x64] sm:$0xf] %v1470_v48  ;;  %v2399_v58 = vmax.f32 %v4251_v1, %v2382_v51  ;;  %v2408_v60 = vunpack.c.h.bf16 %v4002_v34  ;;  %v3220_v61 = vunpack.c.h.bf16 %v4018_v40  ;;  %v810_v3 = vunpack.c.l.bf16 %v4582_v46 }
  0x4d   :  { %3654 = vmatpush.bf16.msra.mxu0 %v3513_v52  ;;  %v3516_v62 = vand.u32 %v4129_v53, %v4344_v23  ;;  %v4069_v63 = vor.u32 %v4184_v57, %v4068_v54  ;;  %v4176_v0 = vld [vmem:[#allocation22 + $0x2c] sm:$0xf]  ;;  %2457 = vst [vmem:[#allocation22 + $0xb8] sm:$0xf] %v2454_v44  ;;  %v3292_v2 = vpack.c.bf16 0.0, %v3289_v56  ;;  %v3200_v6 = vsel %vm2536_vm1, %v3194_v59, %v4251_v1 }
  0x4e   :  { %3269 = vst [vmem:[#allocation22 + $0xf8] sm:$0xf] %v3266_v55  ;;  %v2402_v5 = vpack.c.bf16 0.0, %v2399_v58  ;;  %v2425_v7 = vmax.f32 %v4251_v1, %v2408_v60  ;;  %v3226_v8 = vsel %vm2536_vm1, %v3220_v61, %v4251_v1  ;;  %v3211_v14 = vmax.f32 %v4251_v1, %v3200_v6  ;;  %v3785_v44 = vld [vmem:[%s4658_s1 + $0x8] sm:$0xff] }
  0x4f   :  { %3668 = vmatpush.bf16.msra.mxu1 %v3516_v62  ;;  %3683 = vmatpush.bf16.msra.mxu2 %v4069_v63  ;;  %v4070_v12 = vld [vmem:[#allocation22 + $0x68] sm:$0xf0]  ;;  %2483 = vst [vmem:[#allocation22 + $0xbc] sm:$0xf] %v2480_v49  ;;  %v3237_v11 = vmax.f32 %v4251_v1, %v3226_v8  ;;  %v827_v15 = vmax.f32 %v4251_v1, %v810_v3  ;;  %v1622_v19 = vunpack.c.l.bf16 %v3988_v4  ;;  %v836_v20 = vunpack.c.h.bf16 %v4582_v46 }
  0x50   :  { %v4073_v17 = vor.u32 %v4176_v0, %v4070_v12  ;;  %v4060_v16 = vld [vmem:[#allocation22 + $0x20] sm:$0xf]  ;;  %3295 = vst [vmem:[#allocation22 + $0xfc] sm:$0xf] %v3292_v2  ;;  %v2428_v18 = vpack.c.bf16 0.0, %v2425_v7  ;;  %v4207_v22 = vmov 0   ;;  %v1648_v28 = vunpack.c.h.bf16 %v3988_v4 }
  0x51   :  { %4205 = vset.pattern.permute.xlu0 %v4207_v22  ;;  %v4183_v24 = vld [vmem:[#allocation22 + $0x5c] sm:$0xf0]  ;;  %2405 = vst [vmem:[#allocation22 + $0xb0] sm:$0xf] %v2402_v5  ;;  %v3214_v26 = vpack.c.bf16 0.0, %v3211_v14  ;;  %v3240_v27 = vpack.c.bf16 0.0, %v3237_v11  ;;  %v758_v29 = vunpack.c.l.bf16 %v3970_v9  ;;  %v1639_v32 = vmax.f32 %v4251_v1, %v1622_v19 }
  0x52   :  { %3788 = vperm.xlu0 %4205, %v3784_v10   ;;  %3697 = vmatpush.bf16.msra.mxu3 %v4073_v17  ;;  %v4061_v30 = vor.u32 %v4183_v24, %v4060_v16  ;;  %v4175_v31 = vld [vmem:[#allocation22 + $0x24] sm:$0xf]  ;;  %2431 = vst [vmem:[#allocation22 + $0xb4] sm:$0xf] %v2428_v18  ;;  %v830_v13 = vpack.c.bf16 0.0, %v827_v15  ;;  %v1570_v33 = vunpack.c.l.bf16 %v3986_v21  ;;  %v853_v35 = vmax.f32 %v4251_v1, %v836_v20 }
  0x53   :  { %4164 = vmatmul.msk.bf16.vlgmr.msra.gmra.mxu2 %vm3480_vm3, %v4403_v25  ;;  %v4062_v34 = vld [vmem:[#allocation22 + $0x60] sm:$0xf0]  ;;  %3217 = vst [vmem:[#allocation22 + $0xf0] sm:$0xf] %v3214_v26  ;;  %v1665_v36 = vmax.f32 %v4251_v1, %v1648_v28  ;;  %v775_v37 = vmax.f32 %v4251_v1, %v758_v29  ;;  %v784_v38 = vunpack.c.h.bf16 %v3970_v9  ;;  %v1642_v41 = vpack.c.bf16 0.0, %v1639_v32 }
  0x54   :  { %3655 = vmatpush.bf16.msra.mxu0 %v4061_v30  ;;  %v4065_v39 = vor.u32 %v4175_v31, %v4062_v34  ;;  %v4148_v40 = vld [vmem:[#allocation22 + $0xb8] sm:$0xf]  ;;  %3243 = vst [vmem:[#allocation22 + $0xf4] sm:$0xf] %v3240_v27  ;;  %v1587_v42 = vmax.f32 %v4251_v1, %v1570_v33  ;;  %v1596_v43 = vunpack.c.h.bf16 %v3986_v21  ;;  %v856_v46 = vpack.c.bf16 0.0, %v853_v35 }
  0x55   :  { %4165 = vmatmul.msk.bf16.vlgmr.msra.gmra.mxu3 %vm3480_vm3, %v4403_v25  ;;  %v4202_v45 = vld [vmem:[#allocation22 + $0xf4] sm:$0x30]  ;;  %833 = vst [vmem:[#allocation22 + $0x38] sm:$0xf] %v830_v13  ;;  %v1668_v47 = vpack.c.bf16 0.0, %v1665_v36  ;;  %v801_v48 = vmax.f32 %v4251_v1, %v784_v38  ;;  %v778_v51 = vpack.c.bf16 0.0, %v775_v37 }
  0x56   :  { %3669 = vmatpush.bf16.msra.mxu1 %v4065_v39  ;;  %v4149_v49 = vor.u32 %v4202_v45, %v4148_v40  ;;  %v4194_v50 = vld [vmem:[#allocation22 + $0xbc] sm:$0xf]  ;;  %1645 = vst [vmem:[#allocation22 + $0x78] sm:$0xf] %v1642_v41  ;;  %v1590_v52 = vpack.c.bf16 0.0, %v1587_v42  ;;  %v1613_v53 = vmax.f32 %v4251_v1, %v1596_v43 }
  0x57   :  { %4162 = vmatmul.msk.bf16.vlgmr.msra.gmra.mxu0 %vm3480_vm3, %v4403_v25  ;;  %v4150_v54 = vld [vmem:[#allocation22 + $0xf8] sm:$0x30]  ;;  %859 = vst [vmem:[#allocation22 + $0x3c] sm:$0xf] %v856_v46  ;;  %v804_v55 = vpack.c.bf16 0.0, %v801_v48 }
  0x58   :  { %v3531_v56 = vand.u32 %v4149_v49, %v4344_v23  ;;  %v4153_v57 = vor.u32 %v4194_v50, %v4150_v54  ;;  %v4140_v58 = vld [vmem:[#allocation22 + $0xb0] sm:$0xf]  ;;  %1671 = vst [vmem:[#allocation22 + $0x7c] sm:$0xf] %v1668_v47  ;;  %v1616_v59 = vpack.c.bf16 0.0, %v1613_v53 }
  0x59   :  { %4163 = vmatmul.msk.bf16.vlgmr.msra.gmra.mxu1 %vm3480_vm3, %v4403_v25  ;;  %v4193_v60 = vld [vmem:[#allocation22 + $0xb4] sm:$0xf]  ;;  %781 = vst [vmem:[#allocation22 + $0x30] sm:$0xf] %v778_v51 }
  0x5a   :  { %3793 = vperm.xlu0 %4205, %v3785_v44   ;;  %3738 = vmatpush.bf16.msrb.mxu2 %v3531_v56  ;;  %v3534_v1 = vand.u32 %v4153_v57, %v4344_v23  ;;  %v4201_v61 = vld [vmem:[#allocation22 + $0xec] sm:$0x30]  ;;  %1593 = vst [vmem:[#allocation22 + $0x70] sm:$0xf] %v1590_v52 }
  0x5b   :  { %v4141_v62 = vor.u32 %v4201_v61, %v4140_v58  ;;  %v4142_v63 = vld [vmem:[#allocation22 + $0xf0] sm:$0x30]  ;;  %807 = vst [vmem:[#allocation22 + $0x34] sm:$0xf] %v804_v55 }
  0x5c   :  { %3752 = vmatpush.bf16.msrb.mxu3 %v3534_v1  ;;  %v4145_v0 = vor.u32 %v4193_v60, %v4142_v63  ;;  %v4084_v2 = vld [vmem:[#allocation22 + $0x38] sm:$0xf]  ;;  %1619 = vst [vmem:[#allocation22 + $0x74] sm:$0xf] %v1616_v59 }
  0x5d   :  { %v3525_v3 = vand.u32 %v4141_v62, %v4344_v23  ;;  %v4186_v4 = vld [vmem:[#allocation22 + $0x74] sm:$0xf0] }
  0x5e   :  { %v3528_v5 = vand.u32 %v4145_v0, %v4344_v23  ;;  %v4085_v6 = vor.u32 %v4186_v4, %v4084_v2  ;;  %v4178_v7 = vld [vmem:[#allocation22 + $0x3c] sm:$0xf] }
  0x5f   :  { %3710 = vmatpush.bf16.msrb.mxu0 %v3525_v3  ;;  %v4086_v8 = vld [vmem:[#allocation22 + $0x78] sm:$0xf0] }
  0x60   :  { %3724 = vmatpush.bf16.msrb.mxu1 %v3528_v5  ;;  %3739 = vmatpush.bf16.msrb.mxu2 %v4085_v6  ;;  %v4089_v9 = vor.u32 %v4178_v7, %v4086_v8  ;;  %v4076_v10 = vld [vmem:[#allocation22 + $0x30] sm:$0xf] }
  0x61   :  { %v4185_v12 = vld [vmem:[#allocation22 + $0x6c] sm:$0xf0] }
  0x62   :  { %3753 = vmatpush.bf16.msrb.mxu3 %v4089_v9  ;;  %v4077_v14 = vor.u32 %v4185_v12, %v4076_v10  ;;  %v4177_v11 = vld [vmem:[#allocation22 + $0x34] sm:$0xf] }
  0x63   :  { %v4078_v15 = vld [vmem:[#allocation22 + $0x70] sm:$0xf0]  ;;  %4168 = vmatmul.msk.bf16.vlgmr.msrb.gmra.mxu2 %vm3480_vm3, %v4403_v25 }
  0x64   :  { %3711 = vmatpush.bf16.msrb.mxu0 %v4077_v14  ;;  %v4081_v21 = vor.u32 %v4177_v11, %v4078_v15 }
  0x65   :  { %4169 = vmatmul.msk.bf16.vlgmr.msrb.gmra.mxu3 %vm3480_vm3, %v4403_v25 }
  0x66   :  { %3725 = vmatpush.bf16.msrb.mxu1 %v4081_v21 }
  0x67   :  { %4166 = vmatmul.msk.bf16.vlgmr.msrb.gmra.mxu0 %vm3480_vm3, %v4403_v25 }
  0x69   :  { %4167 = vmatmul.msk.bf16.vlgmr.msrb.gmra.mxu1 %vm3480_vm3, %v4403_v25 }
  0xa3   :  { %v3545_v23 = vpop.f32.mrf.mxu0 }
  0xa6   :  { %v3559_v16 = vpop.f32.mrf.mxu1 }
  0xab   :  { %v3547_v19 = vpop.f32.mrf.mxu0 }
  0xae   :  { %v3573_v17 = vpop.f32.mrf.mxu2  ;;  %v3561_v22 = vpop.f32.mrf.mxu1 }
  0xb0   :  { %v3587_v18 = vpop.f32.mrf.mxu3 }
  0xb6   :  { %v3575_v20 = vpop.f32.mrf.mxu2 }
  0xb8   :  { %v3589_v24 = vpop.f32.mrf.mxu3 }
  0xc0   :  { %v3629_v27 = vpop.f32.mrf.mxu2 }
  0xc1   :  { %v3601_v26 = vpop.f32.mrf.mxu0  ;;  %v3762_v42 = vmax.f32 %v3573_v17, %v3629_v27 }
  0xc2   :  { %v3760_v40 = vmax.f32 %v3545_v23, %v3601_v26 }
  0xc3   :  { %v3615_v28 = vpop.f32.mrf.mxu1  ;;  %v3643_v29 = vpop.f32.mrf.mxu3 }
  0xc4   :  { %v3761_v41 = vmax.f32 %v3559_v16, %v3615_v28  ;;  %v3789_v44 = vpop.permute.xlu0 %3788  ;;  %v3763_v46 = vmax.f32 %v3587_v18, %v3643_v29 }
  0xc8   :  { %v3631_v31 = vpop.f32.mrf.mxu2 }
  0xc9   :  { %v3603_v30 = vpop.f32.mrf.mxu0  ;;  %v3766_v62 = vmax.f32 %v3575_v20, %v3631_v31 }
  0xca   :  { %v3764_v56 = vmax.f32 %v3547_v19, %v3603_v30 }
  0xcb   :  { %v3617_v13 = vpop.f32.mrf.mxu1  ;;  %v3645_v32 = vpop.f32.mrf.mxu3 }
  0xcc   :  { %v3765_v61 = vmax.f32 %v3561_v22, %v3617_v13  ;;  %v3767_v4 = vmax.f32 %v3589_v24, %v3645_v32  ;;  %v3794_v10 = vpop.permute.xlu0 %3793 }
  0xd4   :  { %v3657_v33 = vpop.f32.mrf.mxu0 }
  0xd5   :  { %v3768_v43 = vmax.f32 %v3760_v40, %v3657_v33 }
  0xd6   :  { %v3685_v34 = vpop.f32.mrf.mxu2  ;;  %v3671_v35 = vpop.f32.mrf.mxu1 }
  0xd7   :  { %v3769_v47 = vmax.f32 %v3761_v41, %v3671_v35  ;;  %v3770_v48 = vmax.f32 %v3762_v42, %v3685_v34 }
  0xd8   :  { %v3699_v25 = vpop.f32.mrf.mxu3 }
  0xd9   :  { %v3771_v52 = vmax.f32 %v3763_v46, %v3699_v25 }
  0xdc   :  { %v3659_v36 = vpop.f32.mrf.mxu0 }
  0xdd   :  { %v3772_v63 = vmax.f32 %v3764_v56, %v3659_v36 }
  0xde   :  { %v3687_v37 = vpop.f32.mrf.mxu2  ;;  %v3673_v38 = vpop.f32.mrf.mxu1 }
  0xdf   :  { %v3774_v5 = vmax.f32 %v3766_v62, %v3687_v37  ;;  %v3773_v7 = vmax.f32 %v3765_v61, %v3673_v38 }
  0xe0   :  { %v3701_v39 = vpop.f32.mrf.mxu3 }
  0xe1   :  { %v3775_v14 = vmax.f32 %v3767_v4, %v3701_v39 }
  0xe4   :  { %v3713_v45 = vpop.f32.mrf.mxu0 }
  0xe5   :  { %v3776_v49 = vmax.f32 %v3768_v43, %v3713_v45 }
  0xe6   :  { %v3727_v50 = vpop.f32.mrf.mxu1  ;;  %v3741_v51 = vpop.f32.mrf.mxu2 }
  0xe7   :  { %v3796_v53 = vadd.f32 %v3789_v44, %v3776_v49  ;;  %v3777_v54 = vmax.f32 %v3769_v47, %v3727_v50  ;;  %v3778_v55 = vmax.f32 %v3770_v48, %v3741_v51 }
  0xe8   :  { %v3755_v57 = vpop.f32.mrf.mxu3 }
  0xe9   :  { %v3804_v58 = vmax.f32 %v3796_v53, 0.0  ;;  %v3797_v59 = vadd.f32 %v3789_v44, %v3777_v54  ;;  %v3798_v60 = vadd.f32 %v3789_v44, %v3778_v55  ;;  %v3779_v1 = vmax.f32 %v3771_v52, %v3755_v57 }
  0xeb   :  { %v3805_v0 = vmax.f32 %v3797_v59, 0.0  ;;  %v3806_v2 = vmax.f32 %v3798_v60, 0.0  ;;  %v3799_v3 = vadd.f32 %v3789_v44, %v3779_v1 }
  0xec   :  { %v3715_v6 = vpop.f32.mrf.mxu0 }
  0xed   :  { %v3812_v8 = vpack.c.bf16 %v3805_v0, %v3804_v58  ;;  %v3807_v9 = vmax.f32 %v3799_v3, 0.0  ;;  %v3780_v12 = vmax.f32 %v3772_v63, %v3715_v6 }
  0xee   :  { %v3729_v11 = vpop.f32.mrf.mxu1  ;;  %v3743_v15 = vpop.f32.mrf.mxu2 }
  0xef   :  { %3816 = vst [vmem:[%s4664_s7] sm:$0xff] %v3812_v8  ;;  %v3813_v21 = vpack.c.bf16 %v3807_v9, %v3806_v2  ;;  %v3800_v23 = vadd.f32 %v3794_v10, %v3780_v12  ;;  %v3781_v17 = vmax.f32 %v3773_v7, %v3729_v11  ;;  %v3782_v16 = vmax.f32 %v3774_v5, %v3743_v15 }
  0xf0   :  { %v3757_v18 = vpop.f32.mrf.mxu3 }
  0xf1   :  { %3817 = vst [vmem:[%s4664_s7 + $0x8] sm:$0xff] %v3813_v21  ;;  %v3808_v19 = vmax.f32 %v3800_v23, 0.0  ;;  %v3801_v20 = vadd.f32 %v3794_v10, %v3781_v17  ;;  %v3802_v22 = vadd.f32 %v3794_v10, %v3782_v16  ;;  %v3783_v24 = vmax.f32 %v3775_v14, %v3757_v18 }
  0xf3   :  { %v3809_v26 = vmax.f32 %v3801_v20, 0.0  ;;  %v3810_v27 = vmax.f32 %v3802_v22, 0.0  ;;  %v3803_v28 = vadd.f32 %v3794_v10, %v3783_v24 }
  0xf5   :  { %v3814_v29 = vpack.c.bf16 %v3809_v26, %v3808_v19  ;;  %v3811_v30 = vmax.f32 %v3803_v28, 0.0 }
  0xf7   :  { %3818 = vst [vmem:[%s4664_s7 + $0x10] sm:$0xff] %v3814_v29  ;;  %v3815_v31 = vpack.c.bf16 %v3811_v30, %v3810_v27 }
  0xf9   :  { %3819 = vst [vmem:[%s4664_s7 + $0x18] sm:$0xff] %v3815_v31 }

// kernel: forward.12
= control target key start
LH: loop header
LB: loop body
LE: loop exit
PB: predicated region body
PF: predicated region fallthrough
CT: control target
= control target key end

     0   :  { %s3754_s0 = inlined_call_operand.vmem [shape: bf16[32,144], index: 0, kind: input, shape index: {}]   ;;  %s3755_s1 = inlined_call_operand.vmem [shape: f32[32,1], index: 1, kind: input, shape index: {}]   ;;  %s3756_s2 = inlined_call_operand.vmem [shape: bf16[144,128], index: 2, kind: input, shape index: {}]   ;;  %s3757_s3 = inlined_call_operand.<no memory space> [shape: bf16[], index: 3, kind: input, shape index: {}]   ;;  %s3758_s4 = inlined_call_operand.vmem [shape: bf16[144,128], index: 4, kind: input, shape index: {}]   ;;  %s3759_s5 = inlined_call_operand.vmem [shape: bf16[144,128], index: 5, kind: input, shape index: {}]   ;;  %s3760_s6 = inlined_call_operand.vmem [shape: bf16[144,128], index: 6, kind: input, shape index: {}]   ;;  %s3761_s7 = inlined_call_operand.vmem [shape: bf16[32,128], index: 7, kind: output, shape index: {}]  }
   0x1   :  { %v12_v0 = vstv %s3757_s3 }
   0x2   :  { %v3410_v1 = vunpack.i.l.bf16 %v12_v0 }
   0x3   :  { %v3122_v2 = vld [vmem:[%s3760_s6 + $0x38] sm:$0xff]   ;;  %v3130_v3 = vld [vmem:[%s3760_s6 + $0x40] sm:$0xff]   ;;  %v3139_v39 = vld [vmem:[%s3754_s0 + $0x8] sm:$0xf0]  ;;  %vm2834_vm0 = vcmask 130048  }
   0x4   :  { %v3121_v4 = vld [vmem:[%s3759_s5 + $0x38] sm:$0xff]   ;;  %v2102_v5 = vunpack.c.l.bf16 %v3122_v2  ;;  %v2240_v6 = vunpack.c.h.bf16 %v3122_v2  ;;  %v2378_v7 = vunpack.c.l.bf16 %v3130_v3  ;;  %v2516_v8 = vunpack.c.h.bf16 %v3130_v3  ;;  %v3129_v9 = vld [vmem:[%s3759_s5 + $0x40] sm:$0xff]   ;;  %v3114_v41 = vld [vmem:[%s3760_s6 + $0x30] sm:$0xff]  }
   0x5   :  { %v2089_v10 = vunpack.c.l.bf16 %v3121_v4  ;;  %v2227_v11 = vunpack.c.h.bf16 %v3121_v4  ;;  %v2365_v12 = vunpack.c.l.bf16 %v3129_v9  ;;  %v2503_v13 = vunpack.c.h.bf16 %v3129_v9  ;;  %v3303_v34 = vld [vmem:[%s3754_s0 + $0x4] sm:$0xf]  ;;  %v3113_v46 = vld [vmem:[%s3759_s5 + $0x30] sm:$0xff]   ;;  %v3120_v47 = vld [vmem:[%s3758_s4 + $0x38] sm:$0xff]  }
   0x6   :  { %v2106_v14 = vmax.f32 %v2102_v5, %v3410_v1  ;;  %v2244_v15 = vmax.f32 %v2240_v6, %v3410_v1  ;;  %v2382_v16 = vmax.f32 %v2378_v7, %v3410_v1  ;;  %v2520_v17 = vmax.f32 %v2516_v8, %v3410_v1  ;;  %v3128_v40 = vld [vmem:[%s3758_s4 + $0x40] sm:$0xff]  }
   0x7   :  { %v2126_v18 = vmax.f32 %v3410_v1, %v2089_v10  ;;  %v2264_v19 = vmax.f32 %v3410_v1, %v2227_v11  ;;  %v2402_v20 = vmax.f32 %v3410_v1, %v2365_v12  ;;  %v2540_v21 = vmax.f32 %v3410_v1, %v2503_v13  ;;  %v3106_v13 = vld [vmem:[%s3760_s6 + $0x28] sm:$0xff]  }
   0x8   :  { %v2110_v22 = vmax.f32 %v2106_v14, %v3410_v1  ;;  %v2248_v23 = vmax.f32 %v2244_v15, %v3410_v1  ;;  %v2386_v24 = vmax.f32 %v2382_v16, %v3410_v1  ;;  %v2524_v25 = vmax.f32 %v2520_v17, %v3410_v1 }
   0x9   :  { %v2130_v26 = vmax.f32 %v2126_v18, %v3410_v1  ;;  %v2268_v27 = vmax.f32 %v2264_v19, %v3410_v1  ;;  %v2406_v28 = vmax.f32 %v2402_v20, %v3410_v1  ;;  %v2544_v29 = vmax.f32 %v2540_v21, %v3410_v1  ;;  %v3105_v18 = vld [vmem:[%s3759_s5 + $0x28] sm:$0xff]   ;;  %v3112_v19 = vld [vmem:[%s3758_s4 + $0x30] sm:$0xff]  }
   0xa   :  { %v2114_v30 = vmax.f32 %v2110_v22, %v3410_v1  ;;  %v2252_v31 = vmax.f32 %v2248_v23, %v3410_v1  ;;  %v2390_v32 = vmax.f32 %v2386_v24, %v3410_v1  ;;  %v2528_v33 = vmax.f32 %v2524_v25, %v3410_v1  ;;  %v3500_v25 = vld [vmem:[%s3760_s6 + $0x20] sm:$0xff]  }
   0xb   :  { %v2134_v35 = vmax.f32 %v2130_v26, %v3410_v1  ;;  %v2272_v36 = vmax.f32 %v2268_v27, %v3410_v1  ;;  %v2410_v37 = vmax.f32 %v2406_v28, %v3410_v1  ;;  %v2548_v38 = vmax.f32 %v2544_v29, %v3410_v1 }
   0xc   :  { %v2117_v42 = vpack.c.bf16 0.0, %v2114_v30  ;;  %v2255_v43 = vpack.c.bf16 0.0, %v2252_v31  ;;  %v2393_v44 = vpack.c.bf16 0.0, %v2390_v32  ;;  %v2531_v45 = vpack.c.bf16 0.0, %v2528_v33 }
   0xd   :  { %v2137_v48 = vpack.c.bf16 0.0, %v2134_v35  ;;  %v2275_v49 = vpack.c.bf16 0.0, %v2272_v36  ;;  %v2413_v50 = vpack.c.bf16 0.0, %v2410_v37  ;;  %v2551_v51 = vpack.c.bf16 0.0, %v2548_v38 }
   0xe   :  { %2120 = vst [vmem:[#allocation22 + $0xe0] sm:$0xf] %v2117_v42  ;;  %v3466_v52 = vor.u32 %v3303_v34, %v3139_v39  ;;  %v2349_v53 = vunpack.c.l.bf16 %v3128_v40  ;;  %v2487_v54 = vunpack.c.h.bf16 %v3128_v40  ;;  %v1826_v55 = vunpack.c.l.bf16 %v3114_v41 }
   0xf   :  { %2258 = vst [vmem:[#allocation22 + $0xf0] sm:$0xf] %v2255_v43  ;;  %v1964_v56 = vunpack.c.h.bf16 %v3114_v41  ;;  %v1813_v57 = vunpack.c.l.bf16 %v3113_v46  ;;  %v1951_v58 = vunpack.c.h.bf16 %v3113_v46  ;;  %v2073_v59 = vunpack.c.l.bf16 %v3120_v47 }
  0x10   :  { %2396 = vst [vmem:[#allocation22 + $0x100] sm:$0xf] %v2393_v44  ;;  %v2426_v60 = vmax.f32 %v3410_v1, %v2349_v53  ;;  %v2564_v61 = vmax.f32 %v3410_v1, %v2487_v54  ;;  %v1830_v62 = vmax.f32 %v1826_v55, %v3410_v1  ;;  %v2211_v63 = vunpack.c.h.bf16 %v3120_v47 }
  0x11   :  { %2534 = vst [vmem:[#allocation22 + $0x110] sm:$0xf] %v2531_v45  ;;  %v1968_v0 = vmax.f32 %v1964_v56, %v3410_v1  ;;  %v1850_v2 = vmax.f32 %v3410_v1, %v1813_v57  ;;  %v1988_v3 = vmax.f32 %v3410_v1, %v1951_v58  ;;  %v2150_v4 = vmax.f32 %v3410_v1, %v2073_v59 }
  0x12   :  { %2140 = vst [vmem:[#allocation22 + $0xe4] sm:$0xf] %v2137_v48  ;;  %v2430_v5 = vmax.f32 %v2426_v60, %v3410_v1  ;;  %v2568_v6 = vmax.f32 %v2564_v61, %v3410_v1  ;;  %v1834_v7 = vmax.f32 %v1830_v62, %v3410_v1  ;;  %v2288_v8 = vmax.f32 %v3410_v1, %v2211_v63 }
  0x13   :  { %2278 = vst [vmem:[#allocation22 + $0xf4] sm:$0xf] %v2275_v49  ;;  %v1972_v9 = vmax.f32 %v1968_v0, %v3410_v1  ;;  %v1854_v10 = vmax.f32 %v1850_v2, %v3410_v1  ;;  %v1992_v11 = vmax.f32 %v1988_v3, %v3410_v1  ;;  %v2154_v12 = vmax.f32 %v2150_v4, %v3410_v1 }
  0x14   :  { %2416 = vst [vmem:[#allocation22 + $0x104] sm:$0xf] %v2413_v50  ;;  %v2433_v14 = vpack.c.bf16 0.0, %v2430_v5  ;;  %v2571_v15 = vpack.c.bf16 0.0, %v2568_v6  ;;  %v1838_v16 = vmax.f32 %v1834_v7, %v3410_v1  ;;  %v2292_v17 = vmax.f32 %v2288_v8, %v3410_v1 }
  0x15   :  { %v3265_v20 = vld [vmem:[#allocation22 + $0xe0] sm:$0xf]  ;;  %2554 = vst [vmem:[#allocation22 + $0x114] sm:$0xf] %v2551_v51  ;;  %v1976_v21 = vmax.f32 %v1972_v9, %v3410_v1  ;;  %v1858_v22 = vmax.f32 %v1854_v10, %v3410_v1  ;;  %v1996_v23 = vmax.f32 %v1992_v11, %v3410_v1  ;;  %v2157_v24 = vpack.c.bf16 0.0, %v2154_v12  ;;  %v3104_v10 = vld [vmem:[%s3758_s4 + $0x28] sm:$0xff]  }
  0x16   :  { %v3337_v26 = vld [vmem:[#allocation22 + $0xec] sm:$0xf0]  ;;  %2436 = vst [vmem:[#allocation22 + $0x108] sm:$0xf] %v2433_v14  ;;  %v1841_v27 = vpack.c.bf16 0.0, %v1838_v16  ;;  %v2295_v28 = vpack.c.bf16 0.0, %v2292_v17  ;;  %v1550_v29 = vunpack.c.l.bf16 %v3106_v13  ;;  %v1688_v30 = vunpack.c.h.bf16 %v3106_v13 }
  0x17   :  { %v3266_v31 = vor.u32 %v3337_v26, %v3265_v20  ;;  %v3281_v32 = vld [vmem:[#allocation22 + $0x100] sm:$0xf]  ;;  %2574 = vst [vmem:[#allocation22 + $0x118] sm:$0xf] %v2571_v15  ;;  %v1979_v33 = vpack.c.bf16 0.0, %v1976_v21  ;;  %v1861_v34 = vpack.c.bf16 0.0, %v1858_v22  ;;  %v1537_v35 = vunpack.c.l.bf16 %v3105_v18 }
  0x18   :  { %v3341_v36 = vld [vmem:[#allocation22 + $0x10c] sm:$0xf0]  ;;  %1844 = vst [vmem:[#allocation22 + $0xc0] sm:$0xf] %v1841_v27  ;;  %v1999_v37 = vpack.c.bf16 0.0, %v1996_v23  ;;  %v1554_v38 = vmax.f32 %v1550_v29, %v3410_v1  ;;  %v1692_v39 = vmax.f32 %v1688_v30, %v3410_v1  ;;  %v1675_v40 = vunpack.c.h.bf16 %v3105_v18  ;;  %v3097_v51 = vld [vmem:[%s3759_s5 + $0x20] sm:$0xff]  }
  0x19   :  { %2841 = vmatpush.bf16.msra.mxu0 %v3266_v31  ;;  %v3282_v41 = vor.u32 %v3341_v36, %v3281_v32  ;;  %v3335_v42 = vld [vmem:[#allocation22 + $0xe4] sm:$0xf]  ;;  %1982 = vst [vmem:[#allocation22 + $0xd0] sm:$0xf] %v1979_v33  ;;  %v1574_v43 = vmax.f32 %v3410_v1, %v1537_v35  ;;  %v1797_v44 = vunpack.c.l.bf16 %v3112_v19  ;;  %v1935_v45 = vunpack.c.h.bf16 %v3112_v19  ;;  %v3090_v16 = vld [vmem:[%s3760_s6 + $0x18] sm:$0xff]  }
  0x1a   :  { %v3267_v46 = vld [vmem:[#allocation22 + $0xf0] sm:$0xf0]  ;;  %1864 = vst [vmem:[#allocation22 + $0xc4] sm:$0xf] %v1861_v34  ;;  %v1558_v47 = vmax.f32 %v1554_v38, %v3410_v1  ;;  %v1696_v48 = vmax.f32 %v1692_v39, %v3410_v1  ;;  %v1712_v49 = vmax.f32 %v3410_v1, %v1675_v40  ;;  %v1274_v50 = vunpack.c.l.bf16 %v3500_v25 }
  0x1b   :  { %2867 = vmatpush.bf16.msra.mxu1 %v3282_v41  ;;  %v3270_v53 = vor.u32 %v3335_v42, %v3267_v46  ;;  %v3339_v54 = vld [vmem:[#allocation22 + $0x104] sm:$0xf]  ;;  %2002 = vst [vmem:[#allocation22 + $0xd4] sm:$0xf] %v1999_v37  ;;  %v1578_v55 = vmax.f32 %v1574_v43, %v3410_v1  ;;  %v1874_v56 = vmax.f32 %v3410_v1, %v1797_v44  ;;  %v1412_v57 = vunpack.c.h.bf16 %v3500_v25  ;;  %v3089_v42 = vld [vmem:[%s3759_s5 + $0x18] sm:$0xff]  }
  0x1c   :  { %v3283_v58 = vld [vmem:[#allocation22 + $0x110] sm:$0xf0]  ;;  %2160 = vst [vmem:[#allocation22 + $0xe8] sm:$0xf] %v2157_v24  ;;  %v1562_v59 = vmax.f32 %v1558_v47, %v3410_v1  ;;  %v1700_v60 = vmax.f32 %v1696_v48, %v3410_v1  ;;  %v1716_v61 = vmax.f32 %v1712_v49, %v3410_v1  ;;  %v2012_v62 = vmax.f32 %v3410_v1, %v1935_v45  ;;  %v3096_v47 = vld [vmem:[%s3758_s4 + $0x20] sm:$0xff]  }
  0x1d   :  { %2879 = vmatpush.bf16.msra.mxu2 %v3270_v53  ;;  %v3286_v63 = vor.u32 %v3339_v54, %v3283_v58  ;;  %v3289_v0 = vld [vmem:[#allocation22 + $0x108] sm:$0xf]  ;;  %2298 = vst [vmem:[#allocation22 + $0xf8] sm:$0xf] %v2295_v28  ;;  %v1582_v2 = vmax.f32 %v1578_v55, %v3410_v1  ;;  %v1878_v3 = vmax.f32 %v1874_v56, %v3410_v1  ;;  %v1261_v4 = vunpack.c.l.bf16 %v3097_v51  ;;  %v3305_v53 = vld [vmem:[%s3754_s0 + $0x14] sm:$0xf] }
  0x1e   :  { %3295 = vmatmul.msk.bf16.vlgmr.msra.gmra.mxu1 %vm2834_vm0, %v3466_v52  ;;  %v3342_v5 = vld [vmem:[#allocation22 + $0x114] sm:$0xf0]  ;;  %v1565_v6 = vpack.c.bf16 0.0, %v1562_v59  ;;  %v1703_v7 = vpack.c.bf16 0.0, %v1700_v60  ;;  %v1720_v8 = vmax.f32 %v1716_v61, %v3410_v1  ;;  %v2016_v9 = vmax.f32 %v2012_v62, %v3410_v1  ;;  %v3147_v59 = vld [vmem:[%s3754_s0 + $0x18] sm:$0xf0] }
  0x1f   :  { %2905 = vmatpush.bf16.msra.mxu3 %v3286_v63  ;;  %v3290_v11 = vor.u32 %v3342_v5, %v3289_v0  ;;  %v3249_v12 = vld [vmem:[#allocation22 + $0xc0] sm:$0xf]  ;;  %v1585_v13 = vpack.c.bf16 0.0, %v1582_v2  ;;  %v1881_v14 = vpack.c.bf16 0.0, %v1878_v3  ;;  %v1278_v15 = vmax.f32 %v1274_v50, %v3410_v1 }
  0x20   :  { %v3333_v17 = vld [vmem:[#allocation22 + $0xcc] sm:$0xf0]  ;;  %1568 = vst [vmem:[#allocation22 + $0xa0] sm:$0xf] %v1565_v6  ;;  %v1723_v18 = vpack.c.bf16 0.0, %v1720_v8  ;;  %v2019_v19 = vpack.c.bf16 0.0, %v2016_v9  ;;  %v1416_v20 = vmax.f32 %v1412_v57, %v3410_v1  ;;  %v1298_v21 = vmax.f32 %v3410_v1, %v1261_v4 }
  0x21   :  { %v3250_v22 = vor.u32 %v3333_v17, %v3249_v12  ;;  %v3331_v23 = vld [vmem:[#allocation22 + $0xc4] sm:$0xf]  ;;  %1706 = vst [vmem:[#allocation22 + $0xb0] sm:$0xf] %v1703_v7  ;;  %v1282_v24 = vmax.f32 %v1278_v15, %v3410_v1  ;;  %v1399_v25 = vunpack.c.h.bf16 %v3097_v51  ;;  %v1521_v26 = vunpack.c.l.bf16 %v3104_v10  ;;  %v3082_v12 = vld [vmem:[%s3760_s6 + $0x10] sm:$0xff]  }
  0x22   :  { %3297 = vmatmul.msk.bf16.vlgmr.msra.gmra.mxu3 %vm2834_vm0, %v3466_v52  ;;  %v3251_v27 = vld [vmem:[#allocation22 + $0xd0] sm:$0xf0]  ;;  %1588 = vst [vmem:[#allocation22 + $0xa4] sm:$0xf] %v1585_v13  ;;  %v1420_v28 = vmax.f32 %v1416_v20, %v3410_v1  ;;  %v1302_v29 = vmax.f32 %v1298_v21, %v3410_v1  ;;  %v1659_v30 = vunpack.c.h.bf16 %v3104_v10  ;;  %v998_v31 = vunpack.c.l.bf16 %v3090_v16 }
  0x23   :  { %2943 = vmatpush.bf16.msrb.mxu3 %v3290_v11  ;;  %2842 = vmatpush.bf16.msra.mxu0 %v3250_v22  ;;  %v3254_v32 = vor.u32 %v3331_v23, %v3251_v27  ;;  %v3273_v33 = vld [vmem:[#allocation22 + $0xe8] sm:$0xf]  ;;  %1726 = vst [vmem:[#allocation22 + $0xb4] sm:$0xf] %v1723_v18  ;;  %v1286_v34 = vmax.f32 %v1282_v24, %v3410_v1  ;;  %v1136_v36 = vunpack.c.h.bf16 %v3090_v16  ;;  %v985_v58 = vunpack.c.l.bf16 %v3089_v42  ;;  %v3081_v23 = vld [vmem:[%s3759_s5 + $0x10] sm:$0xff]  }
  0x24   :  { %v1436_v35 = vmax.f32 %v3410_v1, %v1399_v25  ;;  %v3338_v37 = vld [vmem:[#allocation22 + $0xf4] sm:$0xf0]  ;;  %1884 = vst [vmem:[#allocation22 + $0xc8] sm:$0xf] %v1881_v14  ;;  %v1424_v38 = vmax.f32 %v1420_v28, %v3410_v1  ;;  %v1306_v39 = vmax.f32 %v1302_v29, %v3410_v1  ;;  %v1598_v40 = vmax.f32 %v3410_v1, %v1521_v26 }
  0x25   :  { %v1736_v41 = vmax.f32 %v3410_v1, %v1659_v30  ;;  %2880 = vmatpush.bf16.msra.mxu2 %v3254_v32  ;;  %v3274_v43 = vor.u32 %v3338_v37, %v3273_v33  ;;  %2022 = vst [vmem:[#allocation22 + $0xd8] sm:$0xf] %v2019_v19  ;;  %v1289_v44 = vpack.c.bf16 0.0, %v1286_v34  ;;  %v1002_v46 = vmax.f32 %v998_v31, %v3410_v1  ;;  %v3088_v28 = vld [vmem:[%s3758_s4 + $0x18] sm:$0xff]  }
  0x26   :  { %v1440_v45 = vmax.f32 %v1436_v35, %v3410_v1  ;;  %v1427_v48 = vpack.c.bf16 0.0, %v1424_v38  ;;  %v1309_v49 = vpack.c.bf16 0.0, %v1306_v39  ;;  %v1602_v50 = vmax.f32 %v1598_v40, %v3410_v1  ;;  %v3074_v39 = vld [vmem:[%s3760_s6 + $0x8] sm:$0xff]  }
  0x27   :  { %v1740_v51 = vmax.f32 %v1736_v41, %v3410_v1  ;;  %2917 = vmatpush.bf16.msrb.mxu1 %v3274_v43  ;;  %v3233_v54 = vld [vmem:[#allocation22 + $0xa0] sm:$0xf]  ;;  %1292 = vst [vmem:[#allocation22 + $0x80] sm:$0xf] %v1289_v44  ;;  %v1006_v56 = vmax.f32 %v1002_v46, %v3410_v1  ;;  %v1140_v57 = vmax.f32 %v1136_v36, %v3410_v1  ;;  %v1123_v63 = vunpack.c.h.bf16 %v3089_v42 }
  0x28   :  { %v1444_v55 = vmax.f32 %v1440_v45, %v3410_v1  ;;  %v3329_v60 = vld [vmem:[#allocation22 + $0xac] sm:$0xf0]  ;;  %1430 = vst [vmem:[#allocation22 + $0x90] sm:$0xf] %v1427_v48  ;;  %v1605_v61 = vpack.c.bf16 0.0, %v1602_v50  ;;  %v1245_v0 = vunpack.c.l.bf16 %v3096_v47  ;;  %v1022_v8 = vmax.f32 %v3410_v1, %v985_v58 }
  0x29   :  { %v1743_v62 = vpack.c.bf16 0.0, %v1740_v51  ;;  %v3234_v2 = vor.u32 %v3329_v60, %v3233_v54  ;;  %v3327_v3 = vld [vmem:[#allocation22 + $0xa4] sm:$0xf]  ;;  %1312 = vst [vmem:[#allocation22 + $0x84] sm:$0xf] %v1309_v49  ;;  %v1010_v5 = vmax.f32 %v1006_v56, %v3410_v1  ;;  %v1144_v6 = vmax.f32 %v1140_v57, %v3410_v1 }
  0x2a   :  { %v1447_v4 = vpack.c.bf16 0.0, %v1444_v55  ;;  %v3235_v7 = vld [vmem:[#allocation22 + $0xb0] sm:$0xf0]  ;;  %1608 = vst [vmem:[#allocation22 + $0xa8] sm:$0xf] %v1605_v61  ;;  %v1160_v9 = vmax.f32 %v3410_v1, %v1123_v63  ;;  %v1322_v10 = vmax.f32 %v3410_v1, %v1245_v0  ;;  %v1383_v11 = vunpack.c.h.bf16 %v3096_v47 }
  0x2b   :  { %2843 = vmatpush.bf16.msra.mxu0 %v3234_v2  ;;  %v3238_v13 = vor.u32 %v3327_v3, %v3235_v7  ;;  %v3257_v14 = vld [vmem:[#allocation22 + $0xc8] sm:$0xf]  ;;  %v1013_v15 = vpack.c.bf16 0.0, %v1010_v5  ;;  %v1148_v16 = vmax.f32 %v1144_v6, %v3410_v1  ;;  %v3573_v17 = vor.u32 %v3305_v53, %v3147_v59  ;;  %1746 = vst [vmem:[#allocation22 + $0xb8] sm:$0xf] %v1743_v62 }
  0x2c   :  { %1450 = vst [vmem:[#allocation22 + $0x94] sm:$0xf] %v1447_v4  ;;  %v3334_v18 = vld [vmem:[#allocation22 + $0xd4] sm:$0xf0]  ;;  %v1026_v19 = vmax.f32 %v1022_v8, %v3410_v1  ;;  %v1164_v20 = vmax.f32 %v1160_v9, %v3410_v1  ;;  %v1326_v21 = vmax.f32 %v1322_v10, %v3410_v1  ;;  %v1460_v22 = vmax.f32 %v3410_v1, %v1383_v11  ;;  %v3073_v3 = vld [vmem:[%s3759_s5 + $0x8] sm:$0xff]  }
  0x2d   :  { %2881 = vmatpush.bf16.msra.mxu2 %v3238_v13  ;;  %v3258_v24 = vor.u32 %v3334_v18, %v3257_v14  ;;  %1016 = vst [vmem:[#allocation22 + $0x60] sm:$0xf] %v1013_v15  ;;  %v1151_v25 = vpack.c.bf16 0.0, %v1148_v16  ;;  %v722_v26 = vunpack.c.l.bf16 %v3082_v12  ;;  %v860_v27 = vunpack.c.h.bf16 %v3082_v12  ;;  %v3080_v13 = vld [vmem:[%s3758_s4 + $0x10] sm:$0xff]  }
  0x2e   :  { %v3217_v29 = vld [vmem:[#allocation22 + $0x80] sm:$0xf]  ;;  %v1030_v30 = vmax.f32 %v1026_v19, %v3410_v1  ;;  %v1168_v31 = vmax.f32 %v1164_v20, %v3410_v1  ;;  %v1329_v32 = vpack.c.bf16 0.0, %v1326_v21  ;;  %v1464_v33 = vmax.f32 %v1460_v22, %v3410_v1  ;;  %3296 = vmatmul.msk.bf16.gmra.mxu1 %vm2834_vm0, %v3573_v17 }
  0x2f   :  { %2918 = vmatpush.bf16.msrb.mxu1 %v3258_v24  ;;  %v3325_v34 = vld [vmem:[#allocation22 + $0x8c] sm:$0xf0]  ;;  %1154 = vst [vmem:[#allocation22 + $0x70] sm:$0xf] %v1151_v25  ;;  %v726_v35 = vmax.f32 %v722_v26, %v3410_v1  ;;  %v864_v36 = vmax.f32 %v860_v27, %v3410_v1  ;;  %v709_v37 = vunpack.c.l.bf16 %v3081_v23  ;;  %v847_v38 = vunpack.c.h.bf16 %v3081_v23  ;;  %v179_v19 = vld [vmem:[%s3760_s6] sm:$0xff]  }
  0x30   :  { %v3218_v40 = vor.u32 %v3325_v34, %v3217_v29  ;;  %v3323_v41 = vld [vmem:[#allocation22 + $0x84] sm:$0xf]  ;;  %v1033_v42 = vpack.c.bf16 0.0, %v1030_v30  ;;  %v1171_v43 = vpack.c.bf16 0.0, %v1168_v31  ;;  %1332 = vst [vmem:[#allocation22 + $0x88] sm:$0xf] %v1329_v32  ;;  %v969_v44 = vunpack.c.l.bf16 %v3088_v28 }
  0x31   :  { %v3241_v45 = vld [vmem:[#allocation22 + $0xa8] sm:$0xf]  ;;  %v1467_v46 = vpack.c.bf16 0.0, %v1464_v33  ;;  %v730_v47 = vmax.f32 %v726_v35, %v3410_v1  ;;  %v868_v48 = vmax.f32 %v864_v36, %v3410_v1  ;;  %v746_v49 = vmax.f32 %v3410_v1, %v709_v37  ;;  %v167_v35 = vld [vmem:[%s3759_s5] sm:$0xff]  }
  0x32   :  { %2844 = vmatpush.bf16.msra.mxu0 %v3218_v40  ;;  %1036 = vst [vmem:[#allocation22 + $0x64] sm:$0xf] %v1033_v42  ;;  %3298 = vmatmul.msk.bf16.gmra.mxu3 %vm2834_vm0, %v3573_v17  ;;  %v884_v51 = vmax.f32 %v3410_v1, %v847_v38  ;;  %v1046_v53 = vmax.f32 %v3410_v1, %v969_v44  ;;  %v1107_v54 = vunpack.c.h.bf16 %v3088_v28  ;;  %v446_v55 = vunpack.c.l.bf16 %v3074_v39  ;;  %v3330_v57 = vld [vmem:[#allocation22 + $0xb4] sm:$0xf0] }
  0x33   :  { %v3219_v50 = vld [vmem:[#allocation22 + $0x90] sm:$0xf0]  ;;  %1174 = vst [vmem:[#allocation22 + $0x74] sm:$0xf] %v1171_v43  ;;  %v734_v58 = vmax.f32 %v730_v47, %v3410_v1  ;;  %v872_v59 = vmax.f32 %v868_v48, %v3410_v1  ;;  %v750_v60 = vmax.f32 %v746_v49, %v3410_v1  ;;  %v3242_v61 = vor.u32 %v3330_v57, %v3241_v45 }
  0x34   :  { %v3222_v56 = vor.u32 %v3323_v41, %v3219_v50  ;;  %v3201_v62 = vld [vmem:[#allocation22 + $0x60] sm:$0xf]  ;;  %1470 = vst [vmem:[#allocation22 + $0x98] sm:$0xf] %v1467_v46  ;;  %v888_v63 = vmax.f32 %v884_v51, %v3410_v1  ;;  %v1050_v0 = vmax.f32 %v1046_v53, %v3410_v1  ;;  %v1184_v2 = vmax.f32 %v3410_v1, %v1107_v54 }
  0x35   :  { %v737_v4 = vpack.c.bf16 0.0, %v734_v58  ;;  %v875_v5 = vpack.c.bf16 0.0, %v872_v59  ;;  %v754_v6 = vmax.f32 %v750_v60, %v3410_v1  ;;  %v450_v7 = vmax.f32 %v446_v55, %v3410_v1  ;;  %2919 = vmatpush.bf16.msrb.mxu1 %v3242_v61  ;;  %v3072_v55 = vld [vmem:[%s3758_s4 + $0x8] sm:$0xff]  }
  0x36   :  { %2882 = vmatpush.bf16.msra.mxu2 %v3222_v56  ;;  %v3321_v8 = vld [vmem:[#allocation22 + $0x6c] sm:$0xf0]  ;;  %v892_v9 = vmax.f32 %v888_v63, %v3410_v1  ;;  %v1053_v10 = vpack.c.bf16 0.0, %v1050_v0  ;;  %v1188_v11 = vmax.f32 %v1184_v2, %v3410_v1  ;;  %v584_v12 = vunpack.c.h.bf16 %v3074_v39  ;;  %v3137_v56 = vld [vmem:[%s3754_s0] sm:$0xf] }
  0x37   :  { %v3202_v14 = vor.u32 %v3321_v8, %v3201_v62  ;;  %740 = vst [vmem:[#allocation22 + $0x40] sm:$0xf] %v737_v4  ;;  %v757_v15 = vpack.c.bf16 0.0, %v754_v6  ;;  %v454_v16 = vmax.f32 %v450_v7, %v3410_v1  ;;  %v433_v18 = vunpack.c.l.bf16 %v3073_v3  ;;  %v3225_v25 = vld [vmem:[#allocation22 + $0x88] sm:$0xf] }
  0x38   :  { %878 = vst [vmem:[#allocation22 + $0x50] sm:$0xf] %v875_v5  ;;  %v895_v20 = vpack.c.bf16 0.0, %v892_v9  ;;  %v1191_v21 = vpack.c.bf16 0.0, %v1188_v11  ;;  %v588_v22 = vmax.f32 %v584_v12, %v3410_v1  ;;  %v571_v23 = vunpack.c.h.bf16 %v3073_v3  ;;  %v3304_v62 = vld [vmem:[%s3754_s0 + $0x4] sm:$0xf0] }
  0x39   :  { %2845 = vmatpush.bf16.msra.mxu0 %v3202_v14  ;;  %v3319_v24 = vld [vmem:[#allocation22 + $0x64] sm:$0xf]  ;;  %760 = vst [vmem:[#allocation22 + $0x44] sm:$0xf] %v757_v15  ;;  %v458_v26 = vmax.f32 %v454_v16, %v3410_v1  ;;  %v470_v27 = vmax.f32 %v3410_v1, %v433_v18  ;;  %v693_v28 = vunpack.c.l.bf16 %v3080_v13  ;;  %v831_v29 = vunpack.c.h.bf16 %v3080_v13 }
  0x3a   :  { %v3203_v30 = vld [vmem:[#allocation22 + $0x70] sm:$0xf0]  ;;  %898 = vst [vmem:[#allocation22 + $0x54] sm:$0xf] %v895_v20  ;;  %v592_v31 = vmax.f32 %v588_v22, %v3410_v1  ;;  %v608_v32 = vmax.f32 %v3410_v1, %v571_v23  ;;  %v180_v33 = vunpack.c.l.bf16 %v179_v19  ;;  %v308_v34 = vunpack.c.h.bf16 %v179_v19  ;;  %v3119_v22 = vld [vmem:[%s3756_s2 + $0x38] sm:$0xff]  }
  0x3b   :  { %v3206_v36 = vor.u32 %v3319_v24, %v3203_v30  ;;  %v3326_v37 = vld [vmem:[#allocation22 + $0x94] sm:$0xf0]  ;;  %1056 = vst [vmem:[#allocation22 + $0x68] sm:$0xf] %v1053_v10  ;;  %v461_v38 = vpack.c.bf16 0.0, %v458_v26  ;;  %v474_v39 = vmax.f32 %v470_v27, %v3410_v1  ;;  %v770_v40 = vmax.f32 %v3410_v1, %v693_v28  ;;  %v152_v10 = vld [vmem:[%s3758_s4] sm:$0xff]  }
  0x3c   :  { %v3226_v41 = vor.u32 %v3326_v37, %v3225_v25  ;;  %1194 = vst [vmem:[#allocation22 + $0x78] sm:$0xf] %v1191_v21  ;;  %v596_v42 = vmax.f32 %v592_v31, %v3410_v1  ;;  %v612_v43 = vmax.f32 %v608_v32, %v3410_v1  ;;  %v908_v44 = vmax.f32 %v3410_v1, %v831_v29  ;;  %v3127_v27 = vld [vmem:[%s3756_s2 + $0x40] sm:$0xff]  }
  0x3d   :  { %2883 = vmatpush.bf16.msra.mxu2 %v3206_v36  ;;  %464 = vst [vmem:[#allocation22 + $0x20] sm:$0xf] %v461_v38  ;;  %v478_v45 = vmax.f32 %v474_v39, %v3410_v1  ;;  %v774_v46 = vmax.f32 %v770_v40, %v3410_v1  ;;  %v184_v47 = vmax.f32 %v180_v33, %v3410_v1  ;;  %v168_v48 = vunpack.c.l.bf16 %v167_v35 }
  0x3e   :  { %2920 = vmatpush.bf16.msrb.mxu1 %v3226_v41  ;;  %v3185_v49 = vld [vmem:[#allocation22 + $0x40] sm:$0xf]  ;;  %v599_v50 = vpack.c.bf16 0.0, %v596_v42  ;;  %v616_v51 = vmax.f32 %v612_v43, %v3410_v1  ;;  %v912_v53 = vmax.f32 %v908_v44, %v3410_v1  ;;  %v312_v54 = vmax.f32 %v308_v34, %v3410_v1 }
  0x3f   :  { %v3317_v57 = vld [vmem:[#allocation22 + $0x4c] sm:$0xf0]  ;;  %v481_v58 = vpack.c.bf16 0.0, %v478_v45  ;;  %v777_v59 = vpack.c.bf16 0.0, %v774_v46  ;;  %v188_v60 = vmax.f32 %v184_v47, %v3410_v1  ;;  %v200_v61 = vmax.f32 %v3410_v1, %v168_v48  ;;  %v3103_v48 = vld [vmem:[%s3756_s2 + $0x28] sm:$0xff]  }
  0x40   :  { %v3186_v63 = vor.u32 %v3317_v57, %v3185_v49  ;;  %v3315_v0 = vld [vmem:[#allocation22 + $0x44] sm:$0xf]  ;;  %602 = vst [vmem:[#allocation22 + $0x30] sm:$0xf] %v599_v50  ;;  %v619_v2 = vpack.c.bf16 0.0, %v616_v51  ;;  %v915_v3 = vpack.c.bf16 0.0, %v912_v53  ;;  %v316_v4 = vmax.f32 %v312_v54, %v3410_v1 }
  0x41   :  { %v3187_v5 = vld [vmem:[#allocation22 + $0x50] sm:$0xf0]  ;;  %484 = vst [vmem:[#allocation22 + $0x24] sm:$0xf] %v481_v58  ;;  %v192_v6 = vmax.f32 %v188_v60, %v3410_v1  ;;  %v204_v7 = vmax.f32 %v200_v61, %v3410_v1  ;;  %v295_v8 = vunpack.c.h.bf16 %v167_v35  ;;  %v417_v9 = vunpack.c.l.bf16 %v3072_v55 }
  0x42   :  { %2846 = vmatpush.bf16.msra.mxu0 %v3186_v63  ;;  %v3190_v11 = vor.u32 %v3315_v0, %v3187_v5  ;;  %v3209_v12 = vld [vmem:[#allocation22 + $0x68] sm:$0xf]  ;;  %622 = vst [vmem:[#allocation22 + $0x34] sm:$0xf] %v619_v2  ;;  %v320_v13 = vmax.f32 %v316_v4, %v3410_v1  ;;  %v555_v14 = vunpack.c.h.bf16 %v3072_v55  ;;  %v3659_v15 = vor.u32 %v3304_v62, %v3137_v56  ;;  %v3111_v47 = vld [vmem:[%s3756_s2 + $0x30] sm:$0xff]   ;;  %v3095_v55 = vld [vmem:[%s3756_s2 + $0x20] sm:$0xff]  }
  0x43   :  { %v3322_v16 = vld [vmem:[#allocation22 + $0x74] sm:$0xf0]  ;;  %780 = vst [vmem:[#allocation22 + $0x48] sm:$0xf] %v777_v59  ;;  %v194_v18 = vpack.c.bf16 0.0, %v192_v6  ;;  %v208_v19 = vmax.f32 %v204_v7, %v3410_v1  ;;  %v332_v20 = vmax.f32 %v3410_v1, %v295_v8  ;;  %v494_v21 = vmax.f32 %v3410_v1, %v417_v9  ;;  %3299 = vmatmul.msk.bf16.vlgmr.msrb.gmra.mxu3 %vm2834_vm0, %v3466_v52 }
  0x44   :  { %2884 = vmatpush.bf16.msra.mxu2 %v3190_v11  ;;  %v3210_v23 = vor.u32 %v3322_v16, %v3209_v12  ;;  %918 = vst [vmem:[#allocation22 + $0x58] sm:$0xf] %v915_v3  ;;  %v323_v24 = vpack.c.bf16 0.0, %v320_v13  ;;  %v632_v25 = vmax.f32 %v3410_v1, %v555_v14  ;;  %v153_v26 = vunpack.c.l.bf16 %v152_v10  ;;  %v3169_v28 = vld [vmem:[#allocation22 + $0x20] sm:$0xf]  ;;  %v3087_v13 = vld [vmem:[%s3756_s2 + $0x18] sm:$0xff]  }
  0x45   :  { %197 = vst [vmem:[#allocation22] sm:$0xf] %v194_v18  ;;  %v211_v29 = vpack.c.bf16 0.0, %v208_v19  ;;  %v336_v30 = vmax.f32 %v332_v20, %v3410_v1  ;;  %v498_v31 = vmax.f32 %v494_v21, %v3410_v1  ;;  %v279_v32 = vunpack.c.h.bf16 %v152_v10  ;;  %v3079_v20 = vld [vmem:[%s3756_s2 + $0x10] sm:$0xff]  }
  0x46   :  { %2921 = vmatpush.bf16.msrb.mxu1 %v3210_v23  ;;  %326 = vst [vmem:[#allocation22 + $0x10] sm:$0xf] %v323_v24  ;;  %v636_v33 = vmax.f32 %v632_v25, %v3410_v1  ;;  %v221_v34 = vmax.f32 %v3410_v1, %v153_v26  ;;  %v2057_v35 = vunpack.c.l.bf16 %v3119_v22  ;;  %v2195_v36 = vunpack.c.h.bf16 %v3119_v22 }
  0x47   :  { %v3313_v37 = vld [vmem:[#allocation22 + $0x2c] sm:$0xf0]  ;;  %214 = vst [vmem:[#allocation22 + $0x4] sm:$0xf] %v211_v29  ;;  %v340_v38 = vmax.f32 %v336_v30, %v3410_v1  ;;  %v501_v39 = vpack.c.bf16 0.0, %v498_v31  ;;  %v356_v40 = vmax.f32 %v3410_v1, %v279_v32  ;;  %v2333_v41 = vunpack.c.l.bf16 %v3127_v27  ;;  %v3071_v30 = vld [vmem:[%s3756_s2 + $0x8] sm:$0xff]  }
  0x48   :  { %v3170_v42 = vor.u32 %v3313_v37, %v3169_v28  ;;  %v3311_v43 = vld [vmem:[#allocation22 + $0x24] sm:$0xf]  ;;  %v639_v44 = vpack.c.bf16 0.0, %v636_v33  ;;  %v225_v45 = vmax.f32 %v221_v34, %v3410_v1  ;;  %v2174_v46 = vmax.f32 %v3410_v1, %v2057_v35 }
  0x49   :  { %v3171_v49 = vld [vmem:[#allocation22 + $0x30] sm:$0xf0]  ;;  %v343_v50 = vpack.c.bf16 0.0, %v340_v38  ;;  %504 = vst [vmem:[#allocation22 + $0x28] sm:$0xf] %v501_v39  ;;  %v360_v51 = vmax.f32 %v356_v40, %v3410_v1  ;;  %v2312_v53 = vmax.f32 %v3410_v1, %v2195_v36  ;;  %v2450_v54 = vmax.f32 %v3410_v1, %v2333_v41  ;;  %v137_v41 = vld [vmem:[%s3756_s2] sm:$0xff]  }
  0x4a   :  { %2847 = vmatpush.bf16.msra.mxu0 %v3170_v42  ;;  %v3174_v56 = vor.u32 %v3311_v43, %v3171_v49  ;;  %v3193_v57 = vld [vmem:[#allocation22 + $0x48] sm:$0xf]  ;;  %642 = vst [vmem:[#allocation22 + $0x38] sm:$0xf] %v639_v44  ;;  %v228_v58 = vpack.c.bf16 0.0, %v225_v45  ;;  %v2177_v59 = vpack.c.bf16 0.0, %v2174_v46  ;;  %v2471_v60 = vunpack.c.h.bf16 %v3127_v27 }
  0x4b   :  { %v3318_v61 = vld [vmem:[#allocation22 + $0x54] sm:$0xf0]  ;;  %346 = vst [vmem:[#allocation22 + $0x14] sm:$0xf] %v343_v50  ;;  %v363_v62 = vpack.c.bf16 0.0, %v360_v51  ;;  %v2315_v63 = vpack.c.bf16 0.0, %v2312_v53  ;;  %v1781_v0 = vunpack.c.l.bf16 %v3111_v47  ;;  %v1919_v2 = vunpack.c.h.bf16 %v3111_v47 }
  0x4c   :  { %2885 = vmatpush.bf16.msra.mxu2 %v3174_v56  ;;  %v3194_v3 = vor.u32 %v3318_v61, %v3193_v57  ;;  %v3153_v4 = vld [vmem:[#allocation22] sm:$0xf]  ;;  %231 = vst [vmem:[#allocation22 + $0x8] sm:$0xf] %v228_v58  ;;  %v2453_v5 = vpack.c.bf16 0.0, %v2450_v54  ;;  %v2588_v6 = vmax.f32 %v3410_v1, %v2471_v60  ;;  %v1505_v7 = vunpack.c.l.bf16 %v3103_v48 }
  0x4d   :  { %v3309_v8 = vld [vmem:[#allocation22 + $0xc] sm:$0xf0]  ;;  %366 = vst [vmem:[#allocation22 + $0x18] sm:$0xf] %v363_v62  ;;  %v1898_v9 = vmax.f32 %v3410_v1, %v1781_v0  ;;  %v2036_v10 = vmax.f32 %v3410_v1, %v1919_v2  ;;  %v1643_v11 = vunpack.c.h.bf16 %v3103_v48  ;;  %v1229_v12 = vunpack.c.l.bf16 %v3095_v55 }
  0x4e   :  { %2922 = vmatpush.bf16.msrb.mxu1 %v3194_v3  ;;  %v3154_v14 = vor.u32 %v3309_v8, %v3153_v4  ;;  %2180 = vst [vmem:[#allocation22 + $0xec] sm:$0xf] %v2177_v59  ;;  %v2591_v16 = vpack.c.bf16 0.0, %v2588_v6  ;;  %v1622_v18 = vmax.f32 %v3410_v1, %v1505_v7  ;;  %v1367_v19 = vunpack.c.h.bf16 %v3095_v55  ;;  %v3307_v21 = vld [vmem:[#allocation22 + $0x4] sm:$0xf] }
  0x4f   :  { %2318 = vst [vmem:[#allocation22 + $0xfc] sm:$0xf] %v2315_v63  ;;  %v1901_v22 = vpack.c.bf16 0.0, %v1898_v9  ;;  %v2039_v23 = vpack.c.bf16 0.0, %v2036_v10  ;;  %v1760_v24 = vmax.f32 %v3410_v1, %v1643_v11  ;;  %v1346_v25 = vmax.f32 %v3410_v1, %v1229_v12  ;;  %v3145_v9 = vld [vmem:[%s3754_s0 + $0x10] sm:$0xf] }
  0x50   :  { %2848 = vmatpush.bf16.msra.mxu0 %v3154_v14  ;;  %v3177_v26 = vld [vmem:[#allocation22 + $0x28] sm:$0xf]  ;;  %2456 = vst [vmem:[#allocation22 + $0x10c] sm:$0xf] %v2453_v5  ;;  %v1625_v27 = vpack.c.bf16 0.0, %v1622_v18  ;;  %v1484_v28 = vmax.f32 %v3410_v1, %v1367_v19  ;;  %v953_v29 = vunpack.c.l.bf16 %v3087_v13  ;;  %v1091_v34 = vunpack.c.h.bf16 %v3087_v13  ;;  %v3007_v14 = vld [vmem:[%s3755_s1 + $0x10] sm:$0xff] }
  0x51   :  { %v3314_v31 = vld [vmem:[#allocation22 + $0x34] sm:$0xf0]  ;;  %2594 = vst [vmem:[#allocation22 + $0x11c] sm:$0xf] %v2591_v16  ;;  %v1763_v32 = vpack.c.bf16 0.0, %v1760_v24  ;;  %v1349_v33 = vpack.c.bf16 0.0, %v1346_v25  ;;  %v677_v35 = vunpack.c.l.bf16 %v3079_v20  ;;  %v815_v40 = vunpack.c.h.bf16 %v3079_v20 }
  0x52   :  { %v3155_v36 = vld [vmem:[#allocation22 + $0x10] sm:$0xf0]  ;;  %v3178_v37 = vor.u32 %v3314_v31, %v3177_v26  ;;  %1904 = vst [vmem:[#allocation22 + $0xcc] sm:$0xf] %v1901_v22  ;;  %v1487_v38 = vpack.c.bf16 0.0, %v1484_v28  ;;  %v1070_v39 = vmax.f32 %v3410_v1, %v953_v29  ;;  %v1208_v44 = vmax.f32 %v3410_v1, %v1091_v34  ;;  %v3005_v19 = vld [vmem:[%s3755_s1] sm:$0xff] }
  0x53   :  { %v3158_v42 = vor.u32 %v3307_v21, %v3155_v36  ;;  %2849 = vmatmul.bf16.vlgmr.msra.gmra.mxu0 %v3659_v15  ;;  %v3161_v43 = vld [vmem:[#allocation22 + $0x8] sm:$0xf]  ;;  %2042 = vst [vmem:[#allocation22 + $0xdc] sm:$0xf] %v2039_v23  ;;  %3300 = vmatmul.msk.bf16.gmra.mxu3 %vm2834_vm0, %v3573_v17  ;;  %v794_v45 = vmax.f32 %v3410_v1, %v677_v35  ;;  %v401_v49 = vunpack.c.l.bf16 %v3071_v30  ;;  %v539_v50 = vunpack.c.h.bf16 %v3071_v30  ;;  %v3306_v10 = vld [vmem:[%s3754_s0 + $0x14] sm:$0xf0] }
  0x54   :  { %2923 = vmatpush.bf16.msrb.mxu1 %v3178_v37  ;;  %v3310_v46 = vld [vmem:[#allocation22 + $0x14] sm:$0xf0]  ;;  %1628 = vst [vmem:[#allocation22 + $0xac] sm:$0xf] %v1625_v27  ;;  %v1073_v47 = vpack.c.bf16 0.0, %v1070_v39  ;;  %v932_v48 = vmax.f32 %v3410_v1, %v815_v40  ;;  %v1211_v54 = vpack.c.bf16 0.0, %v1208_v44  ;;  %v138_v55 = vunpack.c.l.bf16 %v137_v41 }
  0x55   :  { %2886 = vmatpush.bf16.msra.mxu2 %v3158_v42  ;;  %v3162_v51 = vor.u32 %v3310_v46, %v3161_v43  ;;  %v3336_v53 = vld [vmem:[#allocation22 + $0xec] sm:$0xf]  ;;  %1766 = vst [vmem:[#allocation22 + $0xbc] sm:$0xf] %v1763_v32  ;;  %v797_v57 = vpack.c.bf16 0.0, %v794_v45  ;;  %v518_v58 = vmax.f32 %v3410_v1, %v401_v49  ;;  %v656_v59 = vmax.f32 %v3410_v1, %v539_v50  ;;  %v3008_v27 = vld [vmem:[%s3755_s1 + $0x18] sm:$0xff] }
  0x56   :  { %v3275_v56 = vld [vmem:[#allocation22 + $0xf8] sm:$0xf0]  ;;  %1352 = vst [vmem:[#allocation22 + $0x8c] sm:$0xf] %v1349_v33  ;;  %v263_v60 = vunpack.c.h.bf16 %v137_v41  ;;  %v935_v63 = vpack.c.bf16 0.0, %v932_v48  ;;  %v242_v0 = vmax.f32 %v3410_v1, %v138_v55  ;;  %v3366_v18 = vmov 0  }
  0x57   :  { %v3278_v61 = vor.u32 %v3336_v53, %v3275_v56  ;;  %v3340_v62 = vld [vmem:[#allocation22 + $0x10c] sm:$0xf]  ;;  %1490 = vst [vmem:[#allocation22 + $0x9c] sm:$0xf] %v1487_v38  ;;  %v521_v3 = vpack.c.bf16 0.0, %v518_v58  ;;  %v659_v7 = vpack.c.bf16 0.0, %v656_v59  ;;  %3365 = vset.pattern.permute.xlu1 %v3366_v18  ;;  %3364 = vset.pattern.permute.xlu0 %v3366_v18  ;;  %v3146_v23 = vor.u32 %v3306_v10, %v3145_v9 }
  0x58   :  { %2887 = vmatmul.bf16.vlgmr.msra.gmra.mxu2 %v3659_v15  ;;  %2924 = vmatpush.bf16.msrb.mxu1 %v3162_v51  ;;  %v3291_v2 = vld [vmem:[#allocation22 + $0x118] sm:$0xf0]  ;;  %1076 = vst [vmem:[#allocation22 + $0x6c] sm:$0xf] %v1073_v47  ;;  %v380_v4 = vmax.f32 %v3410_v1, %v263_v60  ;;  %v245_v11 = vpack.c.bf16 0.0, %v242_v0  ;;  %v3006_v28 = vld [vmem:[%s3755_s1 + $0x8] sm:$0xff] }
  0x59   :  { %2955 = vmatpush.bf16.msrb.mxu0 %v3278_v61  ;;  %v3294_v5 = vor.u32 %v3340_v62, %v3291_v2  ;;  %v3332_v6 = vld [vmem:[#allocation22 + $0xcc] sm:$0xf]  ;;  %1214 = vst [vmem:[#allocation22 + $0x7c] sm:$0xf] %v1211_v54  ;;  %3021 = vperm.xlu1 %3365, %v3007_v14  }
  0x5a   :  { %v3259_v8 = vld [vmem:[#allocation22 + $0xd8] sm:$0xf0]  ;;  %800 = vst [vmem:[#allocation22 + $0x4c] sm:$0xf] %v797_v57  ;;  %v383_v12 = vpack.c.bf16 0.0, %v380_v4  ;;  %3011 = vperm.xlu0 %3364, %v3005_v19  }
  0x5b   :  { %2925 = vmatmul.bf16.vlgmr.msrb.gmra.mxu1 %v3659_v15  ;;  %2981 = vmatpush.bf16.msrb.mxu2 %v3294_v5  ;;  %v3262_v1 = vor.u32 %v3332_v6, %v3259_v8  ;;  %v3328_v13 = vld [vmem:[#allocation22 + $0xac] sm:$0xf]  ;;  %938 = vst [vmem:[#allocation22 + $0x5c] sm:$0xf] %v935_v63 }
  0x5c   :  { %3354 = vmatpush.bf16.msra.mxu1 %v3278_v61  ;;  %3362 = vmatpush.bf16.msra.mxu3 %v3294_v5  ;;  %v3243_v16 = vld [vmem:[#allocation22 + $0xb8] sm:$0xf0]  ;;  %524 = vst [vmem:[#allocation22 + $0x2c] sm:$0xf] %v521_v3 }
  0x5d   :  { %2956 = vmatpush.bf16.msrb.mxu0 %v3262_v1  ;;  %v3246_v20 = vor.u32 %v3328_v13, %v3243_v16  ;;  %662 = vst [vmem:[#allocation22 + $0x3c] sm:$0xf] %v659_v7  ;;  %v3324_v21 = vld [vmem:[#allocation22 + $0x8c] sm:$0xf] }
  0x5e   :  { %v3227_v22 = vld [vmem:[#allocation22 + $0x98] sm:$0xf0]  ;;  %248 = vst [vmem:[#allocation22 + $0xc] sm:$0xf] %v245_v11 }
  0x5f   :  { %386 = vst [vmem:[#allocation22 + $0x1c] sm:$0xf] %v383_v12  ;;  %v3230_v24 = vor.u32 %v3324_v21, %v3227_v22  ;;  %v3320_v25 = vld [vmem:[#allocation22 + $0x6c] sm:$0xf] }
  0x60   :  { %3355 = vmatpush.bf16.msra.mxu1 %v3262_v1  ;;  %v3211_v26 = vld [vmem:[#allocation22 + $0x78] sm:$0xf0] }
  0x61   :  { %2957 = vmatpush.bf16.msrb.mxu0 %v3246_v20  ;;  %v3214_v29 = vor.u32 %v3320_v25, %v3211_v26  ;;  %v3316_v30 = vld [vmem:[#allocation22 + $0x4c] sm:$0xf]  ;;  %3026 = vperm.xlu1 %3365, %v3008_v27  }
  0x62   :  { %v3195_v31 = vld [vmem:[#allocation22 + $0x58] sm:$0xf0]  ;;  %3016 = vperm.xlu0 %3364, %v3006_v28  }
  0x63   :  { %2854 = vmatmul.bf16.gmra.mxu0 %v3146_v23  ;;  %3302 = vmatmul.msk.bf16.vlgmr.msra.gmra.mxu3 %vm2834_vm0, %v3573_v17  ;;  %v3198_v32 = vor.u32 %v3316_v30, %v3195_v31  ;;  %v3312_v17 = vld [vmem:[#allocation22 + $0x2c] sm:$0xf] }
  0x64   :  { %3356 = vmatpush.bf16.msra.mxu1 %v3246_v20  ;;  %v3179_v33 = vld [vmem:[#allocation22 + $0x38] sm:$0xf0] }
  0x65   :  { %2958 = vmatpush.bf16.msrb.mxu0 %v3230_v24  ;;  %v3182_v34 = vor.u32 %v3312_v17, %v3179_v33  ;;  %v3308_v35 = vld [vmem:[#allocation22 + $0xc] sm:$0xf] }
  0x66   :  { %v3163_v36 = vld [vmem:[#allocation22 + $0x18] sm:$0xf0] }
  0x67   :  { %v3166_v37 = vor.u32 %v3308_v35, %v3163_v36 }
  0x68   :  { %3357 = vmatpush.bf16.msra.mxu1 %v3230_v24  ;;  %2892 = vmatmul.bf16.gmra.mxu2 %v3146_v23 }
  0x69   :  { %2959 = vmatpush.bf16.msrb.mxu0 %v3214_v29 }
  0x6b   :  { %2930 = vmatmul.bf16.gmra.mxu1 %v3146_v23 }
  0x6c   :  { %3358 = vmatpush.bf16.msra.mxu1 %v3214_v29 }
  0x6d   :  { %2960 = vmatpush.bf16.msrb.mxu0 %v3198_v32 }
  0x70   :  { %3359 = vmatpush.bf16.msra.mxu1 %v3198_v32 }
  0x71   :  { %2961 = vmatpush.bf16.msrb.mxu0 %v3182_v34 }
  0x74   :  { %3360 = vmatpush.bf16.msra.mxu1 %v3182_v34 }
  0x75   :  { %2962 = vmatpush.bf16.msrb.mxu0 %v3166_v37 }
  0x78   :  { %3361 = vmatpush.bf16.msra.mxu1 %v3166_v37  ;;  %3301 = vmatmul.msk.bf16.vlgmr.msrb.gmra.mxu2 %vm2834_vm0, %v3466_v52 }
  0x79   :  { %2963 = vmatmul.bf16.vlgmr.msrb.gmra.mxu0 %v3659_v15 }
  0x7b   :  { %2968 = vmatmul.bf16.vlgmr.msra.gmra.mxu1 %v3146_v23 }
  0x9b   :  { %v2869_v40 = vpop.f32.mrf.mxu1 }
  0xa3   :  { %v2871_v42 = vpop.f32.mrf.mxu1 }
  0xa5   :  { %v2907_v38 = vpop.f32.mrf.mxu3 }
  0xab   :  { %v2874_v44 = vpop.f32.mrf.mxu1 }
  0xad   :  { %v2909_v39 = vpop.f32.mrf.mxu3 }
  0xb3   :  { %v2876_v46 = vpop.f32.mrf.mxu1 }
  0xb5   :  { %v2912_v41 = vpop.f32.mrf.mxu3 }
  0xbd   :  { %v2914_v43 = vpop.f32.mrf.mxu3 }
  0xc6   :  { %v2945_v45 = vpop.f32.mrf.mxu3 }
  0xcb   :  { %v3022_v7 = vpop.permute.xlu1 %3021 }
  0xcc   :  { %v3012_v16 = vpop.permute.xlu0 %3011 }
  0xce   :  { %v2947_v48 = vpop.f32.mrf.mxu3 }
  0xd0   :  { %v2850_v47 = vpop.f32.mrf.mxu0 }
  0xd1   :  { %v2870_v51 = vadd.f32 %v2869_v40, %v2850_v47 }
  0xd3   :  { %v3027_v35 = vpop.permute.xlu1 %3026 }
  0xd6   :  { %v2950_v15 = vpop.f32.mrf.mxu3 }
  0xd8   :  { %v2926_v49 = vpop.f32.mrf.mxu1  ;;  %v2852_v54 = vpop.f32.mrf.mxu0 }
  0xd9   :  { %v2946_v12 = vadd.f32 %v2945_v45, %v2926_v49  ;;  %v2872_v23 = vadd.f32 %v2871_v42, %v2852_v54 }
  0xdb   :  { %v2888_v50 = vpop.f32.mrf.mxu2 }
  0xdc   :  { %v2908_v53 = vadd.f32 %v2907_v38, %v2888_v50 }
  0xde   :  { %v2993_v52 = vmax.f32 %v2870_v51, %v2908_v53  ;;  %v2952_v59 = vpop.f32.mrf.mxu3 }
  0xe0   :  { %v2928_v55 = vpop.f32.mrf.mxu1  ;;  %v2855_v57 = vpop.f32.mrf.mxu0  ;;  %v2997_v24 = vmax.f32 %v2993_v52, %v2946_v12 }
  0xe1   :  { %v2875_v4 = vadd.f32 %v2874_v44, %v2855_v57  ;;  %v2948_v25 = vadd.f32 %v2947_v48, %v2928_v55 }
  0xe3   :  { %v2890_v56 = vpop.f32.mrf.mxu2 }
  0xe4   :  { %v2910_v18 = vadd.f32 %v2909_v39, %v2890_v56 }
  0xe6   :  { %v2988_v0 = vpop.f32.mrf.mxu3  ;;  %v2994_v29 = vmax.f32 %v2872_v23, %v2910_v18 }
  0xe8   :  { %v2931_v58 = vpop.f32.mrf.mxu1  ;;  %v2857_v62 = vpop.f32.mrf.mxu0  ;;  %v2998_v34 = vmax.f32 %v2994_v29, %v2948_v25 }
  0xe9   :  { %v2951_v5 = vadd.f32 %v2950_v15, %v2931_v58  ;;  %v2877_v1 = vadd.f32 %v2876_v46, %v2857_v62 }
  0xeb   :  { %v2893_v60 = vpop.f32.mrf.mxu2 }
  0xec   :  { %v2913_v2 = vadd.f32 %v2912_v41, %v2893_v60  ;;  %v3017_v41 = vpop.permute.xlu0 %3016 }
  0xee   :  { %v2995_v8 = vmax.f32 %v2875_v4, %v2913_v2  ;;  %v2990_v20 = vpop.f32.mrf.mxu3 }
  0xf0   :  { %v2933_v61 = vpop.f32.mrf.mxu1  ;;  %v2999_v13 = vmax.f32 %v2995_v8, %v2951_v5 }
  0xf1   :  { %v2953_v14 = vadd.f32 %v2952_v59, %v2933_v61 }
  0xf3   :  { %v2895_v63 = vpop.f32.mrf.mxu2 }
  0xf4   :  { %v2915_v9 = vadd.f32 %v2914_v43, %v2895_v63 }
  0xf6   :  { %v2964_v6 = vpop.f32.mrf.mxu0  ;;  %v2996_v21 = vmax.f32 %v2877_v1, %v2915_v9 }
  0xf8   :  { %v2969_v3 = vpop.f32.mrf.mxu1  ;;  %v3000_v27 = vmax.f32 %v2996_v21, %v2953_v14 }
  0xf9   :  { %v2989_v11 = vadd.f32 %v2988_v0, %v2969_v3 }
  0xfb   :  { %v2983_v10 = vpop.f32.mrf.mxu2  ;;  %v3003_v22 = vmax.f32 %v2999_v13, %v2989_v11 }
  0xfc   :  { %v2984_v19 = vadd.f32 %v2983_v10, %v2964_v6 }
  0xfd   :  { %v3031_v32 = vadd.f32 %v3022_v7, %v3003_v22 }
  0xfe   :  { %v3001_v30 = vmax.f32 %v2997_v24, %v2984_v19  ;;  %v2966_v31 = vpop.f32.mrf.mxu0 }
  0xff   :  { %v3035_v40 = vmax.f32 %v3031_v32, 0.0 }
 0x100   :  { %v2971_v26 = vpop.f32.mrf.mxu1  ;;  %v3029_v38 = vadd.f32 %v3012_v16, %v3001_v30 }
 0x101   :  { %v2991_v28 = vadd.f32 %v2990_v20, %v2971_v26 }
 0x102   :  { %v3033_v45 = vmax.f32 %v3029_v38, 0.0 }
 0x103   :  { %v2985_v17 = vpop.f32.mrf.mxu2  ;;  %v3004_v33 = vmax.f32 %v3000_v27, %v2991_v28 }
 0x104   :  { %v2986_v36 = vadd.f32 %v2985_v17, %v2966_v31 }
 0x105   :  { %v3032_v37 = vadd.f32 %v3027_v35, %v3004_v33 }
 0x106   :  { %v3002_v39 = vmax.f32 %v2998_v34, %v2986_v36 }
 0x107   :  { %v3036_v42 = vmax.f32 %v3032_v37, 0.0 }
 0x108   :  { %v3030_v43 = vadd.f32 %v3017_v41, %v3002_v39 }
 0x109   :  { %v3351_v44 = vpack.c.bf16 %v3036_v42, %v3035_v40 }
 0x10a   :  { %v3034_v46 = vmax.f32 %v3030_v43, 0.0 }
 0x10b   :  { %3353 = vst [vmem:[%s3761_s7 + $0x8] sm:$0xff] %v3351_v44  }
 0x10c   :  { %v3346_v47 = vpack.c.bf16 %v3034_v46, %v3033_v45 }
 0x10e   :  { %3347 = vst [vmem:[%s3761_s7] sm:$0xff] %v3346_v47  }

// kernel: forward.8
= control target key start
LH: loop header
LB: loop body
LE: loop exit
PB: predicated region body
PF: predicated region fallthrough
CT: control target
= control target key end

     0   :  { %v523_v5 = vmov 0   ;;  %vm252_vm0 = vcmask 261120   ;;  %s682_s0 = inlined_call_operand.vmem [shape: bf16[288,128], index: 0, kind: input, shape index: {}]   ;;  %s683_s1 = inlined_call_operand.vmem [shape: bf16[48,288], index: 1, kind: input, shape index: {}]   ;;  %s684_s2 = inlined_call_operand.vmem [shape: f32[48,1], index: 2, kind: input, shape index: {}]   ;;  %s685_s3 = inlined_call_operand.vmem [shape: bf16[48,128], index: 3, kind: output, shape index: {}]  }
   0x1   :  { %v483_v0 = vld [vmem:[%s682_s0 + $0x38] sm:$0xff]  ;;  %v482_v2 = vld [vmem:[%s682_s0 + $0x30] sm:$0xff]  ;;  %v493_v3 = vld [vmem:[%s682_s0 + $0x88] sm:$0xff]  ;;  %520 = vset.pattern.permute.xlu0 %v523_v5  ;;  %521 = vset.pattern.permute.xlu1 %v523_v5 }
   0x2   :  { %v491_v1 = vld [vmem:[%s682_s0 + $0x78] sm:$0xff]  ;;  %262 = vmatpush.bf16.msra.mxu0 %v483_v0  ;;  %511 = vmatpush.bf16.msra.mxu3 %v483_v0  ;;  %v490_v4 = vld [vmem:[%s682_s0 + $0x70] sm:$0xff]  ;;  %v492_v6 = vld [vmem:[%s682_s0 + $0x80] sm:$0xff] }
   0x3   :  { %286 = vmatpush.bf16.msra.mxu1 %v491_v1  ;;  %316 = vmatpush.bf16.msra.mxu2 %v493_v3  ;;  %v366_v7 = vld [vmem:[%s683_s1 + $0x8] sm:$0xf]  ;;  %v469_v8 = vld [vmem:[%s683_s1 + $0x10] sm:$0xf0]  ;;  %v63_v12 = vld [vmem:[%s684_s2] sm:$0xff] }
   0x4   :  { %522 = vset.pattern.permute.xlu2 %v523_v5  ;;  %v481_v9 = vld [vmem:[%s682_s0 + $0x28] sm:$0xff]  ;;  %v367_v11 = vor.u32 %v469_v8, %v366_v7  ;;  %v480_v13 = vld [vmem:[%s682_s0 + $0x20] sm:$0xff]  ;;  %71 = vperm.xlu0 %520, %v63_v12   ;;  %v479_v15 = vld [vmem:[%s682_s0 + $0x18] sm:$0xff] }
   0x5   :  { %v489_v10 = vld [vmem:[%s682_s0 + $0x68] sm:$0xff]  ;;  %v488_v14 = vld [vmem:[%s682_s0 + $0x60] sm:$0xff]  ;;  %v487_v16 = vld [vmem:[%s682_s0 + $0x58] sm:$0xff] }
   0x6   :  { %263 = vmatpush.bf16.msra.mxu0 %v482_v2  ;;  %512 = vmatpush.bf16.msra.mxu3 %v482_v2  ;;  %v478_v17 = vld [vmem:[%s682_s0 + $0x10] sm:$0xff]  ;;  %v64_v19 = vld [vmem:[%s684_s2 + $0x8] sm:$0xff]  ;;  %v378_v21 = vld [vmem:[%s683_s1 + $0x20] sm:$0xf] }
   0x7   :  { %287 = vmatpush.bf16.msra.mxu1 %v490_v4  ;;  %317 = vmatpush.bf16.msra.mxu2 %v492_v6  ;;  %v65_v18 = vld [vmem:[%s684_s2 + $0x10] sm:$0xff]  ;;  %v472_v22 = vld [vmem:[%s683_s1 + $0x28] sm:$0xf0]  ;;  %v476_v26 = vld [vmem:[%s682_s0] sm:$0xff] }
   0x8   :  { %v486_v20 = vld [vmem:[%s682_s0 + $0x50] sm:$0xff]  ;;  %81 = vperm.xlu1 %521, %v65_v18   ;;  %v477_v23 = vld [vmem:[%s682_s0 + $0x8] sm:$0xff]  ;;  %v379_v25 = vor.u32 %v472_v22, %v378_v21  ;;  %v358_v27 = vld [vmem:[%s683_s1] sm:$0xf] }
   0x9   :  { %v485_v24 = vld [vmem:[%s682_s0 + $0x48] sm:$0xff]  ;;  %v66_v28 = vld [vmem:[%s684_s2 + $0x18] sm:$0xff]  ;;  %v471_v31 = vld [vmem:[%s683_s1 + $0x20] sm:$0xf0] }
   0xa   :  { %264 = vmatpush.bf16.msra.mxu0 %v481_v9  ;;  %513 = vmatpush.bf16.msra.mxu3 %v481_v9  ;;  %v468_v29 = vld [vmem:[%s683_s1 + $0x8] sm:$0xf0]  ;;  %v370_v30 = vld [vmem:[%s683_s1 + $0x18] sm:$0xf]  ;;  %v484_v32 = vld [vmem:[%s682_s0 + $0x40] sm:$0xff] }
   0xb   :  { %288 = vmatpush.bf16.msra.mxu1 %v489_v10  ;;  %464 = vmatmul.msk.bf16.vlgmr.msra.gmra.mxu2 %vm252_vm0, %v367_v11  ;;  %v467_v33 = vld [vmem:[%s683_s1 + $0x4] sm:$0xf]  ;;  %v360_v34 = vld [vmem:[%s683_s1 + $0xc] sm:$0xf0]  ;;  %v359_v35 = vor.u32 %v468_v29, %v358_v27  ;;  %v371_v36 = vor.u32 %v471_v31, %v370_v30  ;;  %v390_v39 = vld [vmem:[%s683_s1 + $0x38] sm:$0xf] }
   0xc   :  { %76 = vperm.xlu0 %520, %v64_v19   ;;  %v363_v37 = vor.u32 %v467_v33, %v360_v34  ;;  %v67_v38 = vld [vmem:[%s684_s2 + $0x20] sm:$0xff]  ;;  %v68_v42 = vld [vmem:[%s684_s2 + $0x28] sm:$0xff]  ;;  %v382_v43 = vld [vmem:[%s683_s1 + $0x30] sm:$0xf] }
   0xd   :  { %91 = vperm.xlu2 %522, %v67_v38   ;;  %v475_v40 = vld [vmem:[%s683_s1 + $0x40] sm:$0xf0]  ;;  %v474_v44 = vld [vmem:[%s683_s1 + $0x38] sm:$0xf0]  ;;  %v372_v46 = vld [vmem:[%s683_s1 + $0x24] sm:$0xf0] }
   0xe   :  { %265 = vmatpush.bf16.msra.mxu0 %v480_v13  ;;  %514 = vmatpush.bf16.msra.mxu3 %v480_v13  ;;  %v391_v41 = vor.u32 %v475_v40, %v390_v39  ;;  %v470_v45 = vld [vmem:[%s683_s1 + $0x1c] sm:$0xf]  ;;  %v383_v47 = vor.u32 %v474_v44, %v382_v43  ;;  %v473_v49 = vld [vmem:[%s683_s1 + $0x34] sm:$0xf]  ;;  %v384_v50 = vld [vmem:[%s683_s1 + $0x3c] sm:$0xf0] }
   0xf   :  { %289 = vmatpush.bf16.msra.mxu1 %v488_v14  ;;  %v375_v48 = vor.u32 %v470_v45, %v372_v46  ;;  %v387_v51 = vor.u32 %v473_v49, %v384_v50 }
  0x10   :  { %86 = vperm.xlu1 %521, %v66_v28  }
  0x12   :  { %266 = vmatpush.bf16.msra.mxu0 %v479_v15  ;;  %515 = vmatpush.bf16.msra.mxu3 %v479_v15 }
  0x13   :  { %290 = vmatpush.bf16.msra.mxu1 %v487_v16 }
  0x15   :  { %96 = vperm.xlu2 %522, %v68_v42  }
  0x16   :  { %267 = vmatpush.bf16.msra.mxu0 %v478_v17  ;;  %516 = vmatpush.bf16.msra.mxu3 %v478_v17 }
  0x17   :  { %291 = vmatpush.bf16.msra.mxu1 %v486_v20 }
  0x1a   :  { %268 = vmatpush.bf16.msra.mxu0 %v477_v23  ;;  %517 = vmatpush.bf16.msra.mxu3 %v477_v23 }
  0x1b   :  { %292 = vmatpush.bf16.msra.mxu1 %v485_v24  ;;  %465 = vmatmul.msk.bf16.gmra.mxu2 %vm252_vm0, %v379_v25 }
  0x1e   :  { %269 = vmatpush.bf16.msra.mxu0 %v476_v26  ;;  %518 = vmatpush.bf16.msra.mxu3 %v476_v26 }
  0x1f   :  { %293 = vmatpush.bf16.msra.mxu1 %v484_v32 }
  0x21   :  { %270 = vmatmul.bf16.vlgmr.msra.gmra.mxu0 %v359_v35  ;;  %275 = vmatmul.bf16.vlgmr.msra.gmra.mxu3 %v371_v36 }
  0x22   :  { %294 = vmatmul.bf16.vlgmr.msra.gmra.mxu1 %v363_v37 }
  0x2b   :  { %466 = vmatmul.msk.bf16.gmra.mxu2 %vm252_vm0, %v391_v41 }
  0x31   :  { %280 = vmatmul.bf16.gmra.mxu3 %v383_v47 }
  0x32   :  { %299 = vmatmul.bf16.gmra.mxu1 %v375_v48 }
  0x42   :  { %304 = vmatmul.bf16.gmra.mxu1 %v387_v51 }
  0x67   :  { %v92_v18 = vpop.permute.xlu2 %91 }
  0x6f   :  { %v97_v27 = vpop.permute.xlu2 %96 }
  0x76   :  { %v72_v53 = vpop.permute.xlu0 %71 }
  0x7a   :  { %v82_v1 = vpop.permute.xlu1 %81 }
  0x7e   :  { %v77_v58 = vpop.permute.xlu0 %76 }
  0x82   :  { %v87_v11 = vpop.permute.xlu1 %86 }
  0x8e   :  { %v319_v52 = vpop.f32.mrf.mxu2 }
  0x96   :  { %v321_v57 = vpop.f32.mrf.mxu2 }
  0x9e   :  { %v271_v54 = vpop.f32.mrf.mxu0  ;;  %v324_v4 = vpop.f32.mrf.mxu2 }
  0x9f   :  { %v295_v55 = vpop.f32.mrf.mxu1  ;;  %v272_v56 = vadd.f32 %v271_v54, %v72_v53 }
  0xa1   :  { %v296_v59 = vadd.f32 %v295_v55, %v272_v56 }
  0xa3   :  { %v320_v0 = vadd.f32 %v319_v52, %v296_v59 }
  0xa4   :  { %v276_v60 = vpop.f32.mrf.mxu3 }
  0xa5   :  { %v334_v5 = vmax.f32 %v320_v0, 0.0  ;;  %v277_v10 = vadd.f32 %v276_v60, %v82_v1 }
  0xa6   :  { %v273_v61 = vpop.f32.mrf.mxu0  ;;  %v326_v13 = vpop.f32.mrf.mxu2 }
  0xa7   :  { %v274_v62 = vadd.f32 %v273_v61, %v77_v58  ;;  %v297_v63 = vpop.f32.mrf.mxu1 }
  0xa9   :  { %v298_v2 = vadd.f32 %v297_v63, %v274_v62 }
  0xab   :  { %v322_v3 = vadd.f32 %v321_v57, %v298_v2 }
  0xac   :  { %v278_v8 = vpop.f32.mrf.mxu3 }
  0xad   :  { %v335_v6 = vmax.f32 %v322_v3, 0.0  ;;  %v279_v14 = vadd.f32 %v278_v8, %v87_v11 }
  0xae   :  { %v329_v24 = vpop.f32.mrf.mxu2 }
  0xaf   :  { %v497_v7 = vpack.c.bf16 %v335_v6, %v334_v5  ;;  %v300_v9 = vpop.f32.mrf.mxu1 }
  0xb0   :  { %v301_v12 = vadd.f32 %v300_v9, %v277_v10 }
  0xb1   :  { %498 = vst [vmem:[%s685_s3] sm:$0xff] %v497_v7  }
  0xb2   :  { %v325_v16 = vadd.f32 %v324_v4, %v301_v12 }
  0xb4   :  { %v281_v19 = vpop.f32.mrf.mxu3  ;;  %v336_v21 = vmax.f32 %v325_v16, 0.0 }
  0xb5   :  { %v282_v26 = vadd.f32 %v281_v19, %v92_v18 }
  0xb6   :  { %v331_v34 = vpop.f32.mrf.mxu2 }
  0xb7   :  { %v302_v15 = vpop.f32.mrf.mxu1 }
  0xb8   :  { %v303_v17 = vadd.f32 %v302_v15, %v279_v14 }
  0xba   :  { %v327_v20 = vadd.f32 %v326_v13, %v303_v17 }
  0xbc   :  { %v337_v22 = vmax.f32 %v327_v20, 0.0  ;;  %v283_v28 = vpop.f32.mrf.mxu3 }
  0xbd   :  { %v284_v30 = vadd.f32 %v283_v28, %v97_v27 }
  0xbe   :  { %v502_v23 = vpack.c.bf16 %v337_v22, %v336_v21 }
  0xbf   :  { %v305_v25 = vpop.f32.mrf.mxu1 }
  0xc0   :  { %509 = vst [vmem:[%s685_s3 + $0x8] sm:$0xff] %v502_v23   ;;  %v306_v29 = vadd.f32 %v305_v25, %v282_v26 }
  0xc2   :  { %v330_v32 = vadd.f32 %v329_v24, %v306_v29 }
  0xc4   :  { %v338_v36 = vmax.f32 %v330_v32, 0.0 }
  0xc7   :  { %v307_v31 = vpop.f32.mrf.mxu1 }
  0xc8   :  { %v308_v33 = vadd.f32 %v307_v31, %v284_v30 }
  0xca   :  { %v332_v35 = vadd.f32 %v331_v34, %v308_v33 }
  0xcc   :  { %v339_v37 = vmax.f32 %v332_v35, 0.0 }
  0xce   :  { %v507_v38 = vpack.c.bf16 %v339_v37, %v338_v36 }
  0xd0   :  { %510 = vst [vmem:[%s685_s3 + $0x10] sm:$0xff] %v507_v38  }

// kernel: forward.9
= control target key start
LH: loop header
LB: loop body
LE: loop exit
PB: predicated region body
PF: predicated region fallthrough
CT: control target
= control target key end

     0   :  { %v683_v6 = vmov 0   ;;  %vm336_vm0 = vcmask 392192   ;;  %s887_s0 = inlined_call_operand.vmem [shape: bf16[432,128], index: 0, kind: input, shape index: {}]   ;;  %s888_s1 = inlined_call_operand.vmem [shape: bf16[48,432], index: 1, kind: input, shape index: {}]   ;;  %s889_s2 = inlined_call_operand.vmem [shape: f32[48,1], index: 2, kind: input, shape index: {}]   ;;  %s890_s3 = inlined_call_operand.vmem [shape: bf16[48,128], index: 3, kind: output, shape index: {}]  }
   0x1   :  { %v642_v0 = vld [vmem:[%s887_s0 + $0x38] sm:$0xff]  ;;  %v641_v3 = vld [vmem:[%s887_s0 + $0x30] sm:$0xff]  ;;  %680 = vset.pattern.permute.xlu0 %v683_v6  ;;  %681 = vset.pattern.permute.xlu1 %v683_v6  ;;  %v640_v8 = vld [vmem:[%s887_s0 + $0x28] sm:$0xff] }
   0x2   :  { %v650_v1 = vld [vmem:[%s887_s0 + $0x78] sm:$0xff]  ;;  %346 = vmatpush.bf16.msra.mxu0 %v642_v0  ;;  %v649_v4 = vld [vmem:[%s887_s0 + $0x70] sm:$0xff]  ;;  %682 = vset.pattern.permute.xlu2 %v683_v6  ;;  %v648_v9 = vld [vmem:[%s887_s0 + $0x68] sm:$0xff] }
   0x3   :  { %v658_v2 = vld [vmem:[%s887_s0 + $0xb8] sm:$0xff]  ;;  %370 = vmatpush.bf16.msra.mxu1 %v650_v1  ;;  %v657_v5 = vld [vmem:[%s887_s0 + $0xb0] sm:$0xff]  ;;  %v656_v10 = vld [vmem:[%s887_s0 + $0xa8] sm:$0xff] }
   0x4   :  { %394 = vmatpush.bf16.msra.mxu2 %v658_v2  ;;  %v661_v7 = vld [vmem:[%s887_s0 + $0xd0] sm:$0xff]  ;;  %v660_v11 = vld [vmem:[%s887_s0 + $0xc8] sm:$0xff]  ;;  %v639_v12 = vld [vmem:[%s887_s0 + $0x20] sm:$0xff] }
   0x5   :  { %423 = vmatpush.bf16.msra.mxu3 %v661_v7  ;;  %v647_v13 = vld [vmem:[%s887_s0 + $0x60] sm:$0xff]  ;;  %v624_v16 = vld [vmem:[%s888_s1 + $0xc] sm:$0xf]  ;;  %v476_v17 = vld [vmem:[%s888_s1 + $0x18] sm:$0xf0] }
   0x6   :  { %347 = vmatpush.bf16.msra.mxu0 %v641_v3  ;;  %v655_v14 = vld [vmem:[%s887_s0 + $0xa0] sm:$0xff]  ;;  %v638_v19 = vld [vmem:[%s887_s0 + $0x18] sm:$0xff]  ;;  %v479_v22 = vor.u32 %v624_v16, %v476_v17  ;;  %v637_v23 = vld [vmem:[%s887_s0 + $0x10] sm:$0xff] }
   0x7   :  { %371 = vmatpush.bf16.msra.mxu1 %v649_v4  ;;  %v659_v15 = vld [vmem:[%s887_s0 + $0xc0] sm:$0xff]  ;;  %v646_v20 = vld [vmem:[%s887_s0 + $0x58] sm:$0xff]  ;;  %v645_v24 = vld [vmem:[%s887_s0 + $0x50] sm:$0xff] }
   0x8   :  { %395 = vmatpush.bf16.msra.mxu2 %v657_v5  ;;  %v81_v18 = vld [vmem:[%s889_s2] sm:$0xff]  ;;  %v654_v21 = vld [vmem:[%s887_s0 + $0x98] sm:$0xff]  ;;  %v82_v25 = vld [vmem:[%s889_s2 + $0x8] sm:$0xff] }
   0x9   :  { %424 = vmatpush.bf16.msra.mxu3 %v660_v11  ;;  %89 = vperm.xlu0 %680, %v81_v18   ;;  %v653_v26 = vld [vmem:[%s887_s0 + $0x90] sm:$0xff]  ;;  %v636_v28 = vld [vmem:[%s887_s0 + $0x8] sm:$0xff]  ;;  %v635_v31 = vld [vmem:[%s887_s0] sm:$0xff] }
   0xa   :  { %348 = vmatpush.bf16.msra.mxu0 %v640_v8  ;;  %v83_v27 = vld [vmem:[%s889_s2 + $0x10] sm:$0xff]  ;;  %v644_v29 = vld [vmem:[%s887_s0 + $0x48] sm:$0xff]  ;;  %v643_v32 = vld [vmem:[%s887_s0 + $0x40] sm:$0xff] }
   0xb   :  { %372 = vmatpush.bf16.msra.mxu1 %v648_v9  ;;  %99 = vperm.xlu1 %681, %v83_v27   ;;  %v652_v30 = vld [vmem:[%s887_s0 + $0x88] sm:$0xff]  ;;  %v466_v33 = vld [vmem:[%s888_s1] sm:$0xf]  ;;  %v625_v34 = vld [vmem:[%s888_s1 + $0xc] sm:$0xf0] }
   0xc   :  { %396 = vmatpush.bf16.msra.mxu2 %v656_v10  ;;  %v623_v35 = vld [vmem:[%s888_s1 + $0x4] sm:$0xf]  ;;  %v468_v36 = vld [vmem:[%s888_s1 + $0x10] sm:$0xf0]  ;;  %v474_v38 = vld [vmem:[%s888_s1 + $0x8] sm:$0xf]  ;;  %v467_v42 = vor.u32 %v625_v34, %v466_v33 }
   0xd   :  { %425 = vmatpush.bf16.msra.mxu3 %v659_v15  ;;  %v651_v37 = vld [vmem:[%s887_s0 + $0x80] sm:$0xff]  ;;  %v626_v39 = vld [vmem:[%s888_s1 + $0x14] sm:$0xf0]  ;;  %v628_v40 = vld [vmem:[%s888_s1 + $0x2c] sm:$0xf]  ;;  %v471_v43 = vor.u32 %v623_v35, %v468_v36 }
   0xe   :  { %349 = vmatpush.bf16.msra.mxu0 %v639_v12  ;;  %v492_v41 = vld [vmem:[%s888_s1 + $0x38] sm:$0xf0]  ;;  %v475_v44 = vor.u32 %v626_v39, %v474_v38  ;;  %v85_v47 = vld [vmem:[%s889_s2 + $0x20] sm:$0xff]  ;;  %v86_v49 = vld [vmem:[%s889_s2 + $0x28] sm:$0xff] }
   0xf   :  { %373 = vmatpush.bf16.msra.mxu1 %v647_v13  ;;  %v495_v45 = vor.u32 %v628_v40, %v492_v41  ;;  %v84_v46 = vld [vmem:[%s889_s2 + $0x18] sm:$0xff]  ;;  %109 = vperm.xlu2 %682, %v85_v47   ;;  %v482_v48 = vld [vmem:[%s888_s1 + $0x20] sm:$0xf]  ;;  %v629_v50 = vld [vmem:[%s888_s1 + $0x2c] sm:$0xf0] }
  0x10   :  { %397 = vmatpush.bf16.msra.mxu2 %v655_v14  ;;  %620 = vmatmul.msk.bf16.vlgmr.msra.gmra.mxu3 %vm336_vm0, %v479_v22  ;;  %v627_v51 = vld [vmem:[%s888_s1 + $0x24] sm:$0xf]  ;;  %v484_v52 = vld [vmem:[%s888_s1 + $0x30] sm:$0xf0]  ;;  %v490_v53 = vld [vmem:[%s888_s1 + $0x28] sm:$0xf]  ;;  %v483_v57 = vor.u32 %v629_v50, %v482_v48 }
  0x11   :  { %94 = vperm.xlu0 %680, %v82_v25   ;;  %v630_v54 = vld [vmem:[%s888_s1 + $0x34] sm:$0xf0]  ;;  %v632_v55 = vld [vmem:[%s888_s1 + $0x4c] sm:$0xf]  ;;  %v508_v56 = vld [vmem:[%s888_s1 + $0x58] sm:$0xf0]  ;;  %v487_v58 = vor.u32 %v627_v51, %v484_v52 }
  0x12   :  { %350 = vmatpush.bf16.msra.mxu0 %v638_v19  ;;  %v491_v59 = vor.u32 %v630_v54, %v490_v53  ;;  %v511_v60 = vor.u32 %v632_v55, %v508_v56  ;;  %v498_v61 = vld [vmem:[%s888_s1 + $0x40] sm:$0xf]  ;;  %v633_v62 = vld [vmem:[%s888_s1 + $0x4c] sm:$0xf0]  ;;  %v631_v63 = vld [vmem:[%s888_s1 + $0x44] sm:$0xf] }
  0x13   :  { %374 = vmatpush.bf16.msra.mxu1 %v646_v20  ;;  %104 = vperm.xlu1 %681, %v84_v46   ;;  %v500_v0 = vld [vmem:[%s888_s1 + $0x50] sm:$0xf0]  ;;  %v506_v1 = vld [vmem:[%s888_s1 + $0x48] sm:$0xf]  ;;  %v634_v2 = vld [vmem:[%s888_s1 + $0x54] sm:$0xf0]  ;;  %v499_v3 = vor.u32 %v633_v62, %v498_v61 }
  0x14   :  { %398 = vmatpush.bf16.msra.mxu2 %v654_v21  ;;  %v503_v4 = vor.u32 %v631_v63, %v500_v0  ;;  %v507_v5 = vor.u32 %v634_v2, %v506_v1 }
  0x16   :  { %351 = vmatpush.bf16.msra.mxu0 %v637_v23 }
  0x17   :  { %375 = vmatpush.bf16.msra.mxu1 %v645_v24  ;;  %114 = vperm.xlu2 %682, %v86_v49  }
  0x18   :  { %399 = vmatpush.bf16.msra.mxu2 %v653_v26 }
  0x1a   :  { %352 = vmatpush.bf16.msra.mxu0 %v636_v28 }
  0x1b   :  { %376 = vmatpush.bf16.msra.mxu1 %v644_v29 }
  0x1c   :  { %400 = vmatpush.bf16.msra.mxu2 %v652_v30 }
  0x1e   :  { %353 = vmatpush.bf16.msra.mxu0 %v635_v31 }
  0x1f   :  { %377 = vmatpush.bf16.msra.mxu1 %v643_v32 }
  0x20   :  { %401 = vmatpush.bf16.msra.mxu2 %v651_v37  ;;  %621 = vmatmul.msk.bf16.gmra.mxu3 %vm336_vm0, %v495_v45 }
  0x21   :  { %354 = vmatmul.bf16.vlgmr.msra.gmra.mxu0 %v467_v42 }
  0x22   :  { %378 = vmatmul.bf16.vlgmr.msra.gmra.mxu1 %v471_v43 }
  0x23   :  { %402 = vmatmul.bf16.vlgmr.msra.gmra.mxu2 %v475_v44 }
  0x30   :  { %622 = vmatmul.msk.bf16.gmra.mxu3 %vm336_vm0, %v511_v60 }
  0x31   :  { %359 = vmatmul.bf16.gmra.mxu0 %v483_v57 }
  0x32   :  { %383 = vmatmul.bf16.gmra.mxu1 %v487_v58 }
  0x33   :  { %407 = vmatmul.bf16.gmra.mxu2 %v491_v59 }
  0x41   :  { %364 = vmatmul.bf16.gmra.mxu0 %v499_v3 }
  0x42   :  { %388 = vmatmul.bf16.gmra.mxu1 %v503_v4 }
  0x43   :  { %412 = vmatmul.bf16.gmra.mxu2 %v507_v5 }
  0x69   :  { %v110_v41 = vpop.permute.xlu2 %109 }
  0x71   :  { %v115_v56 = vpop.permute.xlu2 %114 }
  0x7b   :  { %v90_v6 = vpop.permute.xlu0 %89 }
  0x7d   :  { %v100_v19 = vpop.permute.xlu1 %99 }
  0x83   :  { %v95_v12 = vpop.permute.xlu0 %94 }
  0x85   :  { %v105_v33 = vpop.permute.xlu1 %104 }
  0x93   :  { %v427_v7 = vpop.f32.mrf.mxu3 }
  0x9b   :  { %v429_v16 = vpop.f32.mrf.mxu3 }
  0x9e   :  { %v355_v8 = vpop.f32.mrf.mxu0 }
  0x9f   :  { %v379_v9 = vpop.f32.mrf.mxu1  ;;  %v356_v10 = vadd.f32 %v355_v8, %v90_v6 }
  0xa1   :  { %v380_v13 = vadd.f32 %v379_v9, %v356_v10 }
  0xa3   :  { %v432_v27 = vpop.f32.mrf.mxu3 }
  0xa6   :  { %v403_v11 = vpop.f32.mrf.mxu2  ;;  %v357_v14 = vpop.f32.mrf.mxu0 }
  0xa7   :  { %v381_v15 = vpop.f32.mrf.mxu1  ;;  %v358_v17 = vadd.f32 %v357_v14, %v95_v12  ;;  %v404_v18 = vadd.f32 %v403_v11, %v380_v13 }
  0xa9   :  { %v382_v20 = vadd.f32 %v381_v15, %v358_v17  ;;  %v428_v22 = vadd.f32 %v427_v7, %v404_v18 }
  0xab   :  { %v442_v28 = vmax.f32 %v428_v22, 0.0  ;;  %v434_v39 = vpop.f32.mrf.mxu3 }
  0xae   :  { %v405_v21 = vpop.f32.mrf.mxu2  ;;  %v360_v24 = vpop.f32.mrf.mxu0 }
  0xaf   :  { %v406_v23 = vadd.f32 %v405_v21, %v382_v20  ;;  %v384_v25 = vpop.f32.mrf.mxu1  ;;  %v361_v30 = vadd.f32 %v360_v24, %v100_v19 }
  0xb1   :  { %v430_v26 = vadd.f32 %v429_v16, %v406_v23  ;;  %v385_v34 = vadd.f32 %v384_v25, %v361_v30 }
  0xb3   :  { %v443_v29 = vmax.f32 %v430_v26, 0.0  ;;  %v437_v52 = vpop.f32.mrf.mxu3 }
  0xb5   :  { %v665_v31 = vpack.c.bf16 %v443_v29, %v442_v28 }
  0xb6   :  { %v408_v32 = vpop.f32.mrf.mxu2  ;;  %v362_v35 = vpop.f32.mrf.mxu0 }
  0xb7   :  { %666 = vst [vmem:[%s890_s3] sm:$0xff] %v665_v31   ;;  %v386_v36 = vpop.f32.mrf.mxu1  ;;  %v363_v37 = vadd.f32 %v362_v35, %v105_v33  ;;  %v409_v38 = vadd.f32 %v408_v32, %v385_v34 }
  0xb9   :  { %v387_v40 = vadd.f32 %v386_v36, %v363_v37  ;;  %v433_v43 = vadd.f32 %v432_v27, %v409_v38 }
  0xbb   :  { %v444_v48 = vmax.f32 %v433_v43, 0.0  ;;  %v439_v0 = vpop.f32.mrf.mxu3 }
  0xbe   :  { %v410_v42 = vpop.f32.mrf.mxu2  ;;  %v365_v45 = vpop.f32.mrf.mxu0 }
  0xbf   :  { %v411_v44 = vadd.f32 %v410_v42, %v387_v40  ;;  %v389_v47 = vpop.f32.mrf.mxu1  ;;  %v366_v50 = vadd.f32 %v365_v45, %v110_v41 }
  0xc1   :  { %v435_v46 = vadd.f32 %v434_v39, %v411_v44  ;;  %v390_v54 = vadd.f32 %v389_v47, %v366_v50 }
  0xc3   :  { %v445_v49 = vmax.f32 %v435_v46, 0.0 }
  0xc5   :  { %v670_v51 = vpack.c.bf16 %v445_v49, %v444_v48 }
  0xc6   :  { %v413_v53 = vpop.f32.mrf.mxu2  ;;  %v367_v55 = vpop.f32.mrf.mxu0 }
  0xc7   :  { %677 = vst [vmem:[%s890_s3 + $0x8] sm:$0xff] %v670_v51   ;;  %v368_v57 = vadd.f32 %v367_v55, %v115_v56  ;;  %v414_v58 = vadd.f32 %v413_v53, %v390_v54  ;;  %v391_v59 = vpop.f32.mrf.mxu1 }
  0xc9   :  { %v392_v60 = vadd.f32 %v391_v59, %v368_v57  ;;  %v438_v62 = vadd.f32 %v437_v52, %v414_v58 }
  0xcb   :  { %v446_v2 = vmax.f32 %v438_v62, 0.0 }
  0xce   :  { %v415_v61 = vpop.f32.mrf.mxu2 }
  0xcf   :  { %v416_v63 = vadd.f32 %v415_v61, %v392_v60 }
  0xd1   :  { %v440_v1 = vadd.f32 %v439_v0, %v416_v63 }
  0xd3   :  { %v447_v3 = vmax.f32 %v440_v1, 0.0 }
  0xd5   :  { %v675_v4 = vpack.c.bf16 %v447_v3, %v446_v2 }
  0xd7   :  { %678 = vst [vmem:[%s890_s3 + $0x10] sm:$0xff] %v675_v4  }

// kernel: forward.10
= control target key start
LH: loop header
LB: loop body
LE: loop exit
PB: predicated region body
PF: predicated region fallthrough
CT: control target
= control target key end

     0   :  { %vm277_vm0 = vcmask 392192   ;;  %vm1287_vm1 = vcmask 257024   ;;  %s2558_s0 = inlined_call_operand.vmem [shape: bf16[4,432,32], index: 0, kind: input, shape index: {}]   ;;  %s2559_s1 = inlined_call_operand.vmem [shape: bf16[32,432], index: 1, kind: input, shape index: {}]   ;;  %s2560_s2 = inlined_call_operand.vmem [shape: f32[32,1], index: 2, kind: input, shape index: {}]   ;;  %s2561_s3 = inlined_call_operand.vmem [shape: bf16[32,32], index: 3, kind: output, shape index: {}]  }
   0x1   :  { %v1945_v0 = vld [vmem:[%s2558_s0 + $0x38] sm:$0xff]  ;;  %v1964_v3 = vld [vmem:[%s2558_s0 + $0xd0] sm:$0xff]  ;;  %v1963_v7 = vld [vmem:[%s2558_s0 + $0xc8] sm:$0xff] }
   0x2   :  { %v1953_v1 = vld [vmem:[%s2558_s0 + $0x78] sm:$0xff]  ;;  %284 = vmatpush.bf16.msra.mxu0 %v1945_v0  ;;  %v1944_v4 = vld [vmem:[%s2558_s0 + $0x30] sm:$0xff]  ;;  %346 = vmatpush.bf16.msra.mxu3 %v1964_v3  ;;  %v1943_v8 = vld [vmem:[%s2558_s0 + $0x28] sm:$0xff] }
   0x3   :  { %v1961_v2 = vld [vmem:[%s2558_s0 + $0xb8] sm:$0xff]  ;;  %303 = vmatpush.bf16.msra.mxu1 %v1953_v1  ;;  %v1952_v5 = vld [vmem:[%s2558_s0 + $0x70] sm:$0xff]  ;;  %v1951_v9 = vld [vmem:[%s2558_s0 + $0x68] sm:$0xff] }
   0x4   :  { %322 = vmatpush.bf16.msra.mxu2 %v1961_v2  ;;  %v1960_v6 = vld [vmem:[%s2558_s0 + $0xb0] sm:$0xff]  ;;  %v1959_v10 = vld [vmem:[%s2558_s0 + $0xa8] sm:$0xff]  ;;  %v1962_v11 = vld [vmem:[%s2558_s0 + $0xc0] sm:$0xff] }
   0x5   :  { %v1931_v12 = vld [vmem:[%s2559_s1 + $0xc] sm:$0xf]  ;;  %v1308_v13 = vld [vmem:[%s2559_s1 + $0x18] sm:$0xf0]  ;;  %v1972_v14 = vld [vmem:[%s2558_s0 + $0x110] sm:$0xff] }
   0x6   :  { %285 = vmatpush.bf16.msra.mxu0 %v1944_v4  ;;  %347 = vmatpush.bf16.msra.mxu3 %v1963_v7  ;;  %v2123_v15 = vor.u32 %v1931_v12, %v1308_v13  ;;  %v1942_v16 = vld [vmem:[%s2558_s0 + $0x20] sm:$0xff]  ;;  %v1971_v19 = vld [vmem:[%s2558_s0 + $0x108] sm:$0xff]  ;;  %v1941_v20 = vld [vmem:[%s2558_s0 + $0x18] sm:$0xff] }
   0x7   :  { %304 = vmatpush.bf16.msra.mxu1 %v1952_v5  ;;  %v1950_v17 = vld [vmem:[%s2558_s0 + $0x60] sm:$0xff]  ;;  %v1949_v21 = vld [vmem:[%s2558_s0 + $0x58] sm:$0xff]  ;;  %v1940_v24 = vld [vmem:[%s2558_s0 + $0x10] sm:$0xff] }
   0x8   :  { %323 = vmatpush.bf16.msra.mxu2 %v1960_v6  ;;  %v1958_v18 = vld [vmem:[%s2558_s0 + $0xa0] sm:$0xff]  ;;  %v1957_v22 = vld [vmem:[%s2558_s0 + $0x98] sm:$0xff]  ;;  %v1948_v25 = vld [vmem:[%s2558_s0 + $0x50] sm:$0xff] }
   0x9   :  { %v1970_v23 = vld [vmem:[%s2558_s0 + $0x100] sm:$0xff]  ;;  %v1956_v26 = vld [vmem:[%s2558_s0 + $0x90] sm:$0xff]  ;;  %v1969_v27 = vld [vmem:[%s2558_s0 + $0xf8] sm:$0xff] }
   0xa   :  { %286 = vmatpush.bf16.msra.mxu0 %v1943_v8  ;;  %348 = vmatpush.bf16.msra.mxu3 %v1962_v11  ;;  %v1939_v28 = vld [vmem:[%s2558_s0 + $0x8] sm:$0xff]  ;;  %v1324_v32 = vld [vmem:[%s2559_s1 + $0x38] sm:$0xf0]  ;;  %v1968_v33 = vld [vmem:[%s2558_s0 + $0xf0] sm:$0xff] }
   0xb   :  { %305 = vmatpush.bf16.msra.mxu1 %v1951_v9  ;;  %v1947_v29 = vld [vmem:[%s2558_s0 + $0x48] sm:$0xff]  ;;  %v1938_v34 = vld [vmem:[%s2558_s0] sm:$0xff]  ;;  %v1932_v39 = vld [vmem:[%s2559_s1 + $0xc] sm:$0xf0] }
   0xc   :  { %324 = vmatpush.bf16.msra.mxu2 %v1959_v10  ;;  %v1955_v30 = vld [vmem:[%s2558_s0 + $0x88] sm:$0xff]  ;;  %v1946_v35 = vld [vmem:[%s2558_s0 + $0x40] sm:$0xff]  ;;  %v1300_v41 = vld [vmem:[%s2559_s1 + $0x10] sm:$0xf0] }
   0xd   :  { %1436 = vmatmul.msk.bf16.vlgmr.msra.gmra.mxu3 %vm277_vm0, %v2123_v15  ;;  %v1935_v31 = vld [vmem:[%s2559_s1 + $0x2c] sm:$0xf]  ;;  %v1954_v36 = vld [vmem:[%s2558_s0 + $0x80] sm:$0xff]  ;;  %v1306_v42 = vld [vmem:[%s2559_s1 + $0x8] sm:$0xf] }
   0xe   :  { %577 = vmatpush.bf16.msrb.mxu3 %v1972_v14  ;;  %287 = vmatpush.bf16.msra.mxu0 %v1942_v16  ;;  %v2190_v37 = vor.u32 %v1935_v31, %v1324_v32  ;;  %v1298_v38 = vld [vmem:[%s2559_s1] sm:$0xf]  ;;  %v1930_v40 = vld [vmem:[%s2559_s1 + $0x4] sm:$0xf]  ;;  %v1933_v43 = vld [vmem:[%s2559_s1 + $0x14] sm:$0xf0] }
   0xf   :  { %306 = vmatpush.bf16.msra.mxu1 %v1950_v17  ;;  %v1967_v44 = vld [vmem:[%s2558_s0 + $0xe8] sm:$0xff]  ;;  %v2216_v46 = vor.u32 %v1932_v39, %v1298_v38  ;;  %v1988_v47 = vld [vmem:[%s2558_s0 + $0x190] sm:$0xff]  ;;  %v2223_v48 = vor.u32 %v1930_v40, %v1300_v41  ;;  %v2225_v49 = vor.u32 %v1933_v43, %v1306_v42  ;;  %v1966_v51 = vld [vmem:[%s2558_s0 + $0xe0] sm:$0xff] }
  0x10   :  { %325 = vmatpush.bf16.msra.mxu2 %v1958_v18  ;;  %v1991_v45 = vld [vmem:[%s2558_s0 + $0x1a8] sm:$0xff]  ;;  %v1980_v50 = vld [vmem:[%s2558_s0 + $0x150] sm:$0xff]  ;;  %v1990_v52 = vld [vmem:[%s2558_s0 + $0x1a0] sm:$0xff] }
  0x11   :  { %v1987_v53 = vld [vmem:[%s2558_s0 + $0x188] sm:$0xff]  ;;  %v1965_v55 = vld [vmem:[%s2558_s0 + $0xd8] sm:$0xff]  ;;  %v1986_v57 = vld [vmem:[%s2558_s0 + $0x180] sm:$0xff] }
  0x12   :  { %578 = vmatpush.bf16.msrb.mxu3 %v1971_v19  ;;  %288 = vmatpush.bf16.msra.mxu0 %v1941_v20  ;;  %v1979_v54 = vld [vmem:[%s2558_s0 + $0x148] sm:$0xff]  ;;  %v1989_v56 = vld [vmem:[%s2558_s0 + $0x198] sm:$0xff]  ;;  %v2018_v59 = vld [vmem:[%s2558_s0 + $0x280] sm:$0xff] }
  0x13   :  { %307 = vmatpush.bf16.msra.mxu1 %v1949_v21  ;;  %v1999_v58 = vld [vmem:[%s2558_s0 + $0x1e8] sm:$0xff]  ;;  %v1978_v60 = vld [vmem:[%s2558_s0 + $0x140] sm:$0xff]  ;;  %v1977_v61 = vld [vmem:[%s2558_s0 + $0x138] sm:$0xff] }
  0x14   :  { %326 = vmatpush.bf16.msra.mxu2 %v1957_v22  ;;  %v1985_v62 = vld [vmem:[%s2558_s0 + $0x178] sm:$0xff]  ;;  %v1314_v63 = vld [vmem:[%s2559_s1 + $0x20] sm:$0xf]  ;;  %v1936_v1 = vld [vmem:[%s2559_s1 + $0x2c] sm:$0xf0] }
  0x15   :  { %v1998_v0 = vld [vmem:[%s2558_s0 + $0x1e0] sm:$0xff]  ;;  %v2017_v3 = vld [vmem:[%s2558_s0 + $0x278] sm:$0xff]  ;;  %v1316_v4 = vld [vmem:[%s2559_s1 + $0x30] sm:$0xf0]  ;;  %v2293_v7 = vor.u32 %v1936_v1, %v1314_v63 }
  0x16   :  { %579 = vmatpush.bf16.msrb.mxu3 %v1970_v23  ;;  %289 = vmatpush.bf16.msra.mxu0 %v1940_v24  ;;  %v1934_v2 = vld [vmem:[%s2559_s1 + $0x24] sm:$0xf]  ;;  %v1322_v5 = vld [vmem:[%s2559_s1 + $0x28] sm:$0xf]  ;;  %v1937_v6 = vld [vmem:[%s2559_s1 + $0x34] sm:$0xf0] }
  0x17   :  { %308 = vmatpush.bf16.msra.mxu1 %v1948_v25  ;;  %v1984_v8 = vld [vmem:[%s2558_s0 + $0x170] sm:$0xff]  ;;  %v2299_v9 = vor.u32 %v1934_v2, %v1316_v4  ;;  %v2301_v10 = vor.u32 %v1937_v6, %v1322_v5  ;;  %v1997_v12 = vld [vmem:[%s2558_s0 + $0x1d8] sm:$0xff]  ;;  %v1983_v13 = vld [vmem:[%s2558_s0 + $0x168] sm:$0xff] }
  0x18   :  { %327 = vmatpush.bf16.msra.mxu2 %v1956_v26  ;;  %v1976_v11 = vld [vmem:[%s2558_s0 + $0x130] sm:$0xff]  ;;  %v1975_v14 = vld [vmem:[%s2558_s0 + $0x128] sm:$0xff]  ;;  %v1982_v18 = vld [vmem:[%s2558_s0 + $0x160] sm:$0xff] }
  0x19   :  { %v1996_v16 = vld [vmem:[%s2558_s0 + $0x1d0] sm:$0xff]  ;;  %v1974_v19 = vld [vmem:[%s2558_s0 + $0x120] sm:$0xff]  ;;  %v1995_v20 = vld [vmem:[%s2558_s0 + $0x1c8] sm:$0xff] }
  0x1a   :  { %580 = vmatpush.bf16.msrb.mxu3 %v1969_v27  ;;  %290 = vmatpush.bf16.msra.mxu0 %v1939_v28  ;;  %v2016_v17 = vld [vmem:[%s2558_s0 + $0x270] sm:$0xff]  ;;  %v1981_v21 = vld [vmem:[%s2558_s0 + $0x158] sm:$0xff]  ;;  %v2015_v22 = vld [vmem:[%s2558_s0 + $0x268] sm:$0xff] }
  0x1b   :  { %309 = vmatpush.bf16.msra.mxu1 %v1947_v29  ;;  %v1973_v23 = vld [vmem:[%s2558_s0 + $0x118] sm:$0xff]  ;;  %v1994_v24 = vld [vmem:[%s2558_s0 + $0x1c0] sm:$0xff]  ;;  %v2007_v25 = vld [vmem:[%s2558_s0 + $0x228] sm:$0xff] }
  0x1c   :  { %328 = vmatpush.bf16.msra.mxu2 %v1955_v30  ;;  %v1993_v26 = vld [vmem:[%s2558_s0 + $0x1b8] sm:$0xff]  ;;  %v2006_v27 = vld [vmem:[%s2558_s0 + $0x220] sm:$0xff]  ;;  %v1992_v29 = vld [vmem:[%s2558_s0 + $0x1b0] sm:$0xff] }
  0x1d   :  { %1437 = vmatmul.msk.bf16.gmra.mxu3 %vm277_vm0, %v2190_v37  ;;  %v2014_v28 = vld [vmem:[%s2558_s0 + $0x260] sm:$0xff]  ;;  %v2045_v30 = vld [vmem:[%s2558_s0 + $0x358] sm:$0xff]  ;;  %v2003_v39 = vld [vmem:[%s2558_s0 + $0x208] sm:$0xff] }
  0x1e   :  { %581 = vmatpush.bf16.msrb.mxu3 %v1968_v33  ;;  %291 = vmatpush.bf16.msra.mxu0 %v1938_v34  ;;  %v2005_v31 = vld [vmem:[%s2558_s0 + $0x218] sm:$0xff]  ;;  %v2026_v33 = vld [vmem:[%s2558_s0 + $0x2c0] sm:$0xff]  ;;  %v2044_v34 = vld [vmem:[%s2558_s0 + $0x350] sm:$0xff] }
  0x1f   :  { %310 = vmatpush.bf16.msra.mxu1 %v1946_v35  ;;  %v2013_v32 = vld [vmem:[%s2558_s0 + $0x258] sm:$0xff]  ;;  %v2004_v35 = vld [vmem:[%s2558_s0 + $0x210] sm:$0xff]  ;;  %v2011_v40 = vld [vmem:[%s2558_s0 + $0x248] sm:$0xff] }
  0x20   :  { %329 = vmatpush.bf16.msra.mxu2 %v1954_v36  ;;  %v2012_v36 = vld [vmem:[%s2558_s0 + $0x250] sm:$0xff]  ;;  %v2025_v38 = vld [vmem:[%s2558_s0 + $0x2b8] sm:$0xff]  ;;  %v2002_v42 = vld [vmem:[%s2558_s0 + $0x200] sm:$0xff] }
  0x21   :  { %292 = vmatmul.bf16.vlgmr.msra.gmra.mxu0 %v2216_v46  ;;  %v2024_v41 = vld [vmem:[%s2558_s0 + $0x2b0] sm:$0xff]  ;;  %v2010_v43 = vld [vmem:[%s2558_s0 + $0x240] sm:$0xff]  ;;  %v2031_v63 = vld [vmem:[%s2558_s0 + $0x2e8] sm:$0xff] }
  0x22   :  { %582 = vmatpush.bf16.msrb.mxu3 %v1967_v44  ;;  %311 = vmatmul.bf16.vlgmr.msra.gmra.mxu1 %v2223_v48  ;;  %v2023_v44 = vld [vmem:[%s2558_s0 + $0x2a8] sm:$0xff]  ;;  %v2030_v1 = vld [vmem:[%s2558_s0 + $0x2e0] sm:$0xff]  ;;  %v2037_v4 = vld [vmem:[%s2558_s0 + $0x318] sm:$0xff] }
  0x23   :  { %615 = vmatpush.bf16.msrb.mxu1 %v1988_v47  ;;  %330 = vmatmul.bf16.vlgmr.msra.gmra.mxu2 %v2225_v49  ;;  %v2001_v47 = vld [vmem:[%s2558_s0 + $0x1f8] sm:$0xff]  ;;  %v2038_v2 = vld [vmem:[%s2558_s0 + $0x320] sm:$0xff]  ;;  %v2028_v5 = vld [vmem:[%s2558_s0 + $0x2d0] sm:$0xff] }
  0x24   :  { %639 = vmatpush.bf16.msrb.mxu2 %v1991_v45  ;;  %596 = vmatpush.bf16.msrb.mxu0 %v1980_v50  ;;  %v2043_v45 = vld [vmem:[%s2558_s0 + $0x348] sm:$0xff]  ;;  %v2009_v50 = vld [vmem:[%s2558_s0 + $0x238] sm:$0xff]  ;;  %v1251_v6 = vld [vmem:[%s2560_s2] sm:$0xff] }
  0x26   :  { %583 = vmatpush.bf16.msrb.mxu3 %v1966_v51  ;;  %v2022_v51 = vld [vmem:[%s2558_s0 + $0x2a0] sm:$0xff] }
  0x27   :  { %616 = vmatpush.bf16.msrb.mxu1 %v1987_v53  ;;  %v2008_v53 = vld [vmem:[%s2558_s0 + $0x230] sm:$0xff] }
  0x28   :  { %640 = vmatpush.bf16.msrb.mxu2 %v1990_v52  ;;  %597 = vmatpush.bf16.msrb.mxu0 %v1979_v54  ;;  %v2000_v52 = vld [vmem:[%s2558_s0 + $0x1f0] sm:$0xff]  ;;  %v2021_v54 = vld [vmem:[%s2558_s0 + $0x298] sm:$0xff] }
  0x2a   :  { %584 = vmatpush.bf16.msrb.mxu3 %v1965_v55  ;;  %v2034_v55 = vld [vmem:[%s2558_s0 + $0x300] sm:$0xff] }
  0x2b   :  { %617 = vmatpush.bf16.msrb.mxu1 %v1986_v57  ;;  %v2020_v57 = vld [vmem:[%s2558_s0 + $0x290] sm:$0xff] }
  0x2c   :  { %641 = vmatpush.bf16.msrb.mxu2 %v1989_v56  ;;  %598 = vmatpush.bf16.msrb.mxu0 %v1978_v60  ;;  %v2042_v56 = vld [vmem:[%s2558_s0 + $0x340] sm:$0xff]  ;;  %v2019_v60 = vld [vmem:[%s2558_s0 + $0x288] sm:$0xff] }
  0x2d   :  { %585 = vmatmul.bf16.vlgmr.msrb.gmra.mxu3 %v2216_v46 }
  0x2e   :  { %874 = vmatpush.bf16.msra.mxu3 %v1999_v58  ;;  %v2033_v58 = vld [vmem:[%s2558_s0 + $0x2f8] sm:$0xff] }
  0x2f   :  { %618 = vmatpush.bf16.msrb.mxu1 %v1985_v62  ;;  %v2040_v62 = vld [vmem:[%s2558_s0 + $0x330] sm:$0xff] }
  0x30   :  { %936 = vmatpush.bf16.msra.mxu2 %v2018_v59  ;;  %599 = vmatpush.bf16.msrb.mxu0 %v1977_v61  ;;  %v2041_v59 = vld [vmem:[%s2558_s0 + $0x338] sm:$0xff]  ;;  %v2032_v61 = vld [vmem:[%s2558_s0 + $0x2f0] sm:$0xff] }
  0x31   :  { %297 = vmatmul.bf16.gmra.mxu0 %v2293_v7 }
  0x32   :  { %875 = vmatpush.bf16.msra.mxu3 %v1998_v0  ;;  %316 = vmatmul.bf16.gmra.mxu1 %v2299_v9  ;;  %v2039_v0 = vld [vmem:[%s2558_s0 + $0x328] sm:$0xff] }
  0x33   :  { %619 = vmatpush.bf16.msrb.mxu1 %v1984_v8  ;;  %335 = vmatmul.bf16.gmra.mxu2 %v2301_v10  ;;  %v2057_v8 = vmov 0  }
  0x34   :  { %937 = vmatpush.bf16.msra.mxu2 %v2017_v3  ;;  %600 = vmatpush.bf16.msrb.mxu0 %v1976_v11  ;;  %v2029_v3 = vld [vmem:[%s2558_s0 + $0x2d8] sm:$0xff]  ;;  %v2027_v11 = vld [vmem:[%s2558_s0 + $0x2c8] sm:$0xff] }
  0x35   :  { %2055 = vset.pattern.permute.xlu0 %v2057_v8  ;;  %2056 = vset.pattern.permute.xlu1 %v2057_v8 }
  0x36   :  { %876 = vmatpush.bf16.msra.mxu3 %v1997_v12  ;;  %1257 = vperm.xlu0 %2055, %v1251_v6   ;;  %v2035_v12 = vld [vmem:[%s2558_s0 + $0x308] sm:$0xff] }
  0x37   :  { %620 = vmatpush.bf16.msrb.mxu1 %v1983_v13  ;;  %v1253_v13 = vld [vmem:[%s2560_s2 + $0x10] sm:$0xff] }
  0x38   :  { %938 = vmatpush.bf16.msra.mxu2 %v2016_v17  ;;  %601 = vmatpush.bf16.msrb.mxu0 %v1975_v14  ;;  %v1252_v14 = vld [vmem:[%s2560_s2 + $0x8] sm:$0xff] }
  0x39   :  { %1267 = vperm.xlu1 %2056, %v1253_v13  }
  0x3a   :  { %877 = vmatpush.bf16.msra.mxu3 %v1996_v16  ;;  %v1254_v16 = vld [vmem:[%s2560_s2 + $0x18] sm:$0xff] }
  0x3b   :  { %621 = vmatpush.bf16.msrb.mxu1 %v1982_v18 }
  0x3c   :  { %602 = vmatpush.bf16.msrb.mxu0 %v1974_v19 }
  0x3d   :  { %590 = vmatmul.bf16.gmra.mxu3 %v2293_v7 }
  0x3e   :  { %878 = vmatpush.bf16.msra.mxu3 %v1995_v20  ;;  %1262 = vperm.xlu0 %2055, %v1252_v14  }
  0x3f   :  { %622 = vmatpush.bf16.msrb.mxu1 %v1981_v21 }
  0x40   :  { %603 = vmatpush.bf16.msrb.mxu0 %v1973_v23 }
  0x41   :  { %1272 = vperm.xlu1 %2056, %v1254_v16  }
  0x42   :  { %879 = vmatpush.bf16.msra.mxu3 %v1994_v24  ;;  %623 = vmatmul.bf16.vlgmr.msrb.gmra.mxu1 %v2225_v49 }
  0x43   :  { %912 = vmatpush.bf16.msra.mxu1 %v2015_v22  ;;  %604 = vmatmul.bf16.vlgmr.msrb.gmra.mxu0 %v2223_v48 }
  0x44   :  { %893 = vmatpush.bf16.msra.mxu0 %v2007_v25  ;;  %1600 = vmatmul.msk.bf16.vlgmr.msrb.gmra.mxu2 %vm277_vm0, %v2123_v15 }
  0x45   :  { %1233 = vmatpush.bf16.msrb.mxu2 %v2045_v30 }
  0x46   :  { %880 = vmatpush.bf16.msra.mxu3 %v1993_v26 }
  0x47   :  { %913 = vmatpush.bf16.msra.mxu1 %v2014_v28 }
  0x48   :  { %894 = vmatpush.bf16.msra.mxu0 %v2006_v27 }
  0x49   :  { %1234 = vmatpush.bf16.msrb.mxu2 %v2044_v34 }
  0x4a   :  { %881 = vmatpush.bf16.msra.mxu3 %v1992_v29 }
  0x4b   :  { %914 = vmatpush.bf16.msra.mxu1 %v2013_v32 }
  0x4c   :  { %895 = vmatpush.bf16.msra.mxu0 %v2005_v31 }
  0x4d   :  { %882 = vmatmul.bf16.vlgmr.msra.gmra.mxu3 %v2216_v46  ;;  %1235 = vmatpush.bf16.msrb.mxu2 %v2043_v45 }
  0x4e   :  { %1171 = vmatpush.bf16.msrb.mxu3 %v2026_v33 }
  0x4f   :  { %915 = vmatpush.bf16.msra.mxu1 %v2012_v36 }
  0x50   :  { %896 = vmatpush.bf16.msra.mxu0 %v2004_v35 }
  0x52   :  { %1172 = vmatpush.bf16.msrb.mxu3 %v2025_v38  ;;  %628 = vmatmul.bf16.gmra.mxu1 %v2301_v10 }
  0x53   :  { %916 = vmatpush.bf16.msra.mxu1 %v2011_v40  ;;  %609 = vmatmul.bf16.gmra.mxu0 %v2299_v9 }
  0x54   :  { %897 = vmatpush.bf16.msra.mxu0 %v2003_v39  ;;  %1601 = vmatmul.msk.bf16.gmra.mxu2 %vm277_vm0, %v2190_v37 }
  0x56   :  { %1173 = vmatpush.bf16.msrb.mxu3 %v2024_v41 }
  0x57   :  { %917 = vmatpush.bf16.msra.mxu1 %v2010_v43 }
  0x58   :  { %898 = vmatpush.bf16.msra.mxu0 %v2002_v42 }
  0x5a   :  { %1174 = vmatpush.bf16.msrb.mxu3 %v2023_v44 }
  0x5b   :  { %918 = vmatpush.bf16.msra.mxu1 %v2009_v50 }
  0x5c   :  { %899 = vmatpush.bf16.msra.mxu0 %v2001_v47 }
  0x5d   :  { %887 = vmatmul.bf16.gmra.mxu3 %v2293_v7 }
  0x5e   :  { %1175 = vmatpush.bf16.msrb.mxu3 %v2022_v51 }
  0x5f   :  { %919 = vmatpush.bf16.msra.mxu1 %v2008_v53 }
  0x60   :  { %900 = vmatpush.bf16.msra.mxu0 %v2000_v52 }
  0x62   :  { %1176 = vmatpush.bf16.msrb.mxu3 %v2021_v54  ;;  %920 = vmatmul.bf16.vlgmr.msra.gmra.mxu1 %v2225_v49 }
  0x63   :  { %1209 = vmatpush.bf16.msrb.mxu1 %v2042_v56  ;;  %901 = vmatmul.bf16.vlgmr.msra.gmra.mxu0 %v2223_v48 }
  0x64   :  { %1190 = vmatpush.bf16.msrb.mxu0 %v2034_v55  ;;  %1764 = vmatmul.msk.bf16.vlgmr.msra.gmra.mxu2 %vm277_vm0, %v2123_v15 }
  0x66   :  { %1177 = vmatpush.bf16.msrb.mxu3 %v2020_v57 }
  0x67   :  { %1210 = vmatpush.bf16.msrb.mxu1 %v2041_v59 }
  0x68   :  { %1191 = vmatpush.bf16.msrb.mxu0 %v2033_v58 }
  0x6a   :  { %1178 = vmatpush.bf16.msrb.mxu3 %v2019_v60 }
  0x6b   :  { %1211 = vmatpush.bf16.msrb.mxu1 %v2040_v62 }
  0x6c   :  { %1192 = vmatpush.bf16.msrb.mxu0 %v2032_v61 }
  0x6d   :  { %1179 = vmatmul.bf16.vlgmr.msrb.gmra.mxu3 %v2216_v46  ;;  %v2036_v46 = vld [vmem:[%s2558_s0 + $0x310] sm:$0xff] }
  0x6e   :  { %2046 = vmatpush.bf16.msra.mxu3 %v2034_v55 }
  0x6f   :  { %1212 = vmatpush.bf16.msrb.mxu1 %v2039_v0 }
  0x70   :  { %1193 = vmatpush.bf16.msrb.mxu0 %v2031_v63 }
  0x72   :  { %2047 = vmatpush.bf16.msra.mxu3 %v2033_v58  ;;  %925 = vmatmul.bf16.gmra.mxu1 %v2301_v10 }
  0x73   :  { %1213 = vmatpush.bf16.msrb.mxu1 %v2038_v2  ;;  %906 = vmatmul.bf16.gmra.mxu0 %v2299_v9 }
  0x74   :  { %1194 = vmatpush.bf16.msrb.mxu0 %v2030_v1  ;;  %1765 = vmatmul.msk.bf16.gmra.mxu2 %vm277_vm0, %v2190_v37 }
  0x76   :  { %2048 = vmatpush.bf16.msra.mxu3 %v2032_v61 }
  0x77   :  { %1214 = vmatpush.bf16.msrb.mxu1 %v2037_v4 }
  0x78   :  { %1195 = vmatpush.bf16.msrb.mxu0 %v2029_v3 }
  0x7a   :  { %2049 = vmatpush.bf16.msra.mxu3 %v2031_v63 }
  0x7b   :  { %1215 = vmatpush.bf16.msrb.mxu1 %v2036_v46 }
  0x7c   :  { %1196 = vmatpush.bf16.msrb.mxu0 %v2028_v5 }
  0x7d   :  { %1184 = vmatmul.bf16.gmra.mxu3 %v2293_v7 }
  0x7e   :  { %2050 = vmatpush.bf16.msra.mxu3 %v2030_v1 }
  0x7f   :  { %1216 = vmatpush.bf16.msrb.mxu1 %v2035_v12 }
  0x80   :  { %1197 = vmatpush.bf16.msrb.mxu0 %v2027_v11 }
  0x82   :  { %2051 = vmatpush.bf16.msra.mxu3 %v2029_v3  ;;  %1217 = vmatmul.bf16.vlgmr.msrb.gmra.mxu1 %v2225_v49 }
  0x83   :  { %1198 = vmatmul.bf16.vlgmr.msrb.gmra.mxu0 %v2223_v48 }
  0x84   :  { %1928 = vmatmul.msk.bf16.vlgmr.msrb.gmra.mxu2 %vm277_vm0, %v2123_v15 }
  0x86   :  { %2052 = vmatpush.bf16.msra.mxu3 %v2028_v5 }
  0x8a   :  { %2053 = vmatpush.bf16.msra.mxu3 %v2027_v11 }
  0x8d   :  { %1203 = vmatmul.bf16.vlgmr.msra.gmra.mxu3 %v2299_v9 }
  0x90   :  { %v350_v17 = vpop.f32.mrf.mxu3 }
  0x92   :  { %1222 = vmatmul.bf16.gmra.mxu1 %v2301_v10 }
  0x94   :  { %1929 = vmatmul.msk.bf16.gmra.mxu2 %vm277_vm0, %v2190_v37 }
  0x98   :  { %v352_v48 = vpop.f32.mrf.mxu3 }
  0x9e   :  { %v293_v7 = vpop.f32.mrf.mxu0 }
  0x9f   :  { %v312_v49 = vpop.f32.mrf.mxu1 }
  0xa0   :  { %v313_v18 = vadd.f32 %v312_v49, %v293_v7  ;;  %v355_v19 = vpop.f32.mrf.mxu3 }
  0xa6   :  { %v331_v15 = vpop.f32.mrf.mxu2  ;;  %v295_v21 = vpop.f32.mrf.mxu0 }
  0xa7   :  { %v332_v20 = vadd.f32 %v331_v15, %v313_v18  ;;  %v314_v22 = vpop.f32.mrf.mxu1 }
  0xa8   :  { %v315_v24 = vadd.f32 %v314_v22, %v295_v21  ;;  %v357_v25 = vpop.f32.mrf.mxu3 }
  0xa9   :  { %v2518_v23 = vadd.f32 %v350_v17, %v332_v20 }
  0xae   :  { %v333_v9 = vpop.f32.mrf.mxu2  ;;  %v298_v27 = vpop.f32.mrf.mxu0 }
  0xaf   :  { %v334_v26 = vadd.f32 %v333_v9, %v315_v24  ;;  %v317_v10 = vpop.f32.mrf.mxu1 }
  0xb0   :  { %v318_v37 = vadd.f32 %v317_v10, %v298_v27  ;;  %v586_v29 = vpop.f32.mrf.mxu3 }
  0xb1   :  { %v2520_v28 = vadd.f32 %v352_v48, %v334_v26 }
  0xb6   :  { %v336_v30 = vpop.f32.mrf.mxu2  ;;  %v300_v32 = vpop.f32.mrf.mxu0 }
  0xb7   :  { %v337_v31 = vadd.f32 %v336_v30, %v318_v37  ;;  %v319_v33 = vpop.f32.mrf.mxu1 }
  0xb8   :  { %v320_v35 = vadd.f32 %v319_v33, %v300_v32  ;;  %v588_v36 = vpop.f32.mrf.mxu3 }
  0xb9   :  { %v2522_v34 = vadd.f32 %v355_v19, %v337_v31 }
  0xbe   :  { %v338_v38 = vpop.f32.mrf.mxu2 }
  0xbf   :  { %v339_v39 = vadd.f32 %v338_v38, %v320_v35  ;;  %v624_v41 = vpop.f32.mrf.mxu1  ;;  %v1258_v35 = vpop.permute.xlu0 %1257 }
  0xc0   :  { %v605_v40 = vpop.f32.mrf.mxu0  ;;  %v591_v44 = vpop.f32.mrf.mxu3 }
  0xc1   :  { %v2524_v42 = vadd.f32 %v357_v25, %v339_v39  ;;  %v606_v43 = vadd.f32 %v605_v40, %v586_v29 }
  0xc3   :  { %v625_v45 = vadd.f32 %v624_v41, %v606_v43 }
  0xc7   :  { %v643_v47 = vpop.f32.mrf.mxu2  ;;  %v626_v52 = vpop.f32.mrf.mxu1 }
  0xc8   :  { %v644_v50 = vadd.f32 %v643_v47, %v625_v45  ;;  %v607_v51 = vpop.f32.mrf.mxu0  ;;  %v593_v55 = vpop.f32.mrf.mxu3 }
  0xc9   :  { %v608_v54 = vadd.f32 %v607_v51, %v588_v36 }
  0xca   :  { %v653_v53 = vmax.f32 %v2518_v23, %v644_v50 }
  0xcb   :  { %v627_v56 = vadd.f32 %v626_v52, %v608_v54 }
  0xcf   :  { %v645_v57 = vpop.f32.mrf.mxu2  ;;  %v629_v60 = vpop.f32.mrf.mxu1 }
  0xd0   :  { %v646_v58 = vadd.f32 %v645_v57, %v627_v56  ;;  %v610_v59 = vpop.f32.mrf.mxu0  ;;  %v883_v63 = vpop.f32.mrf.mxu3 }
  0xd1   :  { %v611_v62 = vadd.f32 %v610_v59, %v591_v44  ;;  %v1263_v59 = vpop.permute.xlu0 %1262 }
  0xd2   :  { %v654_v61 = vmax.f32 %v2520_v28, %v646_v58 }
  0xd3   :  { %v630_v0 = vadd.f32 %v629_v60, %v611_v62 }
  0xd7   :  { %v648_v1 = vpop.f32.mrf.mxu2  ;;  %v631_v4 = vpop.f32.mrf.mxu1 }
  0xd8   :  { %v2528_v2 = vadd.f32 %v648_v1, %v630_v0  ;;  %v612_v3 = vpop.f32.mrf.mxu0  ;;  %v885_v6 = vpop.f32.mrf.mxu3 }
  0xd9   :  { %v613_v46 = vadd.f32 %v612_v3, %v593_v55 }
  0xda   :  { %v655_v5 = vmax.f32 %v2522_v34, %v2528_v2 }
  0xdb   :  { %v632_v8 = vadd.f32 %v631_v4, %v613_v46 }
  0xdf   :  { %v650_v11 = vpop.f32.mrf.mxu2  ;;  %v921_v14 = vpop.f32.mrf.mxu1 }
  0xe0   :  { %v2532_v12 = vadd.f32 %v650_v11, %v632_v8  ;;  %v902_v13 = vpop.f32.mrf.mxu0  ;;  %v888_v17 = vpop.f32.mrf.mxu3 }
  0xe1   :  { %v903_v9 = vadd.f32 %v902_v13, %v883_v63 }
  0xe2   :  { %v656_v16 = vmax.f32 %v2524_v42, %v2532_v12 }
  0xe3   :  { %v922_v28 = vadd.f32 %v921_v14, %v903_v9  ;;  %v1268_v14 = vpop.permute.xlu1 %1267 }
  0xe7   :  { %v940_v48 = vpop.f32.mrf.mxu2  ;;  %v923_v49 = vpop.f32.mrf.mxu1 }
  0xe8   :  { %v904_v7 = vpop.f32.mrf.mxu0  ;;  %v890_v18 = vpop.f32.mrf.mxu3  ;;  %v941_v30 = vadd.f32 %v940_v48, %v922_v28 }
  0xe9   :  { %v905_v31 = vadd.f32 %v904_v7, %v885_v6 }
  0xea   :  { %v950_v36 = vmax.f32 %v653_v53, %v941_v30 }
  0xeb   :  { %v924_v41 = vadd.f32 %v923_v49, %v905_v31 }
  0xef   :  { %v942_v19 = vpop.f32.mrf.mxu2  ;;  %v926_v20 = vpop.f32.mrf.mxu1 }
  0xf0   :  { %v907_v15 = vpop.f32.mrf.mxu0  ;;  %v1180_v21 = vpop.f32.mrf.mxu3  ;;  %v943_v47 = vadd.f32 %v942_v19, %v924_v41 }
  0xf1   :  { %v908_v51 = vadd.f32 %v907_v15, %v888_v17 }
  0xf2   :  { %v951_v56 = vmax.f32 %v654_v61, %v943_v47 }
  0xf3   :  { %v927_v60 = vadd.f32 %v926_v20, %v908_v51 }
  0xf7   :  { %v945_v22 = vpop.f32.mrf.mxu2  ;;  %v928_v24 = vpop.f32.mrf.mxu1 }
  0xf8   :  { %v909_v23 = vpop.f32.mrf.mxu0  ;;  %v1182_v25 = vpop.f32.mrf.mxu3  ;;  %v946_v1 = vadd.f32 %v945_v22, %v927_v60 }
  0xf9   :  { %v910_v46 = vadd.f32 %v909_v23, %v890_v18 }
  0xfa   :  { %v952_v61 = vmax.f32 %v655_v5, %v946_v1 }
  0xfb   :  { %v929_v17 = vadd.f32 %v928_v24, %v910_v46  ;;  %v1273_v24 = vpop.permute.xlu1 %1272 }
  0xff   :  { %v947_v26 = vpop.f32.mrf.mxu2  ;;  %v1218_v10 = vpop.f32.mrf.mxu1 }
 0x100   :  { %v1199_v27 = vpop.f32.mrf.mxu0  ;;  %v1185_v29 = vpop.f32.mrf.mxu3  ;;  %v948_v19 = vadd.f32 %v947_v26, %v929_v17 }
 0x101   :  { %v1200_v37 = vadd.f32 %v1199_v27, %v1180_v21 }
 0x102   :  { %v953_v34 = vmax.f32 %v656_v16, %v948_v19 }
 0x103   :  { %v1219_v32 = vadd.f32 %v1218_v10, %v1200_v37 }
 0x107   :  { %v1237_v33 = vpop.f32.mrf.mxu2  ;;  %v1220_v40 = vpop.f32.mrf.mxu1 }
 0x108   :  { %v1238_v38 = vadd.f32 %v1237_v33, %v1219_v32  ;;  %v1201_v39 = vpop.f32.mrf.mxu0  ;;  %v1187_v45 = vpop.f32.mrf.mxu3 }
 0x109   :  { %v1202_v43 = vadd.f32 %v1201_v39, %v1182_v25 }
 0x10a   :  { %v1247_v44 = vmax.f32 %v950_v36, %v1238_v38 }
 0x10b   :  { %v1221_v52 = vadd.f32 %v1220_v40, %v1202_v43 }
 0x10c   :  { %v1275_v50 = vadd.f32 %v1258_v35, %v1247_v44 }
 0x10e   :  { %v1279_v54 = vmax.f32 %v1275_v50, 0.0 }
 0x10f   :  { %v1239_v55 = vpop.f32.mrf.mxu2  ;;  %v1223_v53 = vpop.f32.mrf.mxu1 }
 0x110   :  { %v1283_v57 = vpack.c.bf16 %v1279_v54, %v1279_v54  ;;  %v1240_v58 = vadd.f32 %v1239_v55, %v1221_v52  ;;  %v1204_v63 = vpop.f32.mrf.mxu3 }
 0x111   :  { %v1205_v0 = vadd.f32 %v1204_v63, %v1185_v29 }
 0x112   :  { %1288 = vst.msk [vmem:[%s2561_s3] sm:$0xf] %vm1287_vm1, %v1283_v57  ;;  %v1248_v62 = vmax.f32 %v951_v56, %v1240_v58 }
 0x113   :  { %v1224_v4 = vadd.f32 %v1223_v53, %v1205_v0 }
 0x114   :  { %v1276_v3 = vadd.f32 %v1263_v59, %v1248_v62 }
 0x116   :  { %v1280_v6 = vmax.f32 %v1276_v3, 0.0 }
 0x117   :  { %v1242_v8 = vpop.f32.mrf.mxu2  ;;  %v1225_v15 = vpop.f32.mrf.mxu1 }
 0x118   :  { %v1284_v11 = vpack.c.bf16 %v1280_v6, %v1280_v6  ;;  %v1243_v13 = vadd.f32 %v1242_v8, %v1224_v4  ;;  %v1206_v7 = vpop.f32.mrf.mxu3 }
 0x119   :  { %v1207_v49 = vadd.f32 %v1206_v7, %v1187_v45 }
 0x11a   :  { %1289 = vst.msk [vmem:[%s2561_s3 + $0x4] sm:$0xf] %vm1287_vm1, %v1284_v11  ;;  %v1249_v48 = vmax.f32 %v952_v61, %v1243_v13 }
 0x11b   :  { %v1226_v20 = vadd.f32 %v1225_v15, %v1207_v49 }
 0x11c   :  { %v1277_v18 = vadd.f32 %v1268_v14, %v1249_v48 }
 0x11e   :  { %v1281_v21 = vmax.f32 %v1277_v18, 0.0 }
 0x11f   :  { %v1244_v22 = vpop.f32.mrf.mxu2 }
 0x120   :  { %v1285_v2 = vpack.c.bf16 %v1281_v21, %v1281_v21  ;;  %v1245_v5 = vadd.f32 %v1244_v22, %v1226_v20 }
 0x122   :  { %1290 = vst.msk [vmem:[%s2561_s3 + $0x8] sm:$0xf] %vm1287_vm1, %v1285_v2  ;;  %v1250_v23 = vmax.f32 %v953_v34, %v1245_v5 }
 0x124   :  { %v1278_v25 = vadd.f32 %v1273_v24, %v1250_v23 }
 0x126   :  { %v1282_v9 = vmax.f32 %v1278_v25, 0.0 }
 0x128   :  { %v1286_v26 = vpack.c.bf16 %v1282_v9, %v1282_v9 }
 0x12a   :  { %1291 = vst.msk [vmem:[%s2561_s3 + $0xc] sm:$0xf] %vm1287_vm1, %v1286_v26 }

// kernel: forward.11
= control target key start
LH: loop header
LB: loop body
LE: loop exit
PB: predicated region body
PF: predicated region fallthrough
CT: control target
= control target key end

     0   :  { %s227_s0 = inlined_call_operand.vmem [shape: bf16[2,512], index: 0, kind: input, shape index: {}]   ;;  %s228_s1 = inlined_call_operand.vmem [shape: bf16[10,512], index: 1, kind: input, shape index: {}]   ;;  %s229_s2 = inlined_call_operand.vmem [shape: f32[1,10], index: 2, kind: input, shape index: {}]   ;;  %s230_s3 = inlined_call_operand.hbm [shape: f32[2,10], index: 3, kind: output, shape index: {}]  }
   0x1   :  { %v127_v0 = vld [vmem:[%s228_s1] sm:$0xf]  ;;  %v143_v1 = vld [vmem:[%s228_s1 + $0xc] sm:$0x10]  ;;  %v141_v2 = vld [vmem:[%s228_s1 + $0x4] sm:$0xf] }
   0x2   :  { %v128_v3 = vor.u32 %v143_v1, %v127_v0  ;;  %v129_v4 = vld [vmem:[%s228_s1 + $0x10] sm:$0x10]  ;;  %v135_v5 = vld [vmem:[%s228_s1 + $0x8] sm:$0xf]  ;;  %v144_v6 = vld [vmem:[%s228_s1 + $0x14] sm:$0x10] }
   0x3   :  { %v132_v7 = vor.u32 %v141_v2, %v129_v4  ;;  %v136_v8 = vor.u32 %v144_v6, %v135_v5  ;;  %v142_v9 = vld [vmem:[%s228_s1 + $0xc] sm:$0xf]  ;;  %v137_v10 = vld [vmem:[%s228_s1 + $0x18] sm:$0x10]  ;;  %v16_v11 = vld [vmem:[%s227_s0] sm:$0xf] }
   0x4   :  { %62 = vmatpush.bf16.xpose.msra.mxu0 %v128_v3  ;;  %v140_v12 = vor.u32 %v142_v9, %v137_v10  ;;  %26 = vst [vmem:[#allocation1] ss:$9 sm:$0xff] %v16_v11 }
   0x5   :  { %75 = vmatpush.bf16.xpose.msra.mxu1 %v132_v7  ;;  %88 = vmatpush.bf16.xpose.msra.mxu2 %v136_v8 }
   0x6   :  { %8 = vsyncpa [#allocation3], 0  ;;  %101 = vmatpush.bf16.xpose.msra.mxu3 %v140_v12  ;;  %v146_v17 = vld [vmem:[%s229_s2] ss:$0 sm:$0xff]  ;;  %s173_s0 = smov [#allocation2]   ;;  %s116_s7 = sshll.u32 %s230_s3, 4  ;;  %s117_s7 = int_to_ptr.hbm [resolvable:$true] %s116_s7 }
   0x7   :  { %s114_s4 = sshll.u32 %s173_s0, 4  ;;  %vm107_vm0 = vcmask 74752   ;;  %s115_s4 = int_to_ptr.vmem [resolvable:$true] %s114_s4 }
   0xb   :  { %v27_v13 = vld [vmem:[#allocation1] sm:$0xff]  ;;  %v28_v14 = vld [vmem:[#allocation1 + $0x9] sm:$0xff]  ;;  %v29_v15 = vld [vmem:[#allocation1 + $0x12] sm:$0xff] }
   0xc   :  { %63 = vmatmul.bf16.vlgmr.msra.gmra.mxu0 %v27_v13  ;;  %76 = vmatmul.bf16.vlgmr.msra.gmra.mxu1 %v28_v14  ;;  %v30_v16 = vld [vmem:[#allocation1 + $0x1b] sm:$0xff] }
   0xd   :  { %89 = vmatmul.bf16.vlgmr.msra.gmra.mxu2 %v29_v15  ;;  %102 = vmatmul.bf16.vlgmr.msra.gmra.mxu3 %v30_v16 }
  0x89   :  { %v64_v18 = vpop.f32.mrf.mxu0  ;;  %v77_v19 = vpop.f32.mrf.mxu1 }
  0x8a   :  { %v65_v20 = vadd.f32 %v146_v17, %v64_v18 }
  0x8c   :  { %v78_v21 = vadd.f32 %v77_v19, %v65_v20 }
  0x90   :  { %v90_v22 = vpop.f32.mrf.mxu2  ;;  %v103_v23 = vpop.f32.mrf.mxu3 }
  0x91   :  { %v91_v24 = vadd.f32 %v90_v22, %v78_v21  ;;  %v66_v25 = vpop.f32.mrf.mxu0  ;;  %v79_v26 = vpop.f32.mrf.mxu1 }
  0x93   :  { %v104_v27 = vadd.f32 %v103_v23, %v91_v24 }
  0x95   :  { %108 = vst.msk [vmem:[#allocation2] sm:$0x3] %vm107_vm0, %v104_v27 }
  0x96   :  { %119 = dma.vmem_to_hbm [thread:$0]  %s115_s4, 32, %s117_s7, [#allocation3]  }
  0x98   :  { %v92_v28 = vpop.f32.mrf.mxu2  ;;  %v105_v29 = vpop.f32.mrf.mxu3 }
  0x99   :  { %171 = dma.done.wait [#allocation3], 32  }
  0x9a   :  { %172 = vsyncadd [#allocation3], 4294967264 }
  0x9b   :  { %124 = vsyncpa [#allocation3], 1 }

</bundles_post_ra>
